<compile_context>
chip_gen: v7x
topology: tpu7x:2x2x1
jax: 0.10.0
libtpu: 0.0.40
codegen_flags: <defaults>
</compile_context>

<pallas_src>
import jax
import jax.numpy as jnp
from jax.experimental import pallas as pl
from jax.experimental.pallas import tpu as pltpu

P_DROP = 0.3
KEEP_SCALE = 1.0 / (1.0 - P_DROP)
# dropout decided on a 31-bit uniform: drop iff u31 < P_DROP * 2^31
DROP_THRESHOLD_31 = int(P_DROP * float(1 << 31))

D_IN, H, D_OUT = 784, 1200, 1


def _elu(v):
    # ELU(alpha=1): v if v > 0 else exp(v) - 1  (f32 throughout)
    return jnp.where(v > 0, v, jnp.exp(jnp.minimum(v, 0.0)) - 1.0)


def _hash_u32(shape, seed_u32, salt):
    """Stateless counter-based uint32 hash (murmur3-style finalizer)."""
    r = jax.lax.broadcasted_iota(jnp.int32, shape, 0)
    c = jax.lax.broadcasted_iota(jnp.int32, shape, 1)
    idx = (r * shape[1] + c).astype(jnp.uint32)
    x = idx + (seed_u32 + jnp.uint32(salt)) * jnp.uint32(0x9E3779B9)
    x = x ^ (x >> 16)
    x = x * jnp.uint32(0x85EBCA6B)
    x = x ^ (x >> 13)
    x = x * jnp.uint32(0xC2B2AE35)
    x = x ^ (x >> 16)
    return x


def _dropout(v, seed_u32, salt):
    # F.dropout(p=0.3, training=True): zero with prob p, scale survivors 1/(1-p).
    bits = _hash_u32(v.shape, seed_u32, salt)
    u31 = (bits >> 1).astype(jnp.int32)            # uniform on [0, 2^31)
    keep = u31 >= DROP_THRESHOLD_31
    return jnp.where(keep, v * jnp.float32(KEEP_SCALE), jnp.float32(0.0))


def t_function_kernel(seed_ref, x_ref, w1_ref, b1_ref, w2_ref, b2_ref,
                      w3_ref, b3_ref, out_ref):
    seed_u32 = seed_ref[0].astype(jnp.uint32)

    x = x_ref[...]                                                     # (B, 784) f32

    # Layer 1: bf16 x bf16 on the MXU, f32 accumulation.
    h1 = jnp.dot(x.astype(jnp.bfloat16), w1_ref[...],
                 preferred_element_type=jnp.float32) + b1_ref[...]
    h1 = _dropout(_elu(h1), seed_u32, 1)                               # (B, 1200) f32

    # Layer 2.
    h2 = jnp.dot(h1.astype(jnp.bfloat16), w2_ref[...],
                 preferred_element_type=jnp.float32) + b2_ref[...]
    h2 = _dropout(_elu(h2), seed_u32, 2)                               # (B, 1200) f32

    # Layer 3: N=1 output -> lane-dense (1, 1200) weight row, VPU mul + row sum
    # instead of a degenerate (1200, 1) MXU matmul.
    h3 = jnp.sum(h2 * w3_ref[...], axis=-1, keepdims=True) + b3_ref[...]
    out_ref[...] = _dropout(h3, seed_u32, 3)                           # (B, 1)


def t_function(inputs, params, seed):
    """inputs: (B, 1, 28, 28) float32 (NCHW). Returns (B, 1) float32."""
    B = inputs.shape[0]
    x = inputs.reshape(B, -1)                      # glue: view(B, -1)
    w1, b1, w2, b2, w3_row, b3 = params

    # Stream the two big weight matrices as bf16 (halves HBM weight traffic);
    # biases and the tiny (1, 1200) w3 row stay f32.
    w1 = w1.astype(jnp.bfloat16)
    w2 = w2.astype(jnp.bfloat16)

    seed_arr = jnp.asarray([seed], dtype=jnp.int32)

    grid_spec = pltpu.PrefetchScalarGridSpec(
        num_scalar_prefetch=1,
        grid=(1,),
        in_specs=[
            pl.BlockSpec((B, D_IN), lambda i, s: (0, 0)),      # x
            pl.BlockSpec((D_IN, H), lambda i, s: (0, 0)),      # w1 (bf16)
            pl.BlockSpec((1, H), lambda i, s: (0, 0)),         # b1
            pl.BlockSpec((H, H), lambda i, s: (0, 0)),         # w2 (bf16)
            pl.BlockSpec((1, H), lambda i, s: (0, 0)),         # b2
            pl.BlockSpec((1, H), lambda i, s: (0, 0)),         # w3 row (f32)
            pl.BlockSpec((1, D_OUT), lambda i, s: (0, 0)),     # b3
        ],
        out_specs=pl.BlockSpec((B, D_OUT), lambda i, s: (0, 0)),
    )

    return pl.pallas_call(
        t_function_kernel,
        out_shape=jax.ShapeDtypeStruct((B, D_OUT), jnp.float32),
        grid_spec=grid_spec,
        compiler_params=pltpu.CompilerParams(
            dimension_semantics=("arbitrary",),
            vmem_limit_bytes=32 * 1024 * 1024,     # fits v7x's 64 MiB VMEM
        ),
    )(seed_arr, x, w1, b1, w2, b2, w3_row, b3)


def init_params(key):
    """Deterministic params, PyTorch-Linear-style U(-1/sqrt(fan_in), 1/sqrt(fan_in)).
    w1/w2 stored transposed (in_features, out_features); w3 stored lane-dense
    as a (1, 1200) row."""
    def linear(k, fan_in, fan_out):
        kw, kb = jax.random.split(k)
        bound = 1.0 / jnp.sqrt(float(fan_in))
        w = jax.random.uniform(kw, (fan_in, fan_out), jnp.float32, -bound, bound)
        b = jax.random.uniform(kb, (1, fan_out), jnp.float32, -bound, bound)
        return w, b

    k1, k2, k3 = jax.random.split(key, 3)
    w1, b1 = linear(k1, D_IN, H)
    w2, b2 = linear(k2, H, H)
    w3, b3 = linear(k3, H, D_OUT)
    w3_row = w3.reshape(1, H)                      # (1, 1200) lane-dense
    return (w1, b1, w2, b2, w3_row, b3)


if __name__ == "__main__":
    key = jax.random.PRNGKey(0)
    k_params, k_x = jax.random.split(key)

    params = init_params(k_params)
    # MNIST-like input, NCHW
    x = jax.random.normal(k_x, (8, 1, 28, 28), dtype=jnp.float32)

    out = t_function(x, params, seed=1234)
    out = jax.block_until_ready(out)

    assert out.shape == (8, 1), out.shape
    assert out.dtype == jnp.float32
    assert bool(jnp.all(jnp.isfinite(out)))
    print("KERNEL_OK")
</pallas_src>

<mosaic_0001>
module attributes {stable_mosaic.version = 11 : i64} {
  func.func @t_function_kernel(%arg0: i32, %arg1: memref<1xi32, #tpu.memory_space<smem>>, %arg2: memref<8x784xf32, #tpu.memory_space<vmem>>, %arg3: memref<784x1200xbf16, #tpu.memory_space<vmem>>, %arg4: memref<1x1200xf32, #tpu.memory_space<vmem>>, %arg5: memref<1200x1200xbf16, #tpu.memory_space<vmem>>, %arg6: memref<1x1200xf32, #tpu.memory_space<vmem>>, %arg7: memref<1x1200xf32, #tpu.memory_space<vmem>>, %arg8: memref<1x1xf32, #tpu.memory_space<vmem>>, %arg9: memref<8x1xf32, #tpu.memory_space<vmem>>) attributes {dimension_semantics = [#tpu.dimension_semantics<arbitrary>], iteration_bounds = array<i64: 1>, scalar_prefetch = 1 : i64, scratch_operands = 0 : i64, tpu.core_type = #tpu.core_type<tc>, window_params = [{pipeline_mode = #tpu.pipeline_mode<synchronous>, transform_indices = @transform_0, window_bounds = array<i64: 8, 784>}, {pipeline_mode = #tpu.pipeline_mode<synchronous>, transform_indices = @transform_1, window_bounds = array<i64: 784, 1200>}, {pipeline_mode = #tpu.pipeline_mode<synchronous>, transform_indices = @transform_2, window_bounds = array<i64: 1, 1200>}, {pipeline_mode = #tpu.pipeline_mode<synchronous>, transform_indices = @transform_3, window_bounds = array<i64: 1200, 1200>}, {pipeline_mode = #tpu.pipeline_mode<synchronous>, transform_indices = @transform_4, window_bounds = array<i64: 1, 1200>}, {pipeline_mode = #tpu.pipeline_mode<synchronous>, transform_indices = @transform_5, window_bounds = array<i64: 1, 1200>}, {pipeline_mode = #tpu.pipeline_mode<synchronous>, transform_indices = @transform_6, window_bounds = array<i64: 1, 1>}, {pipeline_mode = #tpu.pipeline_mode<synchronous>, transform_indices = @transform_7, window_bounds = array<i64: 8, 1>}]} {
    %c0 = arith.constant 0 : index
    %0 = memref.load %arg1[%c0] : memref<1xi32, #tpu.memory_space<smem>>
    %c0_0 = arith.constant 0 : index
    %c0_1 = arith.constant 0 : index
    %1 = vector.load %arg2[%c0_0, %c0_1] : memref<8x784xf32, #tpu.memory_space<vmem>>, vector<8x784xf32>
    %2 = arith.truncf %1 : vector<8x784xf32> to vector<8x784xbf16>
    %c0_2 = arith.constant 0 : index
    %c0_3 = arith.constant 0 : index
    %3 = vector.load %arg3[%c0_2, %c0_3] : memref<784x1200xbf16, #tpu.memory_space<vmem>>, vector<784x1200xbf16>
    %cst = arith.constant dense<0.000000e+00> : vector<8x1200xf32>
    %4 = tpu.matmul %2, %3, %cst {dimension_numbers = #tpu.dot_dimension_numbers<[1], [0], [0], [1], [0, 0, 1, 1], [], []>} : vector<8x784xbf16>, vector<784x1200xbf16>, vector<8x1200xf32> -> vector<8x1200xf32>
    %c0_4 = arith.constant 0 : index
    %c0_5 = arith.constant 0 : index
    %5 = vector.load %arg4[%c0_4, %c0_5] : memref<1x1200xf32, #tpu.memory_space<vmem>>, vector<1x1200xf32>
    %6 = vector.broadcast %5 : vector<1x1200xf32> to vector<8x1200xf32>
    %7 = arith.addf %4, %6 : vector<8x1200xf32>
    %cst_6 = arith.constant 0.000000e+00 : f32
    %8 = vector.broadcast %cst_6 : f32 to vector<8x1200xf32>
    %9 = arith.cmpf ogt, %7, %8 : vector<8x1200xf32>
    %cst_7 = arith.constant 0.000000e+00 : f32
    %10 = vector.broadcast %cst_7 : f32 to vector<8x1200xf32>
    %11 = arith.minimumf %7, %10 : vector<8x1200xf32>
    %12 = math.exp %11 : vector<8x1200xf32>
    %cst_8 = arith.constant 1.000000e+00 : f32
    %13 = vector.broadcast %cst_8 : f32 to vector<8x1200xf32>
    %14 = arith.subf %12, %13 : vector<8x1200xf32>
    %15 = arith.select %9, %7, %14 : vector<8x1200xi1>, vector<8x1200xf32>
    %16 = tpu.iota {dimensions = array<i32: 0>} : vector<8x1200xi32>
    %17 = tpu.iota {dimensions = array<i32: 1>} : vector<8x1200xi32>
    %c1200_i32 = arith.constant 1200 : i32
    %18 = vector.broadcast %c1200_i32 : i32 to vector<8x1200xi32>
    %19 = arith.muli %16, %18 : vector<8x1200xi32>
    %20 = arith.addi %19, %17 : vector<8x1200xi32>
    %c1_i32 = arith.constant 1 : i32
    %21 = arith.addi %0, %c1_i32 : i32
    %c-1640531527_i32 = arith.constant -1640531527 : i32
    %22 = arith.muli %21, %c-1640531527_i32 : i32
    %23 = vector.broadcast %22 : i32 to vector<8x1200xi32>
    %24 = arith.addi %20, %23 : vector<8x1200xi32>
    %c16_i32 = arith.constant 16 : i32
    %25 = vector.broadcast %c16_i32 : i32 to vector<8x1200xi32>
    %26 = arith.shrui %24, %25 : vector<8x1200xi32>
    %27 = arith.xori %24, %26 : vector<8x1200xi32>
    %c-2048144789_i32 = arith.constant -2048144789 : i32
    %28 = vector.broadcast %c-2048144789_i32 : i32 to vector<8x1200xi32>
    %29 = arith.muli %27, %28 : vector<8x1200xi32>
    %c13_i32 = arith.constant 13 : i32
    %30 = vector.broadcast %c13_i32 : i32 to vector<8x1200xi32>
    %31 = arith.shrui %29, %30 : vector<8x1200xi32>
    %32 = arith.xori %29, %31 : vector<8x1200xi32>
    %c-1028477387_i32 = arith.constant -1028477387 : i32
    %33 = vector.broadcast %c-1028477387_i32 : i32 to vector<8x1200xi32>
    %34 = arith.muli %32, %33 : vector<8x1200xi32>
    %c16_i32_9 = arith.constant 16 : i32
    %35 = vector.broadcast %c16_i32_9 : i32 to vector<8x1200xi32>
    %36 = arith.shrui %34, %35 : vector<8x1200xi32>
    %37 = arith.xori %34, %36 : vector<8x1200xi32>
    %c1_i32_10 = arith.constant 1 : i32
    %38 = vector.broadcast %c1_i32_10 : i32 to vector<8x1200xi32>
    %39 = arith.shrui %37, %38 : vector<8x1200xi32>
    %c644245094_i32 = arith.constant 644245094 : i32
    %40 = vector.broadcast %c644245094_i32 : i32 to vector<8x1200xi32>
    %41 = arith.cmpi sge, %39, %40 : vector<8x1200xi32>
    %cst_11 = arith.constant 1.42857146 : f32
    %42 = vector.broadcast %cst_11 : f32 to vector<8x1200xf32>
    %43 = arith.mulf %15, %42 : vector<8x1200xf32>
    %cst_12 = arith.constant 0.000000e+00 : f32
    %44 = vector.broadcast %cst_12 : f32 to vector<8x1200xf32>
    %45 = arith.select %41, %43, %44 : vector<8x1200xi1>, vector<8x1200xf32>
    %46 = arith.truncf %45 : vector<8x1200xf32> to vector<8x1200xbf16>
    %c0_13 = arith.constant 0 : index
    %c0_14 = arith.constant 0 : index
    %47 = vector.load %arg5[%c0_13, %c0_14] : memref<1200x1200xbf16, #tpu.memory_space<vmem>>, vector<1200x1200xbf16>
    %cst_15 = arith.constant dense<0.000000e+00> : vector<8x1200xf32>
    %48 = tpu.matmul %46, %47, %cst_15 {dimension_numbers = #tpu.dot_dimension_numbers<[1], [0], [0], [1], [0, 0, 1, 1], [], []>} : vector<8x1200xbf16>, vector<1200x1200xbf16>, vector<8x1200xf32> -> vector<8x1200xf32>
    %c0_16 = arith.constant 0 : index
    %c0_17 = arith.constant 0 : index
    %49 = vector.load %arg6[%c0_16, %c0_17] : memref<1x1200xf32, #tpu.memory_space<vmem>>, vector<1x1200xf32>
    %50 = vector.broadcast %49 : vector<1x1200xf32> to vector<8x1200xf32>
    %51 = arith.addf %48, %50 : vector<8x1200xf32>
    %cst_18 = arith.constant 0.000000e+00 : f32
    %52 = vector.broadcast %cst_18 : f32 to vector<8x1200xf32>
    %53 = arith.cmpf ogt, %51, %52 : vector<8x1200xf32>
    %cst_19 = arith.constant 0.000000e+00 : f32
    %54 = vector.broadcast %cst_19 : f32 to vector<8x1200xf32>
    %55 = arith.minimumf %51, %54 : vector<8x1200xf32>
    %56 = math.exp %55 : vector<8x1200xf32>
    %cst_20 = arith.constant 1.000000e+00 : f32
    %57 = vector.broadcast %cst_20 : f32 to vector<8x1200xf32>
    %58 = arith.subf %56, %57 : vector<8x1200xf32>
    %59 = arith.select %53, %51, %58 : vector<8x1200xi1>, vector<8x1200xf32>
    %60 = tpu.iota {dimensions = array<i32: 0>} : vector<8x1200xi32>
    %61 = tpu.iota {dimensions = array<i32: 1>} : vector<8x1200xi32>
    %c1200_i32_21 = arith.constant 1200 : i32
    %62 = vector.broadcast %c1200_i32_21 : i32 to vector<8x1200xi32>
    %63 = arith.muli %60, %62 : vector<8x1200xi32>
    %64 = arith.addi %63, %61 : vector<8x1200xi32>
    %c2_i32 = arith.constant 2 : i32
    %65 = arith.addi %0, %c2_i32 : i32
    %c-1640531527_i32_22 = arith.constant -1640531527 : i32
    %66 = arith.muli %65, %c-1640531527_i32_22 : i32
    %67 = vector.broadcast %66 : i32 to vector<8x1200xi32>
    %68 = arith.addi %64, %67 : vector<8x1200xi32>
    %c16_i32_23 = arith.constant 16 : i32
    %69 = vector.broadcast %c16_i32_23 : i32 to vector<8x1200xi32>
    %70 = arith.shrui %68, %69 : vector<8x1200xi32>
    %71 = arith.xori %68, %70 : vector<8x1200xi32>
    %c-2048144789_i32_24 = arith.constant -2048144789 : i32
    %72 = vector.broadcast %c-2048144789_i32_24 : i32 to vector<8x1200xi32>
    %73 = arith.muli %71, %72 : vector<8x1200xi32>
    %c13_i32_25 = arith.constant 13 : i32
    %74 = vector.broadcast %c13_i32_25 : i32 to vector<8x1200xi32>
    %75 = arith.shrui %73, %74 : vector<8x1200xi32>
    %76 = arith.xori %73, %75 : vector<8x1200xi32>
    %c-1028477387_i32_26 = arith.constant -1028477387 : i32
    %77 = vector.broadcast %c-1028477387_i32_26 : i32 to vector<8x1200xi32>
    %78 = arith.muli %76, %77 : vector<8x1200xi32>
    %c16_i32_27 = arith.constant 16 : i32
    %79 = vector.broadcast %c16_i32_27 : i32 to vector<8x1200xi32>
    %80 = arith.shrui %78, %79 : vector<8x1200xi32>
    %81 = arith.xori %78, %80 : vector<8x1200xi32>
    %c1_i32_28 = arith.constant 1 : i32
    %82 = vector.broadcast %c1_i32_28 : i32 to vector<8x1200xi32>
    %83 = arith.shrui %81, %82 : vector<8x1200xi32>
    %c644245094_i32_29 = arith.constant 644245094 : i32
    %84 = vector.broadcast %c644245094_i32_29 : i32 to vector<8x1200xi32>
    %85 = arith.cmpi sge, %83, %84 : vector<8x1200xi32>
    %cst_30 = arith.constant 1.42857146 : f32
    %86 = vector.broadcast %cst_30 : f32 to vector<8x1200xf32>
    %87 = arith.mulf %59, %86 : vector<8x1200xf32>
    %cst_31 = arith.constant 0.000000e+00 : f32
    %88 = vector.broadcast %cst_31 : f32 to vector<8x1200xf32>
    %89 = arith.select %85, %87, %88 : vector<8x1200xi1>, vector<8x1200xf32>
    %c0_32 = arith.constant 0 : index
    %c0_33 = arith.constant 0 : index
    %90 = vector.load %arg7[%c0_32, %c0_33] : memref<1x1200xf32, #tpu.memory_space<vmem>>, vector<1x1200xf32>
    %91 = vector.broadcast %90 : vector<1x1200xf32> to vector<8x1200xf32>
    %92 = arith.mulf %89, %91 : vector<8x1200xf32>
    %cst_34 = arith.constant dense<0.000000e+00> : vector<8xf32>
    %93 = vector.multi_reduction <add>, %92, %cst_34 [1] : vector<8x1200xf32> to vector<8xf32>
    %94 = vector.shape_cast %93 : vector<8xf32> to vector<8x1xf32>
    %c0_35 = arith.constant 0 : index
    %c0_36 = arith.constant 0 : index
    %95 = vector.load %arg8[%c0_35, %c0_36] : memref<1x1xf32, #tpu.memory_space<vmem>>, vector<1x1xf32>
    %96 = vector.broadcast %95 : vector<1x1xf32> to vector<8x1xf32>
    %97 = arith.addf %94, %96 : vector<8x1xf32>
    %98 = tpu.iota {dimensions = array<i32: 0>} : vector<8x1xi32>
    %99 = tpu.iota {dimensions = array<i32: 1>} : vector<8x1xi32>
    %c1_i32_37 = arith.constant 1 : i32
    %100 = vector.broadcast %c1_i32_37 : i32 to vector<8x1xi32>
    %101 = arith.muli %98, %100 : vector<8x1xi32>
    %102 = arith.addi %101, %99 : vector<8x1xi32>
    %c3_i32 = arith.constant 3 : i32
    %103 = arith.addi %0, %c3_i32 : i32
    %c-1640531527_i32_38 = arith.constant -1640531527 : i32
    %104 = arith.muli %103, %c-1640531527_i32_38 : i32
    %105 = vector.broadcast %104 : i32 to vector<8x1xi32>
    %106 = arith.addi %102, %105 : vector<8x1xi32>
    %c16_i32_39 = arith.constant 16 : i32
    %107 = vector.broadcast %c16_i32_39 : i32 to vector<8x1xi32>
    %108 = arith.shrui %106, %107 : vector<8x1xi32>
    %109 = arith.xori %106, %108 : vector<8x1xi32>
    %c-2048144789_i32_40 = arith.constant -2048144789 : i32
    %110 = vector.broadcast %c-2048144789_i32_40 : i32 to vector<8x1xi32>
    %111 = arith.muli %109, %110 : vector<8x1xi32>
    %c13_i32_41 = arith.constant 13 : i32
    %112 = vector.broadcast %c13_i32_41 : i32 to vector<8x1xi32>
    %113 = arith.shrui %111, %112 : vector<8x1xi32>
    %114 = arith.xori %111, %113 : vector<8x1xi32>
    %c-1028477387_i32_42 = arith.constant -1028477387 : i32
    %115 = vector.broadcast %c-1028477387_i32_42 : i32 to vector<8x1xi32>
    %116 = arith.muli %114, %115 : vector<8x1xi32>
    %c16_i32_43 = arith.constant 16 : i32
    %117 = vector.broadcast %c16_i32_43 : i32 to vector<8x1xi32>
    %118 = arith.shrui %116, %117 : vector<8x1xi32>
    %119 = arith.xori %116, %118 : vector<8x1xi32>
    %c1_i32_44 = arith.constant 1 : i32
    %120 = vector.broadcast %c1_i32_44 : i32 to vector<8x1xi32>
    %121 = arith.shrui %119, %120 : vector<8x1xi32>
    %c644245094_i32_45 = arith.constant 644245094 : i32
    %122 = vector.broadcast %c644245094_i32_45 : i32 to vector<8x1xi32>
    %123 = arith.cmpi sge, %121, %122 : vector<8x1xi32>
    %cst_46 = arith.constant 1.42857146 : f32
    %124 = vector.broadcast %cst_46 : f32 to vector<8x1xf32>
    %125 = arith.mulf %97, %124 : vector<8x1xf32>
    %cst_47 = arith.constant 0.000000e+00 : f32
    %126 = vector.broadcast %cst_47 : f32 to vector<8x1xf32>
    %127 = arith.select %123, %125, %126 : vector<8x1xi1>, vector<8x1xf32>
    %c0_48 = arith.constant 0 : index
    %c0_49 = arith.constant 0 : index
    %128 = vector.load %arg9[%c0_48, %c0_49] : memref<8x1xf32, #tpu.memory_space<vmem>>, vector<8x1xf32>
    tpu.vector_store %arg9[%c0_48, %c0_49], %127 {strides = array<i32>} : memref<8x1xf32, #tpu.memory_space<vmem>>, vector<8x1xf32>,
    return
  }
  func.func @transform_0(%arg0: i32, %arg1: memref<1xi32, #tpu.memory_space<smem>>) -> (i32, i32) {
    %c0_i32 = arith.constant 0 : i32
    %c0_i32_0 = arith.constant 0 : i32
    %c0_i32_1 = arith.constant 0 : i32
    return %c0_i32, %c0_i32_0 : i32, i32
  }
  func.func @transform_1(%arg0: i32, %arg1: memref<1xi32, #tpu.memory_space<smem>>) -> (i32, i32) {
    %c0_i32 = arith.constant 0 : i32
    %c0_i32_0 = arith.constant 0 : i32
    %c0_i32_1 = arith.constant 0 : i32
    return %c0_i32, %c0_i32_0 : i32, i32
  }
  func.func @transform_2(%arg0: i32, %arg1: memref<1xi32, #tpu.memory_space<smem>>) -> (i32, i32) {
    %c0_i32 = arith.constant 0 : i32
    %c0_i32_0 = arith.constant 0 : i32
    %c0_i32_1 = arith.constant 0 : i32
    return %c0_i32, %c0_i32_0 : i32, i32
  }
  func.func @transform_3(%arg0: i32, %arg1: memref<1xi32, #tpu.memory_space<smem>>) -> (i32, i32) {
    %c0_i32 = arith.constant 0 : i32
    %c0_i32_0 = arith.constant 0 : i32
    %c0_i32_1 = arith.constant 0 : i32
    return %c0_i32, %c0_i32_0 : i32, i32
  }
  func.func @transform_4(%arg0: i32, %arg1: memref<1xi32, #tpu.memory_space<smem>>) -> (i32, i32) {
    %c0_i32 = arith.constant 0 : i32
    %c0_i32_0 = arith.constant 0 : i32
    %c0_i32_1 = arith.constant 0 : i32
    return %c0_i32, %c0_i32_0 : i32, i32
  }
  func.func @transform_5(%arg0: i32, %arg1: memref<1xi32, #tpu.memory_space<smem>>) -> (i32, i32) {
    %c0_i32 = arith.constant 0 : i32
    %c0_i32_0 = arith.constant 0 : i32
    %c0_i32_1 = arith.constant 0 : i32
    return %c0_i32, %c0_i32_0 : i32, i32
  }
  func.func @transform_6(%arg0: i32, %arg1: memref<1xi32, #tpu.memory_space<smem>>) -> (i32, i32) {
    %c0_i32 = arith.constant 0 : i32
    %c0_i32_0 = arith.constant 0 : i32
    %c0_i32_1 = arith.constant 0 : i32
    return %c0_i32, %c0_i32_0 : i32, i32
  }
  func.func @transform_7(%arg0: i32, %arg1: memref<1xi32, #tpu.memory_space<smem>>) -> (i32, i32) {
    %c0_i32 = arith.constant 0 : i32
    %c0_i32_0 = arith.constant 0 : i32
    %c0_i32_1 = arith.constant 0 : i32
    return %c0_i32, %c0_i32_0 : i32, i32
  }
}

</mosaic_0001>

<bundles_post_ra>
// kernel: tpu_custom_call.1
= control target key start
LH: loop header
LB: loop body
LE: loop exit
PB: predicated region body
PF: predicated region fallthrough
CT: control target
= control target key end

     0   :  { %s14340_s0 = inlined_call_operand.<no memory space> [shape: s32[1], index: 0, kind: input, shape index: {}]   ;;  %s14341_s1 = inlined_call_operand.hbm [shape: f32[8,784], index: 1, kind: input, shape index: {}]   ;;  %s14342_s2 = inlined_call_operand.hbm [shape: bf16[784,1200], index: 2, kind: input, shape index: {}]   ;;  %s14343_s3 = inlined_call_operand.hbm [shape: f32[1,1200], index: 3, kind: input, shape index: {}]   ;;  %s14344_s4 = inlined_call_operand.hbm [shape: bf16[1200,1200], index: 4, kind: input, shape index: {}]   ;;  %s14345_s5 = inlined_call_operand.hbm [shape: f32[1,1200], index: 5, kind: input, shape index: {}]   ;;  %s14346_s6 = inlined_call_operand.hbm [shape: f32[1,1200], index: 6, kind: input, shape index: {}]   ;;  %s14347_s7 = inlined_call_operand.<no memory space> [shape: f32[1,1], index: 7, kind: input, shape index: {}]   ;;  %s14348_s8 = inlined_call_operand.vmem [shape: f32[8,1], index: 8, kind: output, shape index: {}]  }
   0x1   :  { %v14_v0 = vstv %s14347_s7 }
   0x2   :  { %15 = vst [vmem:[#allocation4] sm:$0x1] %v14_v0 }
   0x3   :  { %16 = vsyncpa [#allocation6], 0 }
   0x4   :  { %17 = vsyncpa [#allocation8], 0 }
   0x5   :  { %18 = vsyncpa [#allocation11], 0 }
   0x6   :  { %19 = vsyncpa [#allocation14], 0  ;;  %s13666_s29 = smov [#allocation7]   ;;  %s13526_s11 = scalar_lea.hbm %s14342_s2, 62720 }
   0x7   :  { %s35_s30 = sshll.u32 %s13666_s29, 4  ;;  %p13527_p0 = scmp.ne.s32.totalorder %s14342_s2, %s13526_s11  ;;  %s36_s30 = int_to_ptr.vmem [resolvable:$true] %s35_s30 }
   0x8   :  { %p13530_p1 = scmp.lt.u32.totalorder %s13526_s11, %s14342_s2 }
   0xa   :  { %p13532_p2 = pnand %p13530_p1, %p13527_p0 }
   0xc   :  { %13535 = shalt.err (!%p13532_p2)
}
   0xd   :  { %s13536_s7 = scalar_lea.vmem %s36_s30, 62720  ;;  %p13541_p4 = scmp.lt.s32.totalorder %s36_s30, %s36_s30 }
   0xe   :  { %p13537_p3 = scmp.ne.s32.totalorder %s36_s30, %s13536_s7  ;;  %p13542_p5 = scmp.lt.s32.totalorder %s13536_s7, %s13536_s7 }
  0x10   :  { %p13543_p6 = por %p13542_p5, %p13541_p4 }
  0x12   :  { %p13544_p7 = pnand %p13543_p6, %p13537_p3 }
  0x14   :  { %13547 = shalt.err (!%p13544_p7)
}
  0x15   :  { %s13667_s16 = smov 640   ;;  %s13668_s17 = smov 40  }
  0x16   :  { %41 = dma.hbm_to_vmem [thread:$0]  %s14342_s2, 62720, %s36_s30, [#allocation8], %s13667_s16, %s13667_s16, %s13668_s17  }
  0x17   :  { %s13669_s20 = smov [#allocation10]   ;;  %s13670_s22 = smov [#allocation5]  }
  0x18   :  { %s57_s21 = sshll.u32 %s13669_s20, 4  ;;  %s26_s23 = sshll.u32 %s13670_s22, 4  ;;  %s58_s21 = int_to_ptr.vmem [resolvable:$true] %s57_s21  ;;  %s27_s23 = int_to_ptr.vmem [resolvable:$true] %s26_s23 }
  0x19   :  { %s13548_s26 = scalar_lea.hbm %s14344_s4, 96000 }
  0x1a   :  { %p13549_p8 = scmp.ne.s32.totalorder %s14344_s4, %s13548_s26  ;;  %p13552_p9 = scmp.lt.u32.totalorder %s13548_s26, %s14344_s4 }
  0x1c   :  { %p13554_p10 = pnand %p13552_p9, %p13549_p8 }
  0x1e   :  { %13557 = shalt.err (!%p13554_p10)
}
  0x1f   :  { %s13558_s2 = scalar_lea.vmem %s58_s21, 96000  ;;  %p13563_p12 = scmp.lt.s32.totalorder %s58_s21, %s58_s21 }
  0x20   :  { %p13559_p11 = scmp.ne.s32.totalorder %s58_s21, %s13558_s2  ;;  %p13564_p13 = scmp.lt.s32.totalorder %s13558_s2, %s13558_s2 }
  0x22   :  { %p13565_p0 = por %p13564_p13, %p13563_p12 }
  0x24   :  { %p13566_p1 = pnand %p13565_p0, %p13559_p11 }
  0x26   :  { %13569 = shalt.err (!%p13566_p1)
}
  0x27   :  { %63 = dma.hbm_to_vmem [thread:$0]  %s14344_s4, 96000, %s58_s21, [#allocation11], %s13667_s16, %s13667_s16, %s13668_s17  }
  0x28   :  { %s13570_s13 = scalar_lea.hbm %s14341_s1, 896 }
  0x29   :  { %p13571_p2 = scmp.ne.s32.totalorder %s14341_s1, %s13570_s13  ;;  %p13574_p3 = scmp.lt.u32.totalorder %s13570_s13, %s14341_s1 }
  0x2b   :  { %p13576_p4 = pnand %p13574_p3, %p13571_p2 }
  0x2d   :  { %13579 = shalt.err (!%p13576_p4)
}
  0x2e   :  { %s13580_s19 = scalar_lea.vmem %s27_s23, 896  ;;  %p13585_p6 = scmp.lt.s32.totalorder %s27_s23, %s27_s23 }
  0x2f   :  { %p13581_p5 = scmp.ne.s32.totalorder %s27_s23, %s13580_s19  ;;  %p13586_p7 = scmp.lt.s32.totalorder %s13580_s19, %s13580_s19 }
  0x31   :  { %p13587_p8 = por %p13586_p7, %p13585_p6 }
  0x33   :  { %p13588_p9 = pnand %p13587_p8, %p13581_p5 }
  0x35   :  { %13591 = shalt.err (!%p13588_p9)
}
  0x36   :  { %29 = dma.hbm_to_vmem [thread:$0]  %s14341_s1, 896, %s27_s23, [#allocation6]  }
  0x37   :  { %s13671_s17 = smov [#allocation9]   ;;  %s13672_s21 = smov [#allocation12]  }
  0x38   :  { %s48_s20 = sshll.u32 %s13671_s17, 4  ;;  %s70_s22 = sshll.u32 %s13672_s21, 4  ;;  %s49_s20 = int_to_ptr.vmem [resolvable:$true] %s48_s20  ;;  %s71_s22 = int_to_ptr.vmem [resolvable:$true] %s70_s22 }
  0x39   :  { %s13592_s26 = scalar_lea.hbm %s14343_s3, 160 }
  0x3a   :  { %p13593_p10 = scmp.ne.s32.totalorder %s14343_s3, %s13592_s26  ;;  %p13596_p11 = scmp.lt.u32.totalorder %s13592_s26, %s14343_s3 }
  0x3c   :  { %p13598_p12 = pnand %p13596_p11, %p13593_p10 }
  0x3e   :  { %13601 = shalt.err (!%p13598_p12)
}
  0x3f   :  { %s13602_s1 = scalar_lea.vmem %s49_s20, 160  ;;  %p13607_p0 = scmp.lt.s32.totalorder %s49_s20, %s49_s20 }
  0x40   :  { %p13603_p13 = scmp.ne.s32.totalorder %s49_s20, %s13602_s1  ;;  %p13608_p1 = scmp.lt.s32.totalorder %s13602_s1, %s13602_s1 }
  0x42   :  { %p13609_p2 = por %p13608_p1, %p13607_p0 }
  0x44   :  { %p13610_p3 = pnand %p13609_p2, %p13603_p13 }
  0x46   :  { %13613 = shalt.err (!%p13610_p3)
}
  0x47   :  { %51 = dma.hbm_to_vmem [thread:$0]  %s14343_s3, 160, %s49_s20, [#allocation8]  }
  0x48   :  { %s13614_s11 = scalar_lea.hbm %s14345_s5, 160 }
  0x49   :  { %p13615_p4 = scmp.ne.s32.totalorder %s14345_s5, %s13614_s11  ;;  %p13618_p5 = scmp.lt.u32.totalorder %s13614_s11, %s14345_s5 }
  0x4b   :  { %p13620_p6 = pnand %p13618_p5, %p13615_p4 }
  0x4d   :  { %13623 = shalt.err (!%p13620_p6)
}
  0x4e   :  { %s13624_s7 = scalar_lea.vmem %s71_s22, 160  ;;  %p13629_p8 = scmp.lt.s32.totalorder %s71_s22, %s71_s22 }
  0x4f   :  { %p13625_p7 = scmp.ne.s32.totalorder %s71_s22, %s13624_s7  ;;  %p13630_p9 = scmp.lt.s32.totalorder %s13624_s7, %s13624_s7 }
  0x51   :  { %p13631_p10 = por %p13630_p9, %p13629_p8 }
  0x53   :  { %p13632_p11 = pnand %p13631_p10, %p13625_p7 }
  0x55   :  { %13635 = shalt.err (!%p13632_p11)
}
  0x56   :  { %73 = dma.hbm_to_vmem [thread:$0]  %s14345_s5, 160, %s71_s22, [#allocation11]  }
  0x57   :  { %s13673_s19 = smov [#allocation13]   ;;  %s13636_s20 = scalar_lea.hbm %s14346_s6, 160 }
  0x58   :  { %s80_s4 = sshll.u32 %s13673_s19, 4  ;;  %p13637_p12 = scmp.ne.s32.totalorder %s14346_s6, %s13636_s20  ;;  %s81_s4 = int_to_ptr.vmem [resolvable:$true] %s80_s4 }
  0x59   :  { %p13640_p13 = scmp.lt.u32.totalorder %s13636_s20, %s14346_s6 }
  0x5b   :  { %p13642_p0 = pnand %p13640_p13, %p13637_p12 }
  0x5d   :  { %13645 = shalt.err (!%p13642_p0)
}
  0x5e   :  { %s13646_s27 = scalar_lea.vmem %s81_s4, 160  ;;  %p13651_p2 = scmp.lt.s32.totalorder %s81_s4, %s81_s4 }
  0x5f   :  { %p13647_p1 = scmp.ne.s32.totalorder %s81_s4, %s13646_s27  ;;  %p13652_p3 = scmp.lt.s32.totalorder %s13646_s27, %s13646_s27 }
  0x61   :  { %p13653_p4 = por %p13652_p3, %p13651_p2 }
  0x63   :  { %p13654_p5 = pnand %p13653_p4, %p13647_p1 }
  0x65   :  { %13657 = shalt.err (!%p13654_p5)
}
  0x66   :  { %83 = dma.hbm_to_vmem [thread:$0]  %s14346_s6, 160, %s81_s4, [#allocation14]  }
  0x67   :  { %13658 = dma.done.wait [#allocation6], 896  }
  0x68   :  { %13659 = vsyncadd [#allocation6], 4294966400 }
  0x69   :  { %13660 = dma.done.wait [#allocation8], 62880  }
  0x6a   :  { %13661 = vsyncadd [#allocation8], 4294904416 }
  0x6b   :  { %13662 = dma.done.wait [#allocation11], 96160  }
  0x6c   :  { %13663 = vsyncadd [#allocation11], 4294871136 }
  0x6d   :  { %13664 = dma.done.wait [#allocation14], 160  }
  0x6e   :  { %13665 = vsyncadd [#allocation14], 4294967136  ;;  %v11623_v1 = vld [vmem:[#allocation7 + $0x4] ss:$40 sps:$4 sm:$0xff]   ;;  %v11627_v3 = vld [vmem:[#allocation7] ss:$40 sps:$4 sm:$0xff]  }
  0x6f   :  { %v11625_v2 = vld [vmem:[#allocation7 + $0xc] ss:$40 sps:$4 sm:$0xff]   ;;  %3118 = vmatprep.subr.bf16.mxu0 %v11623_v1  ;;  %v11628_v4 = vld [vmem:[#allocation7 + $0x8] ss:$40 sps:$4 sm:$0xff]   ;;  %v11631_v6 = vld [vmem:[#allocation7 + $0x5c] ss:$40 sps:$4 sm:$0xff]  }
  0x70   :  { %3282 = vmatprep.subr.bf16.mxu1 %v11625_v2  ;;  %v11629_v5 = vld [vmem:[#allocation7 + $0x54] ss:$40 sps:$4 sm:$0xff]   ;;  %3119 = vmatpush1.bf16.msra.mxu0 %v11627_v3  ;;  %v11633_v7 = vld [vmem:[#allocation7 + $0x50] ss:$40 sps:$4 sm:$0xff]   ;;  %v11635_v9 = vld [vmem:[#allocation7 + $0xa4] ss:$40 sps:$4 sm:$0xff]  }
  0x71   :  { %3283 = vmatpush1.bf16.msra.mxu1 %v11628_v4  ;;  %3120 = vmatprep.subr.bf16.mxu0 %v11629_v5  ;;  %v11634_v8 = vld [vmem:[#allocation7 + $0x58] ss:$40 sps:$4 sm:$0xff]   ;;  %v11637_v10 = vld [vmem:[#allocation7 + $0xac] ss:$40 sps:$4 sm:$0xff]   ;;  %v11640_v12 = vld [vmem:[#allocation7 + $0xa8] ss:$40 sps:$4 sm:$0xff]  }
  0x72   :  { %3284 = vmatprep.subr.bf16.mxu1 %v11631_v6  ;;  %v11639_v11 = vld [vmem:[#allocation7 + $0xa0] ss:$40 sps:$4 sm:$0xff]   ;;  %v11641_v13 = vld [vmem:[#allocation7 + $0xf4] ss:$40 sps:$4 sm:$0xff]   ;;  %v11645_v15 = vld [vmem:[#allocation7 + $0xf0] ss:$40 sps:$4 sm:$0xff]  }
  0x73   :  { %v11643_v14 = vld [vmem:[#allocation7 + $0xfc] ss:$40 sps:$4 sm:$0xff]   ;;  %v11646_v16 = vld [vmem:[#allocation7 + $0xf8] ss:$40 sps:$4 sm:$0xff]   ;;  %v11649_v18 = vld [vmem:[#allocation7 + $0x14c] ss:$40 sps:$4 sm:$0xff]  }
  0x74   :  { %3121 = vmatpush1.bf16.msra.mxu0 %v11633_v7  ;;  %v11647_v17 = vld [vmem:[#allocation7 + $0x144] ss:$40 sps:$4 sm:$0xff]   ;;  %v11651_v19 = vld [vmem:[#allocation7 + $0x140] ss:$40 sps:$4 sm:$0xff]   ;;  %v11653_v21 = vld [vmem:[#allocation7 + $0x194] ss:$40 sps:$4 sm:$0xff]  }
  0x75   :  { %3285 = vmatpush1.bf16.msra.mxu1 %v11634_v8  ;;  %3122 = vmatprep.subr.bf16.mxu0 %v11635_v9  ;;  %v11652_v20 = vld [vmem:[#allocation7 + $0x148] ss:$40 sps:$4 sm:$0xff]   ;;  %v11655_v22 = vld [vmem:[#allocation7 + $0x19c] ss:$40 sps:$4 sm:$0xff]   ;;  %v11658_v24 = vld [vmem:[#allocation7 + $0x198] ss:$40 sps:$4 sm:$0xff]  }
  0x76   :  { %3286 = vmatprep.subr.bf16.mxu1 %v11637_v10  ;;  %v11657_v23 = vld [vmem:[#allocation7 + $0x190] ss:$40 sps:$4 sm:$0xff]   ;;  %v11659_v25 = vld [vmem:[#allocation7 + $0x1e4] ss:$40 sps:$4 sm:$0xff]   ;;  %v11663_v27 = vld [vmem:[#allocation7 + $0x1e0] ss:$40 sps:$4 sm:$0xff]  }
  0x77   :  { %v11661_v26 = vld [vmem:[#allocation7 + $0x1ec] ss:$40 sps:$4 sm:$0xff]   ;;  %v11664_v28 = vld [vmem:[#allocation7 + $0x1e8] ss:$40 sps:$4 sm:$0xff]   ;;  %v11667_v30 = vld [vmem:[#allocation7 + $0x23c] ss:$40 sps:$4 sm:$0xff]  }
  0x78   :  { %3123 = vmatpush1.bf16.msra.mxu0 %v11639_v11  ;;  %v11665_v29 = vld [vmem:[#allocation7 + $0x234] ss:$40 sps:$4 sm:$0xff]   ;;  %v11669_v31 = vld [vmem:[#allocation7 + $0x230] ss:$40 sps:$4 sm:$0xff]   ;;  %v11671_v33 = vld [vmem:[#allocation7 + $0x284] ss:$40 sps:$4 sm:$0xff]  }
  0x79   :  { %3287 = vmatpush1.bf16.msra.mxu1 %v11640_v12  ;;  %3124 = vmatprep.subr.bf16.mxu0 %v11641_v13  ;;  %v11670_v32 = vld [vmem:[#allocation7 + $0x238] ss:$40 sps:$4 sm:$0xff]   ;;  %v11673_v34 = vld [vmem:[#allocation7 + $0x28c] ss:$40 sps:$4 sm:$0xff]   ;;  %v11676_v36 = vld [vmem:[#allocation7 + $0x288] ss:$40 sps:$4 sm:$0xff]  }
  0x7a   :  { %3288 = vmatprep.subr.bf16.mxu1 %v11643_v14  ;;  %v11675_v35 = vld [vmem:[#allocation7 + $0x280] ss:$40 sps:$4 sm:$0xff]   ;;  %v11677_v37 = vld [vmem:[#allocation7 + $0x2d4] ss:$40 sps:$4 sm:$0xff]   ;;  %v11681_v39 = vld [vmem:[#allocation7 + $0x2d0] ss:$40 sps:$4 sm:$0xff]  }
  0x7b   :  { %v11679_v38 = vld [vmem:[#allocation7 + $0x2dc] ss:$40 sps:$4 sm:$0xff]   ;;  %v11682_v40 = vld [vmem:[#allocation7 + $0x2d8] ss:$40 sps:$4 sm:$0xff]   ;;  %v11685_v42 = vld [vmem:[#allocation7 + $0x32c] ss:$40 sps:$4 sm:$0xff]  }
  0x7c   :  { %3125 = vmatpush1.bf16.msra.mxu0 %v11645_v15  ;;  %v11683_v41 = vld [vmem:[#allocation7 + $0x324] ss:$40 sps:$4 sm:$0xff]   ;;  %v11687_v43 = vld [vmem:[#allocation7 + $0x320] ss:$40 sps:$4 sm:$0xff]   ;;  %v11689_v45 = vld [vmem:[#allocation7 + $0x374] ss:$40 sps:$4 sm:$0xff]  }
  0x7d   :  { %3289 = vmatpush1.bf16.msra.mxu1 %v11646_v16  ;;  %3126 = vmatprep.subr.bf16.mxu0 %v11647_v17  ;;  %v11688_v44 = vld [vmem:[#allocation7 + $0x328] ss:$40 sps:$4 sm:$0xff]   ;;  %v11691_v46 = vld [vmem:[#allocation7 + $0x37c] ss:$40 sps:$4 sm:$0xff]   ;;  %v11694_v50 = vld [vmem:[#allocation7 + $0x378] ss:$40 sps:$4 sm:$0xff]  }
  0x7e   :  { %3290 = vmatprep.subr.bf16.mxu1 %v11649_v18  ;;  %v107_v47 = vld [vmem:[#allocation5 + $0x8] sm:$0xff]  ;;  %v11695_v51 = vld [vmem:[#allocation7 + $0x3c4] ss:$40 sps:$4 sm:$0xff]   ;;  %v11699_v53 = vld [vmem:[#allocation7 + $0x3c0] ss:$40 sps:$4 sm:$0xff]   ;;  %vm3114_vm0 = vcmask 130048  }
  0x7f   :  { %v11693_v48 = vld [vmem:[#allocation7 + $0x370] ss:$40 sps:$4 sm:$0xff]   ;;  %v13795_v49 = vpack.c.bf16 %v107_v47, %v107_v47  ;;  %v11697_v52 = vld [vmem:[#allocation7 + $0x3cc] ss:$40 sps:$4 sm:$0xff]   ;;  %v11703_v56 = vld [vmem:[#allocation7 + $0x41c] ss:$40 sps:$4 sm:$0xff]  }
  0x80   :  { %3127 = vmatpush1.bf16.msra.mxu0 %v11651_v19  ;;  %v11700_v54 = vld [vmem:[#allocation7 + $0x3c8] ss:$40 sps:$4 sm:$0xff]   ;;  %v11701_v55 = vld [vmem:[#allocation7 + $0x414] ss:$40 sps:$4 sm:$0xff]   ;;  %v11706_v58 = vld [vmem:[#allocation7 + $0x418] ss:$40 sps:$4 sm:$0xff]  }
  0x81   :  { %3291 = vmatpush1.bf16.msra.mxu1 %v11652_v20  ;;  %3128 = vmatprep.subr.bf16.mxu0 %v11653_v21  ;;  %v11705_v57 = vld [vmem:[#allocation7 + $0x410] ss:$40 sps:$4 sm:$0xff]   ;;  %v11707_v59 = vld [vmem:[#allocation7 + $0x464] ss:$40 sps:$4 sm:$0xff]   ;;  %v11711_v61 = vld [vmem:[#allocation7 + $0x460] ss:$40 sps:$4 sm:$0xff]  }
  0x82   :  { %3292 = vmatprep.subr.bf16.mxu1 %v11655_v22  ;;  %3150 = vmatprep.mubr.bf16.mxu0 %v13795_v49  ;;  %v11709_v60 = vld [vmem:[#allocation7 + $0x46c] ss:$40 sps:$4 sm:$0xff]   ;;  %v11712_v62 = vld [vmem:[#allocation7 + $0x468] ss:$40 sps:$4 sm:$0xff]   ;;  %v11715_v0 = vld [vmem:[#allocation7 + $0x4bc] ss:$40 sps:$4 sm:$0xff]  }
  0x83   :  { %3314 = vmatprep.mubr.bf16.mxu1 %v13795_v49  ;;  %v11713_v63 = vld [vmem:[#allocation7 + $0x4b4] ss:$40 sps:$4 sm:$0xff]   ;;  %v11717_v1 = vld [vmem:[#allocation7 + $0x4b0] ss:$40 sps:$4 sm:$0xff]   ;;  %v106_v3 = vld [vmem:[#allocation5] sm:$0xff]  ;;  %s4022_s29 = sadd.s32 1, %s14340_s0 }
  0x84   :  { %3129 = vmatpush1.bf16.msra.mxu0 %v11657_v23  ;;  %v11718_v2 = vld [vmem:[#allocation7 + $0x4b8] ss:$40 sps:$4 sm:$0xff]   ;;  %v11721_v4 = vld [vmem:[#allocation7 + $0x504] ss:$40 sps:$4 sm:$0xff]   ;;  %v13799_v6 = vpack.c.bf16 %v106_v3, %v106_v3  ;;  %v11722_v8 = vld [vmem:[#allocation7 + $0x508] ss:$40 sps:$4 sm:$0xff]  }
  0x85   :  { %3293 = vmatpush1.bf16.msra.mxu1 %v11658_v24  ;;  %3130 = vmatprep.subr.bf16.mxu0 %v11659_v25  ;;  %v11724_v5 = vld [vmem:[#allocation7 + $0x50c] ss:$40 sps:$4 sm:$0xff]   ;;  %v11719_v7 = vld [vmem:[#allocation7 + $0x500] ss:$40 sps:$4 sm:$0xff]   ;;  %v11730_v10 = vld [vmem:[#allocation7 + $0x55c] ss:$40 sps:$4 sm:$0xff]  }
  0x86   :  { %3294 = vmatprep.subr.bf16.mxu1 %v11661_v26  ;;  %v11727_v9 = vld [vmem:[#allocation7 + $0x554] ss:$40 sps:$4 sm:$0xff]   ;;  %v11725_v11 = vld [vmem:[#allocation7 + $0x550] ss:$40 sps:$4 sm:$0xff]   ;;  %v11733_v13 = vld [vmem:[#allocation7 + $0x5a4] ss:$40 sps:$4 sm:$0xff]  }
  0x87   :  { %v11728_v12 = vld [vmem:[#allocation7 + $0x558] ss:$40 sps:$4 sm:$0xff]   ;;  %v11736_v14 = vld [vmem:[#allocation7 + $0x5ac] ss:$40 sps:$4 sm:$0xff]   ;;  %v11734_v16 = vld [vmem:[#allocation7 + $0x5a8] ss:$40 sps:$4 sm:$0xff]  }
  0x88   :  { %3131 = vmatpush1.bf16.msra.mxu0 %v11663_v27  ;;  %v11731_v15 = vld [vmem:[#allocation7 + $0x5a0] ss:$40 sps:$4 sm:$0xff]   ;;  %v11739_v17 = vld [vmem:[#allocation7 + $0x5f4] ss:$40 sps:$4 sm:$0xff]   ;;  %v11737_v19 = vld [vmem:[#allocation7 + $0x5f0] ss:$40 sps:$4 sm:$0xff]  }
  0x89   :  { %3295 = vmatpush1.bf16.msra.mxu1 %v11664_v28  ;;  %3132 = vmatprep.subr.bf16.mxu0 %v11665_v29  ;;  %v11742_v18 = vld [vmem:[#allocation7 + $0x5fc] ss:$40 sps:$4 sm:$0xff]   ;;  %v11740_v20 = vld [vmem:[#allocation7 + $0x5f8] ss:$40 sps:$4 sm:$0xff]   ;;  %v11748_v22 = vld [vmem:[#allocation7 + $0x64c] ss:$40 sps:$4 sm:$0xff]  }
  0x8a   :  { %3296 = vmatprep.subr.bf16.mxu1 %v11667_v30  ;;  %v11745_v21 = vld [vmem:[#allocation7 + $0x644] ss:$40 sps:$4 sm:$0xff]   ;;  %v11743_v23 = vld [vmem:[#allocation7 + $0x640] ss:$40 sps:$4 sm:$0xff]   ;;  %v11751_v25 = vld [vmem:[#allocation7 + $0x694] ss:$40 sps:$4 sm:$0xff]  }
  0x8b   :  { %v11746_v24 = vld [vmem:[#allocation7 + $0x648] ss:$40 sps:$4 sm:$0xff]   ;;  %v11754_v26 = vld [vmem:[#allocation7 + $0x69c] ss:$40 sps:$4 sm:$0xff]   ;;  %v11752_v28 = vld [vmem:[#allocation7 + $0x698] ss:$40 sps:$4 sm:$0xff]  }
  0x8c   :  { %3133 = vmatpush1.bf16.msra.mxu0 %v11669_v31  ;;  %v11749_v27 = vld [vmem:[#allocation7 + $0x690] ss:$40 sps:$4 sm:$0xff]   ;;  %v11757_v29 = vld [vmem:[#allocation7 + $0x6e4] ss:$40 sps:$4 sm:$0xff]   ;;  %s4023_s9 = smul.u32 2654435769, %s4022_s29 }
  0x8d   :  { %3297 = vmatpush1.bf16.msra.mxu1 %v11670_v32  ;;  %3134 = vmatprep.subr.bf16.mxu0 %v11671_v33  ;;  %v11760_v30 = vld [vmem:[#allocation7 + $0x6ec] ss:$40 sps:$4 sm:$0xff]   ;;  %v109_v31 = vld [vmem:[#allocation5 + $0x18] sm:$0xff]  ;;  %v11806_v3 = vld [vmem:[#allocation7 + $0x968] ss:$40 sps:$4 sm:$0xff]   ;;  %s9808_s2 = sadd.s32 2, %s14340_s0 }
  0x8e   :  { %3298 = vmatprep.subr.bf16.mxu1 %v11673_v34  ;;  %v11755_v32 = vld [vmem:[#allocation7 + $0x6e0] ss:$40 sps:$4 sm:$0xff]   ;;  %v13803_v33 = vpack.c.bf16 %v109_v31, %v109_v31  ;;  %v11781_v47 = vld [vmem:[#allocation7 + $0x824] ss:$40 sps:$4 sm:$0xff]   ;;  %s9809_s30 = smul.u32 2654435769, %s9808_s2 }
  0x8f   :  { %v11758_v34 = vld [vmem:[#allocation7 + $0x6e8] ss:$40 sps:$4 sm:$0xff]   ;;  %s10026_s12 = sadd.s32 3, %s14340_s0 }
  0x90   :  { %3135 = vmatpush1.bf16.msra.mxu0 %v11675_v35  ;;  %v11763_v35 = vld [vmem:[#allocation7 + $0x734] ss:$40 sps:$4 sm:$0xff]   ;;  %v11839_v31 = vld [vmem:[#allocation7 + $0xb40] ss:$40 sps:$4 sm:$0xff]   ;;  %s10027_s13 = smul.u32 2654435769, %s10026_s12 }
  0x91   :  { %3299 = vmatpush1.bf16.msra.mxu1 %v11676_v36  ;;  %3136 = vmatprep.subr.bf16.mxu0 %v11677_v37  ;;  %v11766_v36 = vld [vmem:[#allocation7 + $0x73c] ss:$40 sps:$4 sm:$0xff]   ;;  %v11761_v37 = vld [vmem:[#allocation7 + $0x730] ss:$40 sps:$4 sm:$0xff]  }
  0x92   :  { %3300 = vmatprep.subr.bf16.mxu1 %v11679_v38  ;;  %v11764_v38 = vld [vmem:[#allocation7 + $0x738] ss:$40 sps:$4 sm:$0xff]  }
  0x94   :  { %3137 = vmatpush1.bf16.msra.mxu0 %v11681_v39  ;;  %v11769_v39 = vld [vmem:[#allocation7 + $0x784] ss:$40 sps:$4 sm:$0xff]  }
  0x95   :  { %3301 = vmatpush1.bf16.msra.mxu1 %v11682_v40  ;;  %3138 = vmatprep.subr.bf16.mxu0 %v11683_v41  ;;  %v11772_v40 = vld [vmem:[#allocation7 + $0x78c] ss:$40 sps:$4 sm:$0xff]   ;;  %v11767_v41 = vld [vmem:[#allocation7 + $0x780] ss:$40 sps:$4 sm:$0xff]  }
  0x96   :  { %3302 = vmatprep.subr.bf16.mxu1 %v11685_v42  ;;  %v11770_v42 = vld [vmem:[#allocation7 + $0x788] ss:$40 sps:$4 sm:$0xff]  }
  0x98   :  { %3139 = vmatpush1.bf16.msra.mxu0 %v11687_v43  ;;  %v11775_v43 = vld [vmem:[#allocation7 + $0x7d4] ss:$40 sps:$4 sm:$0xff]  }
  0x99   :  { %3303 = vmatpush1.bf16.msra.mxu1 %v11688_v44  ;;  %3140 = vmatprep.subr.bf16.mxu0 %v11689_v45  ;;  %v11778_v44 = vld [vmem:[#allocation7 + $0x7dc] ss:$40 sps:$4 sm:$0xff]   ;;  %v11773_v45 = vld [vmem:[#allocation7 + $0x7d0] ss:$40 sps:$4 sm:$0xff]  }
  0x9a   :  { %3304 = vmatprep.subr.bf16.mxu1 %v11691_v46  ;;  %v11776_v46 = vld [vmem:[#allocation7 + $0x7d8] ss:$40 sps:$4 sm:$0xff]  }
  0x9c   :  { %3141 = vmatpush1.bf16.msra.mxu0 %v11693_v48  ;;  %v11784_v48 = vld [vmem:[#allocation7 + $0x82c] ss:$40 sps:$4 sm:$0xff]  }
  0x9d   :  { %3305 = vmatpush1.bf16.msra.mxu1 %v11694_v50  ;;  %3142 = vmatprep.subr.bf16.mxu0 %v11695_v51  ;;  %v11779_v50 = vld [vmem:[#allocation7 + $0x820] ss:$40 sps:$4 sm:$0xff]  }
  0x9e   :  { %3306 = vmatprep.subr.bf16.mxu1 %v11697_v52  ;;  %v11782_v51 = vld [vmem:[#allocation7 + $0x828] ss:$40 sps:$4 sm:$0xff]   ;;  %v11787_v52 = vld [vmem:[#allocation7 + $0x874] ss:$40 sps:$4 sm:$0xff]  }
  0xa0   :  { %3143 = vmatpush1.bf16.msra.mxu0 %v11699_v53  ;;  %v11790_v53 = vld [vmem:[#allocation7 + $0x87c] ss:$40 sps:$4 sm:$0xff]  }
  0xa1   :  { %3307 = vmatpush1.bf16.msra.mxu1 %v11700_v54  ;;  %3144 = vmatprep.subr.bf16.mxu0 %v11701_v55  ;;  %v11785_v54 = vld [vmem:[#allocation7 + $0x870] ss:$40 sps:$4 sm:$0xff]  }
  0xa2   :  { %3308 = vmatprep.subr.bf16.mxu1 %v11703_v56  ;;  %v11788_v55 = vld [vmem:[#allocation7 + $0x878] ss:$40 sps:$4 sm:$0xff]   ;;  %v11793_v56 = vld [vmem:[#allocation7 + $0x8c4] ss:$40 sps:$4 sm:$0xff]  }
  0xa4   :  { %3145 = vmatpush1.bf16.msra.mxu0 %v11705_v57  ;;  %v11796_v57 = vld [vmem:[#allocation7 + $0x8cc] ss:$40 sps:$4 sm:$0xff]  }
  0xa5   :  { %3309 = vmatpush1.bf16.msra.mxu1 %v11706_v58  ;;  %3146 = vmatprep.subr.bf16.mxu0 %v11707_v59  ;;  %v11791_v58 = vld [vmem:[#allocation7 + $0x8c0] ss:$40 sps:$4 sm:$0xff]  }
  0xa6   :  { %3310 = vmatprep.subr.bf16.mxu1 %v11709_v60  ;;  %v11794_v59 = vld [vmem:[#allocation7 + $0x8c8] ss:$40 sps:$4 sm:$0xff]   ;;  %v11799_v60 = vld [vmem:[#allocation7 + $0x914] ss:$40 sps:$4 sm:$0xff]  }
  0xa8   :  { %3147 = vmatpush1.bf16.msra.mxu0 %v11711_v61  ;;  %v11802_v61 = vld [vmem:[#allocation7 + $0x91c] ss:$40 sps:$4 sm:$0xff]  }
  0xa9   :  { %3311 = vmatpush1.bf16.msra.mxu1 %v11712_v62  ;;  %3148 = vmatprep.subr.bf16.mxu0 %v11713_v63  ;;  %v11797_v62 = vld [vmem:[#allocation7 + $0x910] ss:$40 sps:$4 sm:$0xff]  }
  0xaa   :  { %3312 = vmatprep.subr.bf16.mxu1 %v11715_v0  ;;  %v11800_v63 = vld [vmem:[#allocation7 + $0x918] ss:$40 sps:$4 sm:$0xff]   ;;  %v11805_v0 = vld [vmem:[#allocation7 + $0x964] ss:$40 sps:$4 sm:$0xff]  }
  0xac   :  { %3149 = vmatpush1.bf16.msra.mxu0 %v11717_v1  ;;  %v11808_v1 = vld [vmem:[#allocation7 + $0x96c] ss:$40 sps:$4 sm:$0xff]  }
  0xad   :  { %3313 = vmatpush1.bf16.msra.mxu1 %v11718_v2  ;;  %3159 = vmatprep.subr.bf16.mxu0 %v11721_v4  ;;  %v11803_v2 = vld [vmem:[#allocation7 + $0x960] ss:$40 sps:$4 sm:$0xff]   ;;  %v11811_v4 = vld [vmem:[#allocation7 + $0x9b4] ss:$40 sps:$4 sm:$0xff]  }
  0xae   :  { %3323 = vmatprep.subr.bf16.mxu1 %v11724_v5  ;;  %v11814_v5 = vld [vmem:[#allocation7 + $0x9bc] ss:$40 sps:$4 sm:$0xff]  }
  0xaf   :  { %3151 = vmatmul.mubr.bf16.vlgmr.msra.gmra.mrb[0].mxu0 %v13799_v6 }
  0xb0   :  { %3315 = vmatmul.mubr.bf16.vlgmr.msra.gmra.mrb[0].mxu1 %v13799_v6  ;;  %3160 = vmatpush1.bf16.msra.mxu0 %v11719_v7  ;;  %v11809_v7 = vld [vmem:[#allocation7 + $0x9b0] ss:$40 sps:$4 sm:$0xff]  }
  0xb1   :  { %3324 = vmatpush1.bf16.msra.mxu1 %v11722_v8  ;;  %3161 = vmatprep.subr.bf16.mxu0 %v11727_v9  ;;  %v11812_v8 = vld [vmem:[#allocation7 + $0x9b8] ss:$40 sps:$4 sm:$0xff]   ;;  %v11817_v9 = vld [vmem:[#allocation7 + $0xa04] ss:$40 sps:$4 sm:$0xff]  }
  0xb2   :  { %3325 = vmatprep.subr.bf16.mxu1 %v11730_v10  ;;  %3191 = vmatprep.mubr.bf16.mxu0 %v13803_v33  ;;  %v108_v10 = vld [vmem:[#allocation5 + $0x10] sm:$0xff] }
  0xb3   :  { %3355 = vmatprep.mubr.bf16.mxu1 %v13803_v33 }
  0xb4   :  { %3162 = vmatpush1.bf16.msra.mxu0 %v11725_v11  ;;  %v11820_v11 = vld [vmem:[#allocation7 + $0xa0c] ss:$40 sps:$4 sm:$0xff]  }
  0xb5   :  { %3326 = vmatpush1.bf16.msra.mxu1 %v11728_v12  ;;  %3163 = vmatprep.subr.bf16.mxu0 %v11733_v13  ;;  %v11815_v12 = vld [vmem:[#allocation7 + $0xa00] ss:$40 sps:$4 sm:$0xff]   ;;  %v13807_v13 = vpack.c.bf16 %v108_v10, %v108_v10 }
  0xb6   :  { %3327 = vmatprep.subr.bf16.mxu1 %v11736_v14  ;;  %v11818_v14 = vld [vmem:[#allocation7 + $0xa08] ss:$40 sps:$4 sm:$0xff]  }
  0xb7   :  { %v11899_v10 = vld [vmem:[#allocation7 + $0xe60] ss:$40 sps:$4 sm:$0xff]  }
  0xb8   :  { %3164 = vmatpush1.bf16.msra.mxu0 %v11731_v15  ;;  %v11823_v15 = vld [vmem:[#allocation7 + $0xa54] ss:$40 sps:$4 sm:$0xff]  }
  0xb9   :  { %3328 = vmatpush1.bf16.msra.mxu1 %v11734_v16  ;;  %3165 = vmatprep.subr.bf16.mxu0 %v11739_v17  ;;  %v11826_v16 = vld [vmem:[#allocation7 + $0xa5c] ss:$40 sps:$4 sm:$0xff]   ;;  %v111_v17 = vld [vmem:[#allocation5 + $0x28] sm:$0xff] }
  0xba   :  { %3329 = vmatprep.subr.bf16.mxu1 %v11742_v18  ;;  %v13809_v18 = vpack.c.bf16 %v111_v17, %v111_v17  ;;  %v110_v17 = vld [vmem:[#allocation5 + $0x20] sm:$0xff] }
  0xbc   :  { %3166 = vmatpush1.bf16.msra.mxu0 %v11737_v19  ;;  %v11821_v19 = vld [vmem:[#allocation7 + $0xa50] ss:$40 sps:$4 sm:$0xff]  }
  0xbd   :  { %3330 = vmatpush1.bf16.msra.mxu1 %v11740_v20  ;;  %3167 = vmatprep.subr.bf16.mxu0 %v11745_v21  ;;  %v11824_v20 = vld [vmem:[#allocation7 + $0xa58] ss:$40 sps:$4 sm:$0xff]   ;;  %v11829_v21 = vld [vmem:[#allocation7 + $0xaa4] ss:$40 sps:$4 sm:$0xff]  }
  0xbe   :  { %3331 = vmatprep.subr.bf16.mxu1 %v11748_v22  ;;  %v11832_v22 = vld [vmem:[#allocation7 + $0xaac] ss:$40 sps:$4 sm:$0xff]  }
  0xc0   :  { %3168 = vmatpush1.bf16.msra.mxu0 %v11743_v23  ;;  %v11827_v23 = vld [vmem:[#allocation7 + $0xaa0] ss:$40 sps:$4 sm:$0xff]  }
  0xc1   :  { %3332 = vmatpush1.bf16.msra.mxu1 %v11746_v24  ;;  %3169 = vmatprep.subr.bf16.mxu0 %v11751_v25  ;;  %v11830_v24 = vld [vmem:[#allocation7 + $0xaa8] ss:$40 sps:$4 sm:$0xff]   ;;  %v11835_v25 = vld [vmem:[#allocation7 + $0xaf4] ss:$40 sps:$4 sm:$0xff]  }
  0xc2   :  { %3333 = vmatprep.subr.bf16.mxu1 %v11754_v26  ;;  %v11838_v26 = vld [vmem:[#allocation7 + $0xafc] ss:$40 sps:$4 sm:$0xff]  }
  0xc4   :  { %3170 = vmatpush1.bf16.msra.mxu0 %v11749_v27  ;;  %v11833_v27 = vld [vmem:[#allocation7 + $0xaf0] ss:$40 sps:$4 sm:$0xff]  }
  0xc5   :  { %3334 = vmatpush1.bf16.msra.mxu1 %v11752_v28  ;;  %3171 = vmatprep.subr.bf16.mxu0 %v11757_v29  ;;  %v11836_v28 = vld [vmem:[#allocation7 + $0xaf8] ss:$40 sps:$4 sm:$0xff]   ;;  %v11841_v29 = vld [vmem:[#allocation7 + $0xb44] ss:$40 sps:$4 sm:$0xff]  }
  0xc6   :  { %3335 = vmatprep.subr.bf16.mxu1 %v11760_v30  ;;  %v11844_v30 = vld [vmem:[#allocation7 + $0xb4c] ss:$40 sps:$4 sm:$0xff]  }
  0xc8   :  { %3172 = vmatpush1.bf16.msra.mxu0 %v11755_v32  ;;  %v11842_v32 = vld [vmem:[#allocation7 + $0xb48] ss:$40 sps:$4 sm:$0xff]  }
  0xc9   :  { %3336 = vmatpush1.bf16.msra.mxu1 %v11758_v34  ;;  %3173 = vmatprep.subr.bf16.mxu0 %v11763_v35  ;;  %v11847_v34 = vld [vmem:[#allocation7 + $0xb94] ss:$40 sps:$4 sm:$0xff]  }
  0xca   :  { %3337 = vmatprep.subr.bf16.mxu1 %v11766_v36  ;;  %v11850_v35 = vld [vmem:[#allocation7 + $0xb9c] ss:$40 sps:$4 sm:$0xff]   ;;  %v11845_v36 = vld [vmem:[#allocation7 + $0xb90] ss:$40 sps:$4 sm:$0xff]  }
  0xcc   :  { %3174 = vmatpush1.bf16.msra.mxu0 %v11761_v37  ;;  %v11848_v37 = vld [vmem:[#allocation7 + $0xb98] ss:$40 sps:$4 sm:$0xff]  }
  0xcd   :  { %3338 = vmatpush1.bf16.msra.mxu1 %v11764_v38  ;;  %3175 = vmatprep.subr.bf16.mxu0 %v11769_v39  ;;  %v11853_v38 = vld [vmem:[#allocation7 + $0xbe4] ss:$40 sps:$4 sm:$0xff]  }
  0xce   :  { %3339 = vmatprep.subr.bf16.mxu1 %v11772_v40  ;;  %v11856_v39 = vld [vmem:[#allocation7 + $0xbec] ss:$40 sps:$4 sm:$0xff]   ;;  %v11851_v40 = vld [vmem:[#allocation7 + $0xbe0] ss:$40 sps:$4 sm:$0xff]  }
  0xd0   :  { %3176 = vmatpush1.bf16.msra.mxu0 %v11767_v41  ;;  %v11854_v41 = vld [vmem:[#allocation7 + $0xbe8] ss:$40 sps:$4 sm:$0xff]  }
  0xd1   :  { %3340 = vmatpush1.bf16.msra.mxu1 %v11770_v42  ;;  %3177 = vmatprep.subr.bf16.mxu0 %v11775_v43  ;;  %v11859_v42 = vld [vmem:[#allocation7 + $0xc34] ss:$40 sps:$4 sm:$0xff]  }
  0xd2   :  { %3341 = vmatprep.subr.bf16.mxu1 %v11778_v44  ;;  %v11862_v43 = vld [vmem:[#allocation7 + $0xc3c] ss:$40 sps:$4 sm:$0xff]   ;;  %v11857_v44 = vld [vmem:[#allocation7 + $0xc30] ss:$40 sps:$4 sm:$0xff]  }
  0xd4   :  { %3178 = vmatpush1.bf16.msra.mxu0 %v11773_v45  ;;  %v11860_v45 = vld [vmem:[#allocation7 + $0xc38] ss:$40 sps:$4 sm:$0xff]  }
  0xd5   :  { %3342 = vmatpush1.bf16.msra.mxu1 %v11776_v46  ;;  %3179 = vmatprep.subr.bf16.mxu0 %v11781_v47  ;;  %v11865_v46 = vld [vmem:[#allocation7 + $0xc84] ss:$40 sps:$4 sm:$0xff]  }
  0xd6   :  { %3343 = vmatprep.subr.bf16.mxu1 %v11784_v48  ;;  %v11868_v47 = vld [vmem:[#allocation7 + $0xc8c] ss:$40 sps:$4 sm:$0xff]   ;;  %v11863_v48 = vld [vmem:[#allocation7 + $0xc80] ss:$40 sps:$4 sm:$0xff]  }
  0xd8   :  { %3180 = vmatpush1.bf16.msra.mxu0 %v11779_v50  ;;  %v11866_v50 = vld [vmem:[#allocation7 + $0xc88] ss:$40 sps:$4 sm:$0xff]  }
  0xd9   :  { %3344 = vmatpush1.bf16.msra.mxu1 %v11782_v51  ;;  %3181 = vmatprep.subr.bf16.mxu0 %v11787_v52  ;;  %v11871_v51 = vld [vmem:[#allocation7 + $0xcd4] ss:$40 sps:$4 sm:$0xff]  }
  0xda   :  { %3345 = vmatprep.subr.bf16.mxu1 %v11790_v53  ;;  %v11874_v52 = vld [vmem:[#allocation7 + $0xcdc] ss:$40 sps:$4 sm:$0xff]   ;;  %v11869_v53 = vld [vmem:[#allocation7 + $0xcd0] ss:$40 sps:$4 sm:$0xff]  }
  0xdc   :  { %3182 = vmatpush1.bf16.msra.mxu0 %v11785_v54  ;;  %v11872_v54 = vld [vmem:[#allocation7 + $0xcd8] ss:$40 sps:$4 sm:$0xff]  }
  0xdd   :  { %3346 = vmatpush1.bf16.msra.mxu1 %v11788_v55  ;;  %3183 = vmatprep.subr.bf16.mxu0 %v11793_v56  ;;  %v11877_v55 = vld [vmem:[#allocation7 + $0xd24] ss:$40 sps:$4 sm:$0xff]  }
  0xde   :  { %3347 = vmatprep.subr.bf16.mxu1 %v11796_v57  ;;  %v11880_v56 = vld [vmem:[#allocation7 + $0xd2c] ss:$40 sps:$4 sm:$0xff]   ;;  %v11875_v57 = vld [vmem:[#allocation7 + $0xd20] ss:$40 sps:$4 sm:$0xff]  }
  0xe0   :  { %3184 = vmatpush1.bf16.msra.mxu0 %v11791_v58  ;;  %v11878_v58 = vld [vmem:[#allocation7 + $0xd28] ss:$40 sps:$4 sm:$0xff]  }
  0xe1   :  { %3348 = vmatpush1.bf16.msra.mxu1 %v11794_v59  ;;  %3185 = vmatprep.subr.bf16.mxu0 %v11799_v60  ;;  %v11883_v59 = vld [vmem:[#allocation7 + $0xd74] ss:$40 sps:$4 sm:$0xff]  }
  0xe2   :  { %3349 = vmatprep.subr.bf16.mxu1 %v11802_v61  ;;  %v11886_v60 = vld [vmem:[#allocation7 + $0xd7c] ss:$40 sps:$4 sm:$0xff]   ;;  %v11881_v61 = vld [vmem:[#allocation7 + $0xd70] ss:$40 sps:$4 sm:$0xff]  }
  0xe4   :  { %3186 = vmatpush1.bf16.msra.mxu0 %v11797_v62  ;;  %v11884_v62 = vld [vmem:[#allocation7 + $0xd78] ss:$40 sps:$4 sm:$0xff]  }
  0xe5   :  { %3350 = vmatpush1.bf16.msra.mxu1 %v11800_v63  ;;  %3187 = vmatprep.subr.bf16.mxu0 %v11805_v0  ;;  %v11889_v63 = vld [vmem:[#allocation7 + $0xdc4] ss:$40 sps:$4 sm:$0xff]  }
  0xe6   :  { %3351 = vmatprep.subr.bf16.mxu1 %v11808_v1  ;;  %v11892_v0 = vld [vmem:[#allocation7 + $0xdcc] ss:$40 sps:$4 sm:$0xff]   ;;  %v11887_v1 = vld [vmem:[#allocation7 + $0xdc0] ss:$40 sps:$4 sm:$0xff]  }
  0xe8   :  { %3188 = vmatpush1.bf16.msra.mxu0 %v11803_v2  ;;  %v11890_v2 = vld [vmem:[#allocation7 + $0xdc8] ss:$40 sps:$4 sm:$0xff]  }
  0xe9   :  { %3352 = vmatpush1.bf16.msra.mxu1 %v11806_v3  ;;  %3189 = vmatprep.subr.bf16.mxu0 %v11811_v4  ;;  %v11895_v3 = vld [vmem:[#allocation7 + $0xe14] ss:$40 sps:$4 sm:$0xff]  }
  0xea   :  { %3353 = vmatprep.subr.bf16.mxu1 %v11814_v5  ;;  %v11898_v4 = vld [vmem:[#allocation7 + $0xe1c] ss:$40 sps:$4 sm:$0xff]   ;;  %v11893_v5 = vld [vmem:[#allocation7 + $0xe10] ss:$40 sps:$4 sm:$0xff]  }
  0xec   :  { %3190 = vmatpush1.bf16.msra.mxu0 %v11809_v7  ;;  %v11896_v7 = vld [vmem:[#allocation7 + $0xe18] ss:$40 sps:$4 sm:$0xff]  }
  0xed   :  { %3354 = vmatpush1.bf16.msra.mxu1 %v11812_v8  ;;  %3200 = vmatprep.subr.bf16.mxu0 %v11817_v9  ;;  %v11901_v8 = vld [vmem:[#allocation7 + $0xe64] ss:$40 sps:$4 sm:$0xff]  }
  0xee   :  { %3364 = vmatprep.subr.bf16.mxu1 %v11820_v11  ;;  %v11904_v9 = vld [vmem:[#allocation7 + $0xe6c] ss:$40 sps:$4 sm:$0xff]   ;;  %v11902_v11 = vld [vmem:[#allocation7 + $0xe68] ss:$40 sps:$4 sm:$0xff]  }
  0xef   :  { %3192 = vmatmul.mubr.bf16.vlgmr.msra.gmra.mrb[0].mxu0 %v13807_v13 }
  0xf0   :  { %3356 = vmatmul.mubr.bf16.vlgmr.msra.gmra.mrb[0].mxu1 %v13807_v13  ;;  %3201 = vmatpush1.bf16.msra.mxu0 %v11815_v12  ;;  %v11907_v12 = vld [vmem:[#allocation7 + $0xeb4] ss:$40 sps:$4 sm:$0xff]  }
  0xf1   :  { %3365 = vmatpush1.bf16.msra.mxu1 %v11818_v14  ;;  %3202 = vmatprep.subr.bf16.mxu0 %v11823_v15  ;;  %v11910_v14 = vld [vmem:[#allocation7 + $0xebc] ss:$40 sps:$4 sm:$0xff]   ;;  %v11905_v15 = vld [vmem:[#allocation7 + $0xeb0] ss:$40 sps:$4 sm:$0xff]  }
  0xf2   :  { %3366 = vmatprep.subr.bf16.mxu1 %v11826_v16  ;;  %3232 = vmatprep.mubr.bf16.mxu0 %v13809_v18  ;;  %v11908_v16 = vld [vmem:[#allocation7 + $0xeb8] ss:$40 sps:$4 sm:$0xff]  }
  0xf3   :  { %3396 = vmatprep.mubr.bf16.mxu1 %v13809_v18 }
  0xf4   :  { %3203 = vmatpush1.bf16.msra.mxu0 %v11821_v19  ;;  %v11913_v19 = vld [vmem:[#allocation7 + $0xf04] ss:$40 sps:$4 sm:$0xff]  }
  0xf5   :  { %3367 = vmatpush1.bf16.msra.mxu1 %v11824_v20  ;;  %3204 = vmatprep.subr.bf16.mxu0 %v11829_v21  ;;  %v11916_v20 = vld [vmem:[#allocation7 + $0x1c] ss:$40 sps:$4 sm:$0xff]   ;;  %v13815_v21 = vpack.c.bf16 %v110_v17, %v110_v17 }
  0xf6   :  { %3368 = vmatprep.subr.bf16.mxu1 %v11832_v22  ;;  %v11911_v22 = vld [vmem:[#allocation7 + $0xf00] ss:$40 sps:$4 sm:$0xff]   ;;  %v11994_v17 = vld [vmem:[#allocation7 + $0x334] ss:$40 sps:$4 sm:$0xff]  }
  0xf8   :  { %3205 = vmatpush1.bf16.msra.mxu0 %v11827_v23  ;;  %v11914_v23 = vld [vmem:[#allocation7 + $0x18] ss:$40 sps:$4 sm:$0xff]  }
  0xf9   :  { %3369 = vmatpush1.bf16.msra.mxu1 %v11830_v24  ;;  %3206 = vmatprep.subr.bf16.mxu0 %v11835_v25  ;;  %v11919_v24 = vld [vmem:[#allocation7 + $0x6c] ss:$40 sps:$4 sm:$0xff]  }
  0xfa   :  { %3370 = vmatprep.subr.bf16.mxu1 %v11838_v26  ;;  %v11925_v25 = vld [vmem:[#allocation7 + $0xf0c] ss:$40 sps:$4 sm:$0xff]   ;;  %v11917_v26 = vld [vmem:[#allocation7 + $0x68] ss:$40 sps:$4 sm:$0xff]  }
  0xfc   :  { %3207 = vmatpush1.bf16.msra.mxu0 %v11833_v27  ;;  %v11922_v27 = vld [vmem:[#allocation7 + $0xbc] ss:$40 sps:$4 sm:$0xff]  }
  0xfd   :  { %3371 = vmatpush1.bf16.msra.mxu1 %v11836_v28  ;;  %3208 = vmatprep.subr.bf16.mxu0 %v11841_v29  ;;  %v13674_v28 = vmov 0   ;;  %v11920_v29 = vld [vmem:[#allocation7 + $0xb8] ss:$40 sps:$4 sm:$0xff]  }
  0xfe   :  { %3372 = vmatprep.subr.bf16.mxu1 %v11844_v30  ;;  %v112_v30 = vld [vmem:[#allocation5 + $0x30] sm:$0xff] }
 0x100   :  { %3209 = vmatpush1.bf16.msra.mxu0 %v11839_v31  ;;  %v11928_v31 = vld [vmem:[#allocation7 + $0x10c] ss:$40 sps:$4 sm:$0xff]  }
 0x101   :  { %3373 = vmatpush1.bf16.msra.mxu1 %v11842_v32  ;;  %3210 = vmatprep.subr.bf16.mxu0 %v11847_v34  ;;  %v13821_v32 = vpack.c.bf16 %v112_v30, %v112_v30  ;;  %v11923_v34 = vld [vmem:[#allocation7 + $0xf08] ss:$40 sps:$4 sm:$0xff]  }
 0x102   :  { %3374 = vmatprep.subr.bf16.mxu1 %v11850_v35  ;;  %v11926_v35 = vld [vmem:[#allocation7 + $0x108] ss:$40 sps:$4 sm:$0xff]  }
 0x103   :  { %v12004_v30 = vld [vmem:[#allocation7 + $0x3d0] ss:$40 sps:$4 sm:$0xff]  }
 0x104   :  { %3211 = vmatpush1.bf16.msra.mxu0 %v11845_v36  ;;  %v11931_v36 = vld [vmem:[#allocation7 + $0x15c] ss:$40 sps:$4 sm:$0xff]  }
 0x105   :  { %3375 = vmatpush1.bf16.msra.mxu1 %v11848_v37  ;;  %3212 = vmatprep.subr.bf16.mxu0 %v11853_v38  ;;  %v11934_v37 = vld [vmem:[#allocation7 + $0x14] ss:$40 sps:$4 sm:$0xff]   ;;  %v11929_v38 = vld [vmem:[#allocation7 + $0x158] ss:$40 sps:$4 sm:$0xff]  }
 0x106   :  { %3376 = vmatprep.subr.bf16.mxu1 %v11856_v39  ;;  %v11937_v39 = vld [vmem:[#allocation7 + $0x1ac] ss:$40 sps:$4 sm:$0xff]  }
 0x108   :  { %3213 = vmatpush1.bf16.msra.mxu0 %v11851_v40  ;;  %v11932_v40 = vld [vmem:[#allocation7 + $0x10] ss:$40 sps:$4 sm:$0xff]  }
 0x109   :  { %3377 = vmatpush1.bf16.msra.mxu1 %v11854_v41  ;;  %3214 = vmatprep.subr.bf16.mxu0 %v11859_v42  ;;  %v11935_v41 = vld [vmem:[#allocation7 + $0x1a8] ss:$40 sps:$4 sm:$0xff]   ;;  %v11940_v42 = vld [vmem:[#allocation7 + $0x64] ss:$40 sps:$4 sm:$0xff]  }
 0x10a   :  { %3378 = vmatprep.subr.bf16.mxu1 %v11862_v43  ;;  %v11943_v43 = vld [vmem:[#allocation7 + $0x1fc] ss:$40 sps:$4 sm:$0xff]  }
 0x10c   :  { %3215 = vmatpush1.bf16.msra.mxu0 %v11857_v44  ;;  %v11938_v44 = vld [vmem:[#allocation7 + $0x60] ss:$40 sps:$4 sm:$0xff]  }
 0x10d   :  { %3379 = vmatpush1.bf16.msra.mxu1 %v11860_v45  ;;  %3216 = vmatprep.subr.bf16.mxu0 %v11865_v46  ;;  %v11941_v45 = vld [vmem:[#allocation7 + $0x1f8] ss:$40 sps:$4 sm:$0xff]   ;;  %v11946_v46 = vld [vmem:[#allocation7 + $0xb4] ss:$40 sps:$4 sm:$0xff]  }
 0x10e   :  { %3380 = vmatprep.subr.bf16.mxu1 %v11868_v47  ;;  %v11949_v47 = vld [vmem:[#allocation7 + $0x24c] ss:$40 sps:$4 sm:$0xff]  }
 0x110   :  { %3217 = vmatpush1.bf16.msra.mxu0 %v11863_v48  ;;  %v11944_v48 = vld [vmem:[#allocation7 + $0xb0] ss:$40 sps:$4 sm:$0xff]  }
 0x111   :  { %3381 = vmatpush1.bf16.msra.mxu1 %v11866_v50  ;;  %3218 = vmatprep.subr.bf16.mxu0 %v11871_v51  ;;  %v11947_v50 = vld [vmem:[#allocation7 + $0x248] ss:$40 sps:$4 sm:$0xff]   ;;  %v11952_v51 = vld [vmem:[#allocation7 + $0x104] ss:$40 sps:$4 sm:$0xff]  }
 0x112   :  { %3382 = vmatprep.subr.bf16.mxu1 %v11874_v52  ;;  %v11955_v52 = vld [vmem:[#allocation7 + $0x29c] ss:$40 sps:$4 sm:$0xff]  }
 0x114   :  { %3219 = vmatpush1.bf16.msra.mxu0 %v11869_v53  ;;  %v11950_v53 = vld [vmem:[#allocation7 + $0x100] ss:$40 sps:$4 sm:$0xff]  }
 0x115   :  { %3383 = vmatpush1.bf16.msra.mxu1 %v11872_v54  ;;  %3220 = vmatprep.subr.bf16.mxu0 %v11877_v55  ;;  %v11953_v54 = vld [vmem:[#allocation7 + $0x298] ss:$40 sps:$4 sm:$0xff]   ;;  %v11958_v55 = vld [vmem:[#allocation7 + $0x154] ss:$40 sps:$4 sm:$0xff]  }
 0x116   :  { %3384 = vmatprep.subr.bf16.mxu1 %v11880_v56  ;;  %v11961_v56 = vld [vmem:[#allocation7 + $0x2ec] ss:$40 sps:$4 sm:$0xff]  }
 0x118   :  { %3221 = vmatpush1.bf16.msra.mxu0 %v11875_v57  ;;  %v11956_v57 = vld [vmem:[#allocation7 + $0x150] ss:$40 sps:$4 sm:$0xff]  }
 0x119   :  { %3385 = vmatpush1.bf16.msra.mxu1 %v11878_v58  ;;  %3222 = vmatprep.subr.bf16.mxu0 %v11883_v59  ;;  %v11959_v58 = vld [vmem:[#allocation7 + $0x2e8] ss:$40 sps:$4 sm:$0xff]   ;;  %v11964_v59 = vld [vmem:[#allocation7 + $0x1a4] ss:$40 sps:$4 sm:$0xff]  }
 0x11a   :  { %3386 = vmatprep.subr.bf16.mxu1 %v11886_v60  ;;  %v11967_v60 = vld [vmem:[#allocation7 + $0x33c] ss:$40 sps:$4 sm:$0xff]  }
 0x11c   :  { %3223 = vmatpush1.bf16.msra.mxu0 %v11881_v61  ;;  %v11962_v61 = vld [vmem:[#allocation7 + $0x1a0] ss:$40 sps:$4 sm:$0xff]  }
 0x11d   :  { %3387 = vmatpush1.bf16.msra.mxu1 %v11884_v62  ;;  %3224 = vmatprep.subr.bf16.mxu0 %v11889_v63  ;;  %v11965_v62 = vld [vmem:[#allocation7 + $0x338] ss:$40 sps:$4 sm:$0xff]   ;;  %v11970_v63 = vld [vmem:[#allocation7 + $0x1f4] ss:$40 sps:$4 sm:$0xff]  }
 0x11e   :  { %3388 = vmatprep.subr.bf16.mxu1 %v11892_v0  ;;  %v11973_v0 = vld [vmem:[#allocation7 + $0x38c] ss:$40 sps:$4 sm:$0xff]  }
 0x120   :  { %3225 = vmatpush1.bf16.msra.mxu0 %v11887_v1  ;;  %v11968_v1 = vld [vmem:[#allocation7 + $0x1f0] ss:$40 sps:$4 sm:$0xff]  }
 0x121   :  { %3389 = vmatpush1.bf16.msra.mxu1 %v11890_v2  ;;  %3226 = vmatprep.subr.bf16.mxu0 %v11895_v3  ;;  %v11971_v2 = vld [vmem:[#allocation7 + $0x388] ss:$40 sps:$4 sm:$0xff]   ;;  %v11976_v3 = vld [vmem:[#allocation7 + $0x244] ss:$40 sps:$4 sm:$0xff]  }
 0x122   :  { %3390 = vmatprep.subr.bf16.mxu1 %v11898_v4  ;;  %v11979_v4 = vld [vmem:[#allocation7 + $0x3dc] ss:$40 sps:$4 sm:$0xff]  }
 0x124   :  { %3227 = vmatpush1.bf16.msra.mxu0 %v11893_v5  ;;  %v11974_v5 = vld [vmem:[#allocation7 + $0x240] ss:$40 sps:$4 sm:$0xff]  }
 0x125   :  { %3391 = vmatpush1.bf16.msra.mxu1 %v11896_v7  ;;  %3228 = vmatprep.subr.bf16.mxu0 %v11901_v8  ;;  %v11977_v7 = vld [vmem:[#allocation7 + $0x3d8] ss:$40 sps:$4 sm:$0xff]   ;;  %v11982_v8 = vld [vmem:[#allocation7 + $0x294] ss:$40 sps:$4 sm:$0xff]  }
 0x126   :  { %3392 = vmatprep.subr.bf16.mxu1 %v11904_v9  ;;  %v11985_v9 = vld [vmem:[#allocation7 + $0x42c] ss:$40 sps:$4 sm:$0xff]  }
 0x128   :  { %3229 = vmatpush1.bf16.msra.mxu0 %v11899_v10  ;;  %v11980_v10 = vld [vmem:[#allocation7 + $0x290] ss:$40 sps:$4 sm:$0xff]  }
 0x129   :  { %3393 = vmatpush1.bf16.msra.mxu1 %v11902_v11  ;;  %3230 = vmatprep.subr.bf16.mxu0 %v11907_v12  ;;  %v11983_v11 = vld [vmem:[#allocation7 + $0x428] ss:$40 sps:$4 sm:$0xff]   ;;  %v11988_v12 = vld [vmem:[#allocation7 + $0x2e4] ss:$40 sps:$4 sm:$0xff]  }
 0x12a   :  { %3394 = vmatprep.subr.bf16.mxu1 %v11910_v14  ;;  %v11991_v14 = vld [vmem:[#allocation7 + $0x47c] ss:$40 sps:$4 sm:$0xff]  }
 0x12c   :  { %3231 = vmatpush1.bf16.msra.mxu0 %v11905_v15  ;;  %v11986_v15 = vld [vmem:[#allocation7 + $0x2e0] ss:$40 sps:$4 sm:$0xff]  }
 0x12d   :  { %3395 = vmatpush1.bf16.msra.mxu1 %v11908_v16  ;;  %3241 = vmatprep.subr.bf16.mxu0 %v11913_v19  ;;  %v11989_v16 = vld [vmem:[#allocation7 + $0x478] ss:$40 sps:$4 sm:$0xff]   ;;  %v11997_v19 = vld [vmem:[#allocation7 + $0x4cc] ss:$40 sps:$4 sm:$0xff]  }
 0x12e   :  { %3610 = vmatprep.subr.bf16.mxu1 %v11916_v20  ;;  %v11992_v20 = vld [vmem:[#allocation7 + $0x330] ss:$40 sps:$4 sm:$0xff]  }
 0x12f   :  { %3233 = vmatmul.mubr.bf16.vlgmr.msra.gmra.mrb[0].mxu0 %v13815_v21 }
 0x130   :  { %3397 = vmatmul.mubr.bf16.vlgmr.msra.gmra.mrb[0].mxu1 %v13815_v21  ;;  %3242 = vmatpush1.bf16.msra.mxu0 %v11911_v22  ;;  %v11995_v22 = vld [vmem:[#allocation7 + $0x4c8] ss:$40 sps:$4 sm:$0xff]  }
 0x131   :  { %3611 = vmatpush1.bf16.msra.mxu1 %v11914_v23  ;;  %3273 = vmatprep.mubr.bf16.mxu0 %v13674_v28  ;;  %v12000_v23 = vld [vmem:[#allocation7 + $0x384] ss:$40 sps:$4 sm:$0xff]  }
 0x132   :  { %3612 = vmatprep.subr.bf16.mxu1 %v11919_v24  ;;  %3405 = vmatprep.subr.bf16.mxu0 %v11925_v25  ;;  %v12003_v24 = vld [vmem:[#allocation7 + $0x51c] ss:$40 sps:$4 sm:$0xff]   ;;  %v11998_v25 = vld [vmem:[#allocation7 + $0x380] ss:$40 sps:$4 sm:$0xff]  }
 0x133   :  { %3642 = vmatprep.mubr.bf16.mxu1 %v13795_v49 }
 0x135   :  { %3613 = vmatpush1.bf16.msra.mxu1 %v11917_v26  ;;  %v12001_v26 = vld [vmem:[#allocation7 + $0x518] ss:$40 sps:$4 sm:$0xff]  }
 0x136   :  { %3614 = vmatprep.subr.bf16.mxu1 %v11922_v27  ;;  %v12006_v27 = vld [vmem:[#allocation7 + $0x3d4] ss:$40 sps:$4 sm:$0xff]  }
 0x139   :  { %3615 = vmatpush1.bf16.msra.mxu1 %v11920_v29  ;;  %v12009_v29 = vld [vmem:[#allocation7 + $0x56c] ss:$40 sps:$4 sm:$0xff]  }
 0x13a   :  { %3616 = vmatprep.subr.bf16.mxu1 %v11928_v31  ;;  %v12007_v31 = vld [vmem:[#allocation7 + $0x568] ss:$40 sps:$4 sm:$0xff]  }
 0x13b   :  { %10542 = vmatmul.mubr.msk.bf16.vlgmr.msra.gmra.mrb[0].mxu0 %vm3114_vm0, %v13821_v32 }
 0x13c   :  { %3406 = vmatpush1.bf16.msra.mxu0 %v11923_v34  ;;  %3437 = vmatprep.mubr.bf16.mxu0 %v13674_v28  ;;  %v12012_v34 = vld [vmem:[#allocation7 + $0x424] ss:$40 sps:$4 sm:$0xff]  }
 0x13d   :  { %3617 = vmatpush1.bf16.msra.mxu1 %v11926_v35  ;;  %3446 = vmatprep.subr.bf16.mxu0 %v11934_v37  ;;  %v12015_v35 = vld [vmem:[#allocation7 + $0x5bc] ss:$40 sps:$4 sm:$0xff]   ;;  %v12013_v37 = vld [vmem:[#allocation7 + $0x5b8] ss:$40 sps:$4 sm:$0xff]  }
 0x13e   :  { %3618 = vmatprep.subr.bf16.mxu1 %v11931_v36  ;;  %v12010_v36 = vld [vmem:[#allocation7 + $0x420] ss:$40 sps:$4 sm:$0xff]  }
 0x141   :  { %3619 = vmatpush1.bf16.msra.mxu1 %v11929_v38  ;;  %v12018_v38 = vld [vmem:[#allocation7 + $0x474] ss:$40 sps:$4 sm:$0xff]  }
 0x142   :  { %3620 = vmatprep.subr.bf16.mxu1 %v11937_v39  ;;  %v12021_v39 = vld [vmem:[#allocation7 + $0x60c] ss:$40 sps:$4 sm:$0xff]  }
 0x143   :  { %10543 = vmatmul.mubr.msk.bf16.vlgmr.msra.gmra.mrb[4].mxu0 %vm3114_vm0, %v13821_v32 }
 0x144   :  { %3447 = vmatpush1.bf16.msra.mxu0 %v11932_v40  ;;  %3478 = vmatprep.mubr.bf16.mxu0 %v13795_v49  ;;  %v12016_v40 = vld [vmem:[#allocation7 + $0x470] ss:$40 sps:$4 sm:$0xff]  }
 0x145   :  { %3621 = vmatpush1.bf16.msra.mxu1 %v11935_v41  ;;  %3448 = vmatprep.subr.bf16.mxu0 %v11940_v42  ;;  %v12019_v41 = vld [vmem:[#allocation7 + $0x608] ss:$40 sps:$4 sm:$0xff]   ;;  %v12024_v42 = vld [vmem:[#allocation7 + $0x4c4] ss:$40 sps:$4 sm:$0xff]  }
 0x146   :  { %3622 = vmatprep.subr.bf16.mxu1 %v11943_v43  ;;  %v12027_v43 = vld [vmem:[#allocation7 + $0x65c] ss:$40 sps:$4 sm:$0xff]  }
 0x148   :  { %3449 = vmatpush1.bf16.msra.mxu0 %v11938_v44  ;;  %v12022_v44 = vld [vmem:[#allocation7 + $0x4c0] ss:$40 sps:$4 sm:$0xff]  }
 0x149   :  { %3623 = vmatpush1.bf16.msra.mxu1 %v11941_v45  ;;  %3450 = vmatprep.subr.bf16.mxu0 %v11946_v46  ;;  %v12025_v45 = vld [vmem:[#allocation7 + $0x658] ss:$40 sps:$4 sm:$0xff]   ;;  %v12030_v46 = vld [vmem:[#allocation7 + $0x514] ss:$40 sps:$4 sm:$0xff]  }
 0x14a   :  { %3624 = vmatprep.subr.bf16.mxu1 %v11949_v47  ;;  %v12033_v47 = vld [vmem:[#allocation7 + $0x6ac] ss:$40 sps:$4 sm:$0xff]  }
 0x14c   :  { %3451 = vmatpush1.bf16.msra.mxu0 %v11944_v48  ;;  %v12028_v48 = vld [vmem:[#allocation7 + $0x510] ss:$40 sps:$4 sm:$0xff]  }
 0x14d   :  { %3625 = vmatpush1.bf16.msra.mxu1 %v11947_v50  ;;  %3452 = vmatprep.subr.bf16.mxu0 %v11952_v51  ;;  %v12031_v50 = vld [vmem:[#allocation7 + $0x6a8] ss:$40 sps:$4 sm:$0xff]   ;;  %v12036_v51 = vld [vmem:[#allocation7 + $0x564] ss:$40 sps:$4 sm:$0xff]  }
 0x14e   :  { %3626 = vmatprep.subr.bf16.mxu1 %v11955_v52  ;;  %v12039_v52 = vld [vmem:[#allocation7 + $0x6fc] ss:$40 sps:$4 sm:$0xff]  }
 0x150   :  { %3453 = vmatpush1.bf16.msra.mxu0 %v11950_v53  ;;  %v12034_v53 = vld [vmem:[#allocation7 + $0x560] ss:$40 sps:$4 sm:$0xff]  }
 0x151   :  { %3627 = vmatpush1.bf16.msra.mxu1 %v11953_v54  ;;  %3454 = vmatprep.subr.bf16.mxu0 %v11958_v55  ;;  %v12037_v54 = vld [vmem:[#allocation7 + $0x6f8] ss:$40 sps:$4 sm:$0xff]   ;;  %v12042_v55 = vld [vmem:[#allocation7 + $0x5b4] ss:$40 sps:$4 sm:$0xff]  }
 0x152   :  { %3628 = vmatprep.subr.bf16.mxu1 %v11961_v56  ;;  %v12045_v56 = vld [vmem:[#allocation7 + $0x74c] ss:$40 sps:$4 sm:$0xff]  }
 0x154   :  { %3455 = vmatpush1.bf16.msra.mxu0 %v11956_v57  ;;  %v12040_v57 = vld [vmem:[#allocation7 + $0x5b0] ss:$40 sps:$4 sm:$0xff]  }
 0x155   :  { %3629 = vmatpush1.bf16.msra.mxu1 %v11959_v58  ;;  %3456 = vmatprep.subr.bf16.mxu0 %v11964_v59  ;;  %v12043_v58 = vld [vmem:[#allocation7 + $0x748] ss:$40 sps:$4 sm:$0xff]   ;;  %v12048_v59 = vld [vmem:[#allocation7 + $0x604] ss:$40 sps:$4 sm:$0xff]  }
 0x156   :  { %3630 = vmatprep.subr.bf16.mxu1 %v11967_v60  ;;  %v12051_v60 = vld [vmem:[#allocation7 + $0x79c] ss:$40 sps:$4 sm:$0xff]  }
 0x158   :  { %3457 = vmatpush1.bf16.msra.mxu0 %v11962_v61  ;;  %v12046_v61 = vld [vmem:[#allocation7 + $0x600] ss:$40 sps:$4 sm:$0xff]  }
 0x159   :  { %3631 = vmatpush1.bf16.msra.mxu1 %v11965_v62  ;;  %3458 = vmatprep.subr.bf16.mxu0 %v11970_v63  ;;  %v12049_v62 = vld [vmem:[#allocation7 + $0x798] ss:$40 sps:$4 sm:$0xff]   ;;  %v12054_v63 = vld [vmem:[#allocation7 + $0x654] ss:$40 sps:$4 sm:$0xff]  }
 0x15a   :  { %3632 = vmatprep.subr.bf16.mxu1 %v11973_v0  ;;  %v12057_v0 = vld [vmem:[#allocation7 + $0x7ec] ss:$40 sps:$4 sm:$0xff]  }
 0x15c   :  { %3459 = vmatpush1.bf16.msra.mxu0 %v11968_v1  ;;  %v12052_v1 = vld [vmem:[#allocation7 + $0x650] ss:$40 sps:$4 sm:$0xff]  }
 0x15d   :  { %3633 = vmatpush1.bf16.msra.mxu1 %v11971_v2  ;;  %3460 = vmatprep.subr.bf16.mxu0 %v11976_v3  ;;  %v12055_v2 = vld [vmem:[#allocation7 + $0x7e8] ss:$40 sps:$4 sm:$0xff]   ;;  %v12060_v3 = vld [vmem:[#allocation7 + $0x6a4] ss:$40 sps:$4 sm:$0xff]  }
 0x15e   :  { %3634 = vmatprep.subr.bf16.mxu1 %v11979_v4  ;;  %v12063_v4 = vld [vmem:[#allocation7 + $0x83c] ss:$40 sps:$4 sm:$0xff]  }
 0x160   :  { %3461 = vmatpush1.bf16.msra.mxu0 %v11974_v5  ;;  %v12058_v5 = vld [vmem:[#allocation7 + $0x6a0] ss:$40 sps:$4 sm:$0xff]  }
 0x161   :  { %3635 = vmatpush1.bf16.msra.mxu1 %v11977_v7  ;;  %3462 = vmatprep.subr.bf16.mxu0 %v11982_v8  ;;  %v12061_v7 = vld [vmem:[#allocation7 + $0x838] ss:$40 sps:$4 sm:$0xff]   ;;  %v12066_v8 = vld [vmem:[#allocation7 + $0x6f4] ss:$40 sps:$4 sm:$0xff]  }
 0x162   :  { %3636 = vmatprep.subr.bf16.mxu1 %v11985_v9  ;;  %v12069_v9 = vld [vmem:[#allocation7 + $0x88c] ss:$40 sps:$4 sm:$0xff]  }
 0x164   :  { %3463 = vmatpush1.bf16.msra.mxu0 %v11980_v10  ;;  %v12064_v10 = vld [vmem:[#allocation7 + $0x6f0] ss:$40 sps:$4 sm:$0xff]  }
 0x165   :  { %3637 = vmatpush1.bf16.msra.mxu1 %v11983_v11  ;;  %3464 = vmatprep.subr.bf16.mxu0 %v11988_v12  ;;  %v12067_v11 = vld [vmem:[#allocation7 + $0x888] ss:$40 sps:$4 sm:$0xff]   ;;  %v12072_v12 = vld [vmem:[#allocation7 + $0x744] ss:$40 sps:$4 sm:$0xff]  }
 0x166   :  { %3638 = vmatprep.subr.bf16.mxu1 %v11991_v14  ;;  %v12075_v14 = vld [vmem:[#allocation7 + $0x8dc] ss:$40 sps:$4 sm:$0xff]  }
 0x168   :  { %3465 = vmatpush1.bf16.msra.mxu0 %v11986_v15  ;;  %v12070_v15 = vld [vmem:[#allocation7 + $0x740] ss:$40 sps:$4 sm:$0xff]  }
 0x169   :  { %3639 = vmatpush1.bf16.msra.mxu1 %v11989_v16  ;;  %3466 = vmatprep.subr.bf16.mxu0 %v11994_v17  ;;  %v12073_v16 = vld [vmem:[#allocation7 + $0x8d8] ss:$40 sps:$4 sm:$0xff]   ;;  %v12078_v17 = vld [vmem:[#allocation7 + $0x794] ss:$40 sps:$4 sm:$0xff]  }
 0x16a   :  { %3640 = vmatprep.subr.bf16.mxu1 %v11997_v19  ;;  %v12081_v19 = vld [vmem:[#allocation7 + $0x92c] ss:$40 sps:$4 sm:$0xff]  }
 0x16c   :  { %3467 = vmatpush1.bf16.msra.mxu0 %v11992_v20  ;;  %v12076_v20 = vld [vmem:[#allocation7 + $0x790] ss:$40 sps:$4 sm:$0xff]  }
 0x16d   :  { %3641 = vmatpush1.bf16.msra.mxu1 %v11995_v22  ;;  %3468 = vmatprep.subr.bf16.mxu0 %v12000_v23  ;;  %v12079_v22 = vld [vmem:[#allocation7 + $0x928] ss:$40 sps:$4 sm:$0xff]   ;;  %v12084_v23 = vld [vmem:[#allocation7 + $0x7e4] ss:$40 sps:$4 sm:$0xff]  }
 0x16e   :  { %3651 = vmatprep.subr.bf16.mxu1 %v12003_v24  ;;  %v12087_v24 = vld [vmem:[#allocation7 + $0x97c] ss:$40 sps:$4 sm:$0xff]  }
 0x170   :  { %3643 = vmatmul.mubr.bf16.vlgmr.msra.gmra.mrb[4].mxu1 %v13799_v6  ;;  %3469 = vmatpush1.bf16.msra.mxu0 %v11998_v25  ;;  %v12082_v25 = vld [vmem:[#allocation7 + $0x7e0] ss:$40 sps:$4 sm:$0xff]  }
 0x171   :  { %3652 = vmatpush1.bf16.msra.mxu1 %v12001_v26  ;;  %3470 = vmatprep.subr.bf16.mxu0 %v12006_v27  ;;  %v12085_v26 = vld [vmem:[#allocation7 + $0x978] ss:$40 sps:$4 sm:$0xff]   ;;  %v12090_v27 = vld [vmem:[#allocation7 + $0x834] ss:$40 sps:$4 sm:$0xff]  }
 0x172   :  { %3653 = vmatprep.subr.bf16.mxu1 %v12009_v29  ;;  %3683 = vmatprep.mubr.bf16.mxu1 %v13803_v33  ;;  %v12093_v29 = vld [vmem:[#allocation7 + $0x9cc] ss:$40 sps:$4 sm:$0xff]  }
 0x174   :  { %3471 = vmatpush1.bf16.msra.mxu0 %v12004_v30  ;;  %v12088_v30 = vld [vmem:[#allocation7 + $0x830] ss:$40 sps:$4 sm:$0xff]  }
 0x175   :  { %3654 = vmatpush1.bf16.msra.mxu1 %v12007_v31  ;;  %3472 = vmatprep.subr.bf16.mxu0 %v12012_v34  ;;  %v12091_v31 = vld [vmem:[#allocation7 + $0x9c8] ss:$40 sps:$4 sm:$0xff]   ;;  %v12096_v34 = vld [vmem:[#allocation7 + $0x884] ss:$40 sps:$4 sm:$0xff]  }
 0x176   :  { %3655 = vmatprep.subr.bf16.mxu1 %v12015_v35  ;;  %v12099_v35 = vld [vmem:[#allocation7 + $0xa1c] ss:$40 sps:$4 sm:$0xff]  }
 0x178   :  { %3473 = vmatpush1.bf16.msra.mxu0 %v12010_v36  ;;  %v12094_v36 = vld [vmem:[#allocation7 + $0x880] ss:$40 sps:$4 sm:$0xff]  }
 0x179   :  { %3656 = vmatpush1.bf16.msra.mxu1 %v12013_v37  ;;  %3474 = vmatprep.subr.bf16.mxu0 %v12018_v38  ;;  %v12097_v37 = vld [vmem:[#allocation7 + $0xa18] ss:$40 sps:$4 sm:$0xff]   ;;  %v12102_v38 = vld [vmem:[#allocation7 + $0x8d4] ss:$40 sps:$4 sm:$0xff]  }
 0x17a   :  { %3657 = vmatprep.subr.bf16.mxu1 %v12021_v39  ;;  %v12105_v39 = vld [vmem:[#allocation7 + $0xa6c] ss:$40 sps:$4 sm:$0xff]  }
 0x17c   :  { %3475 = vmatpush1.bf16.msra.mxu0 %v12016_v40  ;;  %v12100_v40 = vld [vmem:[#allocation7 + $0x8d0] ss:$40 sps:$4 sm:$0xff]  }
 0x17d   :  { %3658 = vmatpush1.bf16.msra.mxu1 %v12019_v41  ;;  %3476 = vmatprep.subr.bf16.mxu0 %v12024_v42  ;;  %v12103_v41 = vld [vmem:[#allocation7 + $0xa68] ss:$40 sps:$4 sm:$0xff]   ;;  %v12108_v42 = vld [vmem:[#allocation7 + $0x924] ss:$40 sps:$4 sm:$0xff]  }
 0x17e   :  { %3659 = vmatprep.subr.bf16.mxu1 %v12027_v43  ;;  %v12111_v43 = vld [vmem:[#allocation7 + $0xabc] ss:$40 sps:$4 sm:$0xff]  }
 0x180   :  { %3477 = vmatpush1.bf16.msra.mxu0 %v12022_v44  ;;  %v12106_v44 = vld [vmem:[#allocation7 + $0x920] ss:$40 sps:$4 sm:$0xff]  }
 0x181   :  { %3660 = vmatpush1.bf16.msra.mxu1 %v12025_v45  ;;  %3487 = vmatprep.subr.bf16.mxu0 %v12030_v46  ;;  %v12109_v45 = vld [vmem:[#allocation7 + $0xab8] ss:$40 sps:$4 sm:$0xff]   ;;  %v12114_v46 = vld [vmem:[#allocation7 + $0x974] ss:$40 sps:$4 sm:$0xff]  }
 0x182   :  { %3661 = vmatprep.subr.bf16.mxu1 %v12033_v47  ;;  %v12117_v47 = vld [vmem:[#allocation7 + $0xb0c] ss:$40 sps:$4 sm:$0xff]  }
 0x183   :  { %3479 = vmatmul.mubr.bf16.vlgmr.msra.gmra.mrb[8].mxu0 %v13799_v6 }
 0x184   :  { %3488 = vmatpush1.bf16.msra.mxu0 %v12028_v48  ;;  %3519 = vmatprep.mubr.bf16.mxu0 %v13803_v33  ;;  %v12112_v48 = vld [vmem:[#allocation7 + $0x970] ss:$40 sps:$4 sm:$0xff]  }
 0x185   :  { %3662 = vmatpush1.bf16.msra.mxu1 %v12031_v50  ;;  %3489 = vmatprep.subr.bf16.mxu0 %v12036_v51  ;;  %v12115_v50 = vld [vmem:[#allocation7 + $0xb08] ss:$40 sps:$4 sm:$0xff]   ;;  %v12120_v51 = vld [vmem:[#allocation7 + $0x9c4] ss:$40 sps:$4 sm:$0xff]  }
 0x186   :  { %3663 = vmatprep.subr.bf16.mxu1 %v12039_v52  ;;  %v12123_v52 = vld [vmem:[#allocation7 + $0xb5c] ss:$40 sps:$4 sm:$0xff]  }
 0x188   :  { %3490 = vmatpush1.bf16.msra.mxu0 %v12034_v53  ;;  %v12118_v53 = vld [vmem:[#allocation7 + $0x9c0] ss:$40 sps:$4 sm:$0xff]  }
 0x189   :  { %3664 = vmatpush1.bf16.msra.mxu1 %v12037_v54  ;;  %3491 = vmatprep.subr.bf16.mxu0 %v12042_v55  ;;  %v12121_v54 = vld [vmem:[#allocation7 + $0xb58] ss:$40 sps:$4 sm:$0xff]   ;;  %v12126_v55 = vld [vmem:[#allocation7 + $0xa14] ss:$40 sps:$4 sm:$0xff]  }
 0x18a   :  { %3665 = vmatprep.subr.bf16.mxu1 %v12045_v56  ;;  %v12129_v56 = vld [vmem:[#allocation7 + $0xbac] ss:$40 sps:$4 sm:$0xff]  }
 0x18c   :  { %3492 = vmatpush1.bf16.msra.mxu0 %v12040_v57  ;;  %v12124_v57 = vld [vmem:[#allocation7 + $0xa10] ss:$40 sps:$4 sm:$0xff]  }
 0x18d   :  { %3666 = vmatpush1.bf16.msra.mxu1 %v12043_v58  ;;  %3493 = vmatprep.subr.bf16.mxu0 %v12048_v59  ;;  %v12127_v58 = vld [vmem:[#allocation7 + $0xba8] ss:$40 sps:$4 sm:$0xff]   ;;  %v12132_v59 = vld [vmem:[#allocation7 + $0xa64] ss:$40 sps:$4 sm:$0xff]  }
 0x18e   :  { %3667 = vmatprep.subr.bf16.mxu1 %v12051_v60  ;;  %v12135_v60 = vld [vmem:[#allocation7 + $0xbfc] ss:$40 sps:$4 sm:$0xff]  }
 0x190   :  { %3494 = vmatpush1.bf16.msra.mxu0 %v12046_v61  ;;  %v12130_v61 = vld [vmem:[#allocation7 + $0xa60] ss:$40 sps:$4 sm:$0xff]  }
 0x191   :  { %3668 = vmatpush1.bf16.msra.mxu1 %v12049_v62  ;;  %3495 = vmatprep.subr.bf16.mxu0 %v12054_v63  ;;  %v12133_v62 = vld [vmem:[#allocation7 + $0xbf8] ss:$40 sps:$4 sm:$0xff]   ;;  %v12138_v63 = vld [vmem:[#allocation7 + $0xab4] ss:$40 sps:$4 sm:$0xff]  }
 0x192   :  { %3669 = vmatprep.subr.bf16.mxu1 %v12057_v0  ;;  %v12141_v0 = vld [vmem:[#allocation7 + $0xc4c] ss:$40 sps:$4 sm:$0xff]  }
 0x194   :  { %3496 = vmatpush1.bf16.msra.mxu0 %v12052_v1  ;;  %v12136_v1 = vld [vmem:[#allocation7 + $0xab0] ss:$40 sps:$4 sm:$0xff]  }
 0x195   :  { %3670 = vmatpush1.bf16.msra.mxu1 %v12055_v2  ;;  %3497 = vmatprep.subr.bf16.mxu0 %v12060_v3  ;;  %v12139_v2 = vld [vmem:[#allocation7 + $0xc48] ss:$40 sps:$4 sm:$0xff]   ;;  %v12144_v3 = vld [vmem:[#allocation7 + $0xb04] ss:$40 sps:$4 sm:$0xff]  }
 0x196   :  { %3671 = vmatprep.subr.bf16.mxu1 %v12063_v4  ;;  %v12147_v4 = vld [vmem:[#allocation7 + $0xc9c] ss:$40 sps:$4 sm:$0xff]  }
 0x198   :  { %3498 = vmatpush1.bf16.msra.mxu0 %v12058_v5  ;;  %v12142_v5 = vld [vmem:[#allocation7 + $0xb00] ss:$40 sps:$4 sm:$0xff]  }
 0x199   :  { %3672 = vmatpush1.bf16.msra.mxu1 %v12061_v7  ;;  %3499 = vmatprep.subr.bf16.mxu0 %v12066_v8  ;;  %v12145_v7 = vld [vmem:[#allocation7 + $0xc98] ss:$40 sps:$4 sm:$0xff]   ;;  %v12150_v8 = vld [vmem:[#allocation7 + $0xb54] ss:$40 sps:$4 sm:$0xff]  }
 0x19a   :  { %3673 = vmatprep.subr.bf16.mxu1 %v12069_v9  ;;  %v12153_v9 = vld [vmem:[#allocation7 + $0xcec] ss:$40 sps:$4 sm:$0xff]  }
 0x19c   :  { %3500 = vmatpush1.bf16.msra.mxu0 %v12064_v10  ;;  %v12148_v10 = vld [vmem:[#allocation7 + $0xb50] ss:$40 sps:$4 sm:$0xff]  }
 0x19d   :  { %3674 = vmatpush1.bf16.msra.mxu1 %v12067_v11  ;;  %3501 = vmatprep.subr.bf16.mxu0 %v12072_v12  ;;  %v12151_v11 = vld [vmem:[#allocation7 + $0xce8] ss:$40 sps:$4 sm:$0xff]   ;;  %v12156_v12 = vld [vmem:[#allocation7 + $0xba4] ss:$40 sps:$4 sm:$0xff]  }
 0x19e   :  { %3675 = vmatprep.subr.bf16.mxu1 %v12075_v14  ;;  %v12159_v14 = vld [vmem:[#allocation7 + $0xd3c] ss:$40 sps:$4 sm:$0xff]  }
 0x1a0   :  { %3502 = vmatpush1.bf16.msra.mxu0 %v12070_v15  ;;  %v12154_v15 = vld [vmem:[#allocation7 + $0xba0] ss:$40 sps:$4 sm:$0xff]  }
 0x1a1   :  { %3676 = vmatpush1.bf16.msra.mxu1 %v12073_v16  ;;  %3503 = vmatprep.subr.bf16.mxu0 %v12078_v17  ;;  %v12157_v16 = vld [vmem:[#allocation7 + $0xd38] ss:$40 sps:$4 sm:$0xff]   ;;  %v12162_v17 = vld [vmem:[#allocation7 + $0xbf4] ss:$40 sps:$4 sm:$0xff]  }
 0x1a2   :  { %3677 = vmatprep.subr.bf16.mxu1 %v12081_v19  ;;  %v12165_v19 = vld [vmem:[#allocation7 + $0xd8c] ss:$40 sps:$4 sm:$0xff]  }
 0x1a4   :  { %3504 = vmatpush1.bf16.msra.mxu0 %v12076_v20  ;;  %v12160_v20 = vld [vmem:[#allocation7 + $0xbf0] ss:$40 sps:$4 sm:$0xff]  }
 0x1a5   :  { %3678 = vmatpush1.bf16.msra.mxu1 %v12079_v22  ;;  %3505 = vmatprep.subr.bf16.mxu0 %v12084_v23  ;;  %v12163_v22 = vld [vmem:[#allocation7 + $0xd88] ss:$40 sps:$4 sm:$0xff]   ;;  %v12168_v23 = vld [vmem:[#allocation7 + $0xc44] ss:$40 sps:$4 sm:$0xff]  }
 0x1a6   :  { %3679 = vmatprep.subr.bf16.mxu1 %v12087_v24  ;;  %v12171_v24 = vld [vmem:[#allocation7 + $0xddc] ss:$40 sps:$4 sm:$0xff]  }
 0x1a8   :  { %3506 = vmatpush1.bf16.msra.mxu0 %v12082_v25  ;;  %v12166_v25 = vld [vmem:[#allocation7 + $0xc40] ss:$40 sps:$4 sm:$0xff]  }
 0x1a9   :  { %3680 = vmatpush1.bf16.msra.mxu1 %v12085_v26  ;;  %3507 = vmatprep.subr.bf16.mxu0 %v12090_v27  ;;  %v12169_v26 = vld [vmem:[#allocation7 + $0xdd8] ss:$40 sps:$4 sm:$0xff]   ;;  %v12174_v27 = vld [vmem:[#allocation7 + $0xc94] ss:$40 sps:$4 sm:$0xff]  }
 0x1aa   :  { %3681 = vmatprep.subr.bf16.mxu1 %v12093_v29  ;;  %v12177_v29 = vld [vmem:[#allocation7 + $0xe2c] ss:$40 sps:$4 sm:$0xff]  }
 0x1ac   :  { %3508 = vmatpush1.bf16.msra.mxu0 %v12088_v30  ;;  %v12172_v30 = vld [vmem:[#allocation7 + $0xc90] ss:$40 sps:$4 sm:$0xff]  }
 0x1ad   :  { %3682 = vmatpush1.bf16.msra.mxu1 %v12091_v31  ;;  %3509 = vmatprep.subr.bf16.mxu0 %v12096_v34  ;;  %v12175_v31 = vld [vmem:[#allocation7 + $0xe28] ss:$40 sps:$4 sm:$0xff]   ;;  %v12180_v34 = vld [vmem:[#allocation7 + $0xce4] ss:$40 sps:$4 sm:$0xff]  }
 0x1ae   :  { %3692 = vmatprep.subr.bf16.mxu1 %v12099_v35  ;;  %v12183_v35 = vld [vmem:[#allocation7 + $0xe7c] ss:$40 sps:$4 sm:$0xff]  }
 0x1b0   :  { %3684 = vmatmul.mubr.bf16.vlgmr.msra.gmra.mrb[4].mxu1 %v13807_v13  ;;  %3510 = vmatpush1.bf16.msra.mxu0 %v12094_v36  ;;  %v12178_v36 = vld [vmem:[#allocation7 + $0xce0] ss:$40 sps:$4 sm:$0xff]  }
 0x1b1   :  { %3693 = vmatpush1.bf16.msra.mxu1 %v12097_v37  ;;  %3511 = vmatprep.subr.bf16.mxu0 %v12102_v38  ;;  %v12181_v37 = vld [vmem:[#allocation7 + $0xe78] ss:$40 sps:$4 sm:$0xff]   ;;  %v12186_v38 = vld [vmem:[#allocation7 + $0xd34] ss:$40 sps:$4 sm:$0xff]  }
 0x1b2   :  { %3694 = vmatprep.subr.bf16.mxu1 %v12105_v39  ;;  %3724 = vmatprep.mubr.bf16.mxu1 %v13809_v18  ;;  %v12189_v39 = vld [vmem:[#allocation7 + $0xecc] ss:$40 sps:$4 sm:$0xff]  }
 0x1b4   :  { %3512 = vmatpush1.bf16.msra.mxu0 %v12100_v40  ;;  %v12184_v40 = vld [vmem:[#allocation7 + $0xd30] ss:$40 sps:$4 sm:$0xff]  }
 0x1b5   :  { %3695 = vmatpush1.bf16.msra.mxu1 %v12103_v41  ;;  %3513 = vmatprep.subr.bf16.mxu0 %v12108_v42  ;;  %v12187_v41 = vld [vmem:[#allocation7 + $0xec8] ss:$40 sps:$4 sm:$0xff]   ;;  %v12192_v42 = vld [vmem:[#allocation7 + $0xd84] ss:$40 sps:$4 sm:$0xff]  }
 0x1b6   :  { %3696 = vmatprep.subr.bf16.mxu1 %v12111_v43  ;;  %v12201_v43 = vld [vmem:[#allocation7 + $0xf1c] ss:$40 sps:$4 sm:$0xff]  }
 0x1b8   :  { %3514 = vmatpush1.bf16.msra.mxu0 %v12106_v44  ;;  %v614_v44 = vlaneseq }
 0x1b9   :  { %3697 = vmatpush1.bf16.msra.mxu1 %v12109_v45  ;;  %3515 = vmatprep.subr.bf16.mxu0 %v12114_v46  ;;  %v12190_v46 = vld [vmem:[#allocation7 + $0xd80] ss:$40 sps:$4 sm:$0xff]  }
 0x1ba   :  { %3698 = vmatprep.subr.bf16.mxu1 %v12117_v47  ;;  %v13837_v45 = vand.u32 127, %v614_v44  ;;  %v12195_v47 = vld [vmem:[#allocation7 + $0xdd4] ss:$40 sps:$4 sm:$0xff]  }
 0x1bc   :  { %3516 = vmatpush1.bf16.msra.mxu0 %v12112_v48  ;;  %v12199_v48 = vld [vmem:[#allocation7 + $0xf18] ss:$40 sps:$4 sm:$0xff]  }
 0x1bd   :  { %3699 = vmatpush1.bf16.msra.mxu1 %v12115_v50  ;;  %3517 = vmatprep.subr.bf16.mxu0 %v12120_v51  ;;  %v13839_v50 = vshrl.u32 %v614_v44, 7  ;;  %v12207_v51 = vld [vmem:[#allocation10 + $0x4] ss:$40 sps:$4 sm:$0xff]  }
 0x1be   :  { %3700 = vmatprep.subr.bf16.mxu1 %v12123_v52  ;;  %v12193_v52 = vld [vmem:[#allocation7 + $0xdd0] ss:$40 sps:$4 sm:$0xff]  }
 0x1c0   :  { %3518 = vmatpush1.bf16.msra.mxu0 %v12118_v53  ;;  %v4002_v53 = vadd.s32 128, %v13837_v45 }
 0x1c1   :  { %3701 = vmatpush1.bf16.msra.mxu1 %v12121_v54  ;;  %3528 = vmatprep.subr.bf16.mxu0 %v12126_v55  ;;  %v13847_v54 = vmul.u32 1200, %v13839_v50  ;;  %v12198_v55 = vld [vmem:[#allocation7 + $0xe24] ss:$40 sps:$4 sm:$0xff]  }
 0x1c2   :  { %3702 = vmatprep.subr.bf16.mxu1 %v12129_v56 }
 0x1c3   :  { %3520 = vmatmul.mubr.bf16.vlgmr.msra.gmra.mrb[8].mxu0 %v13807_v13  ;;  %v13851_v56 = vadd.s32 %v13847_v54, %v4002_v53 }
 0x1c4   :  { %3529 = vmatpush1.bf16.msra.mxu0 %v12124_v57  ;;  %3560 = vmatprep.mubr.bf16.mxu0 %v13809_v18  ;;  %v12196_v57 = vld [vmem:[#allocation7 + $0xe20] ss:$40 sps:$4 sm:$0xff]  }
 0x1c5   :  { %3703 = vmatpush1.bf16.msra.mxu1 %v12127_v58  ;;  %3530 = vmatprep.subr.bf16.mxu0 %v12132_v59  ;;  %v12204_v58 = vld [vmem:[#allocation7 + $0xe74] ss:$40 sps:$4 sm:$0xff]   ;;  %v13853_v59 = vstv %s4023_s9 }
 0x1c6   :  { %3704 = vmatprep.subr.bf16.mxu1 %v12135_v60  ;;  %v12202_v60 = vld [vmem:[#allocation7 + $0xe70] ss:$40 sps:$4 sm:$0xff]  }
 0x1c8   :  { %3531 = vmatpush1.bf16.msra.mxu0 %v12130_v61  ;;  %v12205_v61 = vld [vmem:[#allocation10] ss:$40 sps:$4 sm:$0xff]  }
 0x1c9   :  { %3705 = vmatpush1.bf16.msra.mxu1 %v12133_v62  ;;  %3532 = vmatprep.subr.bf16.mxu0 %v12138_v63  ;;  %v4026_v62 = vadd.s32 %v13853_v59, %v13851_v56  ;;  %v12210_v63 = vld [vmem:[#allocation7 + $0xec4] ss:$40 sps:$4 sm:$0xff]  }
 0x1ca   :  { %3706 = vmatprep.subr.bf16.mxu1 %v12141_v0  ;;  %v12213_v0 = vld [vmem:[#allocation10 + $0x54] ss:$40 sps:$4 sm:$0xff]  }
 0x1cc   :  { %3533 = vmatpush1.bf16.msra.mxu0 %v12136_v1  ;;  %v12208_v1 = vld [vmem:[#allocation7 + $0xec0] ss:$40 sps:$4 sm:$0xff]  }
 0x1cd   :  { %3707 = vmatpush1.bf16.msra.mxu1 %v12139_v2  ;;  %3534 = vmatprep.subr.bf16.mxu0 %v12144_v3  ;;  %v12211_v2 = vld [vmem:[#allocation10 + $0x50] ss:$40 sps:$4 sm:$0xff]   ;;  %v4036_v3 = vshrl.u32 %v4026_v62, 16 }
 0x1ce   :  { %3708 = vmatprep.subr.bf16.mxu1 %v12147_v4  ;;  %v12216_v4 = vld [vmem:[#allocation7 + $0xf14] ss:$40 sps:$4 sm:$0xff]  }
 0x1d0   :  { %3535 = vmatpush1.bf16.msra.mxu0 %v12142_v5  ;;  %v12219_v5 = vld [vmem:[#allocation10 + $0xa4] ss:$40 sps:$4 sm:$0xff]  }
 0x1d1   :  { %3709 = vmatpush1.bf16.msra.mxu1 %v12145_v7  ;;  %3536 = vmatprep.subr.bf16.mxu0 %v12150_v8  ;;  %v12214_v7 = vld [vmem:[#allocation7 + $0xf10] ss:$40 sps:$4 sm:$0xff]  }
 0x1d2   :  { %3710 = vmatprep.subr.bf16.mxu1 %v12153_v9  ;;  %v12217_v8 = vld [vmem:[#allocation10 + $0xa0] ss:$40 sps:$4 sm:$0xff]   ;;  %v4046_v9 = vxor.u32 %v4036_v3, %v4026_v62 }
 0x1d4   :  { %3537 = vmatpush1.bf16.msra.mxu0 %v12148_v10  ;;  %v12222_v10 = vld [vmem:[#allocation10 + $0xf4] ss:$40 sps:$4 sm:$0xff]  }
 0x1d5   :  { %3711 = vmatpush1.bf16.msra.mxu1 %v12151_v11  ;;  %3538 = vmatprep.subr.bf16.mxu0 %v12156_v12  ;;  %v12228_v11 = vld [vmem:[#allocation7 + $0x24] ss:$40 sps:$4 sm:$0xff]   ;;  %v13861_v12 = vadd.s32 %v13847_v54, %v13837_v45 }
 0x1d6   :  { %3712 = vmatprep.subr.bf16.mxu1 %v12159_v14  ;;  %v4004_v14 = vadd.s32 384, %v13837_v45 }
 0x1d8   :  { %3539 = vmatpush1.bf16.msra.mxu0 %v12154_v15 }
 0x1d9   :  { %3713 = vmatpush1.bf16.msra.mxu1 %v12157_v16  ;;  %3540 = vmatprep.subr.bf16.mxu0 %v12162_v17  ;;  %v4056_v17 = vmul.u32 2246822507, %v4046_v9  ;;  %v12246_v9 = vld [vmem:[#allocation7 + $0x114] ss:$40 sps:$4 sm:$0xff]  }
 0x1da   :  { %3714 = vmatprep.subr.bf16.mxu1 %v12165_v19  ;;  %v12220_v19 = vld [vmem:[#allocation10 + $0xf0] ss:$40 sps:$4 sm:$0xff]  }
 0x1dc   :  { %3541 = vmatpush1.bf16.msra.mxu0 %v12160_v20  ;;  %v12225_v20 = vld [vmem:[#allocation10 + $0x144] ss:$40 sps:$4 sm:$0xff]  }
 0x1dd   :  { %3715 = vmatpush1.bf16.msra.mxu1 %v12163_v22  ;;  %3542 = vmatprep.subr.bf16.mxu0 %v12168_v23  ;;  %v4025_v22 = vadd.s32 %v13853_v59, %v13861_v12  ;;  %v13870_v23 = vadd.s32 %v13847_v54, %v4004_v14 }
 0x1de   :  { %3716 = vmatprep.subr.bf16.mxu1 %v12171_v24 }
 0x1e0   :  { %3543 = vmatpush1.bf16.msra.mxu0 %v12166_v25 }
 0x1e1   :  { %3717 = vmatpush1.bf16.msra.mxu1 %v12169_v26  ;;  %3544 = vmatprep.subr.bf16.mxu0 %v12174_v27  ;;  %v12223_v26 = vld [vmem:[#allocation10 + $0x140] ss:$40 sps:$4 sm:$0xff]   ;;  %v4066_v27 = vshrl.u32 %v4056_v17, 13 }
 0x1e2   :  { %3718 = vmatprep.subr.bf16.mxu1 %v12177_v29  ;;  %v610_v29 = vld [vmem:[#allocation9] sm:$0xff] }
 0x1e4   :  { %3545 = vmatpush1.bf16.msra.mxu0 %v12172_v30  ;;  %v12231_v30 = vld [vmem:[#allocation10 + $0x194] ss:$40 sps:$4 sm:$0xff]  }
 0x1e5   :  { %3719 = vmatpush1.bf16.msra.mxu1 %v12175_v31  ;;  %3546 = vmatprep.subr.bf16.mxu0 %v12180_v34  ;;  %v13874_v31 = vsub.s32 1, %v13839_v50  ;;  %v4035_v34 = vshrl.u32 %v4025_v22, 16 }
 0x1e6   :  { %3720 = vmatprep.subr.bf16.mxu1 %v12183_v35  ;;  %v4028_v35 = vadd.s32 %v13853_v59, %v13870_v23 }
 0x1e7   :  { %v4045_v44 = vxor.u32 %v4035_v34, %v4025_v22 }
 0x1e8   :  { %3547 = vmatpush1.bf16.msra.mxu0 %v12178_v36  ;;  %v12226_v36 = vld [vmem:[#allocation7 + $0x20] ss:$40 sps:$4 sm:$0xff]  }
 0x1e9   :  { %3721 = vmatpush1.bf16.msra.mxu1 %v12181_v37  ;;  %3548 = vmatprep.subr.bf16.mxu0 %v12186_v38  ;;  %v12229_v37 = vld [vmem:[#allocation10 + $0x190] ss:$40 sps:$4 sm:$0xff]  }
 0x1ea   :  { %3722 = vmatprep.subr.bf16.mxu1 %v12189_v39  ;;  %v12234_v38 = vld [vmem:[#allocation7 + $0x74] ss:$40 sps:$4 sm:$0xff]   ;;  %v13879_v39 = vsub.s32 2, %v13839_v50 }
 0x1ec   :  { %3549 = vmatpush1.bf16.msra.mxu0 %v12184_v40  ;;  %v4076_v40 = vxor.u32 %v4066_v27, %v4056_v17  ;;  %v12252_v27 = vld [vmem:[#allocation7 + $0x164] ss:$40 sps:$4 sm:$0xff]  }
 0x1ed   :  { %3723 = vmatpush1.bf16.msra.mxu1 %v12187_v41  ;;  %3550 = vmatprep.subr.bf16.mxu0 %v12192_v42  ;;  %v621_v41 = vrot.slane %v610_v29, %v13874_v31  ;;  %v12237_v42 = vld [vmem:[#allocation10 + $0x1e4] ss:$40 sps:$4 sm:$0xff]  }
 0x1ee   :  { %3733 = vmatprep.subr.bf16.mxu1 %v12201_v43  ;;  %v13883_v43 = vsub.s32 3, %v13839_v50 }
 0x1f0   :  { %3725 = vmatmul.mubr.bf16.vlgmr.msra.gmra.mrb[4].mxu1 %v13815_v21  ;;  %3551 = vmatpush1.bf16.msra.mxu0 %v12190_v46  ;;  %v4038_v46 = vshrl.u32 %v4028_v35, 16  ;;  %v629_v62 = vrot.slane %v610_v29, %v13883_v43 }
 0x1f1   :  { %3734 = vmatpush1.bf16.msra.mxu1 %v12199_v48  ;;  %3552 = vmatprep.subr.bf16.mxu0 %v12195_v47  ;;  %v13886_v47 = vsub.s32 0, %v13839_v50 }
 0x1f2   :  { %3765 = vmatprep.mubr.bf16.mxu1 %v13674_v28  ;;  %8723 = vmatprep.subr.bf16.mxu1 %v12207_v51  ;;  %v12232_v51 = vld [vmem:[#allocation7 + $0x70] ss:$40 sps:$4 sm:$0xff]  }
 0x1f4   :  { %3553 = vmatpush1.bf16.msra.mxu0 %v12193_v52  ;;  %v12235_v52 = vld [vmem:[#allocation10 + $0x1e0] ss:$40 sps:$4 sm:$0xff]  }
 0x1f5   :  { %3554 = vmatprep.subr.bf16.mxu0 %v12198_v55  ;;  %v625_v55 = vrot.slane %v610_v29, %v13879_v39 }
 0x1f8   :  { %3555 = vmatpush1.bf16.msra.mxu0 %v12196_v57  ;;  %v12240_v57 = vld [vmem:[#allocation7 + $0xc4] ss:$40 sps:$4 sm:$0xff]  }
 0x1f9   :  { %3556 = vmatprep.subr.bf16.mxu0 %v12204_v58  ;;  %v4086_v58 = vmul.u32 3266489909, %v4076_v40  ;;  %v12250_v40 = vld [vmem:[#allocation7 + $0x160] ss:$40 sps:$4 sm:$0xff]  }
 0x1fc   :  { %10545 = vmatmul.mubr.msk.bf16.vlgmr.msra.gmra.mrb[4].mxu1 %vm3114_vm0, %v13821_v32  ;;  %3557 = vmatpush1.bf16.msra.mxu0 %v12202_v60 }
 0x1fd   :  { %8724 = vmatpush1.bf16.msra.mxu1 %v12205_v61  ;;  %3558 = vmatprep.subr.bf16.mxu0 %v12210_v63  ;;  %v12243_v63 = vld [vmem:[#allocation10 + $0x234] ss:$40 sps:$4 sm:$0xff]  }
 0x1fe   :  { %8725 = vmatprep.subr.bf16.mxu1 %v12213_v0  ;;  %v4055_v0 = vmul.u32 2246822507, %v4045_v44  ;;  %v12258_v44 = vld [vmem:[#allocation7 + $0x1b4] ss:$40 sps:$4 sm:$0xff]  }
 0x200   :  { %3559 = vmatpush1.bf16.msra.mxu0 %v12208_v1  ;;  %v4048_v1 = vxor.u32 %v4038_v46, %v4028_v35  ;;  %v12261_v46 = vld [vmem:[#allocation10 + $0x324] ss:$40 sps:$4 sm:$0xff]  }
 0x201   :  { %8726 = vmatpush1.bf16.msra.mxu1 %v12211_v2  ;;  %3569 = vmatprep.subr.bf16.mxu0 %v12216_v4  ;;  %v617_v2 = vrot.slane %v610_v29, %v13886_v47 }
 0x202   :  { %8727 = vmatprep.subr.bf16.mxu1 %v12219_v5  ;;  %v12238_v5 = vld [vmem:[#allocation7 + $0xc0] ss:$40 sps:$4 sm:$0xff]  }
 0x203   :  { %v3398_v15 = vpop.f32.mrb[0].mxu1  ;;  %3561 = vmatmul.mubr.bf16.vlgmr.msra.gmra.mrb[8].mxu0 %v13815_v21 }
 0x204   :  { %v13865_v16 = vpop.f32.mrb[1].mxu1  ;;  %3570 = vmatpush1.bf16.msra.mxu0 %v12214_v7  ;;  %3601 = vmatprep.mubr.bf16.mxu0 %v13674_v28  ;;  %v12241_v7 = vld [vmem:[#allocation10 + $0x230] ss:$40 sps:$4 sm:$0xff]  }
 0x205   :  { %8728 = vmatpush1.bf16.msra.mxu1 %v12217_v8  ;;  %v3402_v24 = vpop.f32.mrb[2].mxu1  ;;  %3774 = vmatprep.subr.bf16.mxu0 %v12228_v11  ;;  %v11460_v8 = vadd.f32 %v3398_v15, %v625_v55  ;;  %v4096_v11 = vshrl.u32 %v4086_v58, 16  ;;  %v11462_v17 = vadd.f32 %v13865_v16, %v629_v62  ;;  %v12255_v16 = vld [vmem:[#allocation10 + $0x2d4] ss:$40 sps:$4 sm:$0xff]  }
 0x206   :  { %8729 = vmatprep.subr.bf16.mxu1 %v12222_v10  ;;  %v3403_v25 = vpop.f32.mrb[3].mxu1  ;;  %v12249_v10 = vld [vmem:[#allocation10 + $0x284] ss:$40 sps:$4 sm:$0xff]   ;;  %v12256_v55 = vld [vmem:[#allocation7 + $0x1b0] ss:$40 sps:$4 sm:$0xff]  }
 0x207   :  { %v12244_v25 = vld [vmem:[#allocation7 + $0x110] ss:$40 sps:$4 sm:$0xff]   ;;  %v4106_v34 = vxor.u32 %v4096_v11, %v4086_v58 }
 0x208   :  { %v12267_v62 = vld [vmem:[#allocation10 + $0x374] ss:$40 sps:$4 sm:$0xff]  }
 0x209   :  { %8730 = vmatpush1.bf16.msra.mxu1 %v12220_v19  ;;  %v4065_v19 = vshrl.u32 %v4055_v0, 13 }
 0x20a   :  { %8731 = vmatprep.subr.bf16.mxu1 %v12225_v20  ;;  %v4058_v20 = vmul.u32 2246822507, %v4048_v1 }
 0x20b   :  { %v4075_v35 = vxor.u32 %v4065_v19, %v4055_v0  ;;  %v12268_v19 = vld [vmem:[#allocation7 + $0x250] ss:$40 sps:$4 sm:$0xff]  }
 0x20d   :  { %8732 = vmatpush1.bf16.msra.mxu1 %v12223_v26  ;;  %v12247_v26 = vld [vmem:[#allocation10 + $0x280] ss:$40 sps:$4 sm:$0xff]  }
 0x20e   :  { %8733 = vmatprep.subr.bf16.mxu1 %v12231_v30  ;;  %v3275_v48 = vpop.f32.mrb[0].mxu0 }
 0x20f   :  { %10544 = vmatmul.mubr.msk.bf16.vlgmr.msra.gmra.mrb[8].mxu0 %vm3114_vm0, %v13821_v32  ;;  %v3277_v53 = vpop.f32.mrb[1].mxu0  ;;  %v13898_v22 = vadd.f32 %v3275_v48, %v617_v2  ;;  %v4116_v48 = vshrl.u32 %v4106_v34, 1  ;;  %v12285_v34 = vld [vmem:[#allocation10 + $0x464] ss:$40 sps:$4 sm:$0xff]  }
 0x210   :  { %3775 = vmatpush1.bf16.msra.mxu0 %v12226_v36  ;;  %v13891_v60 = vadd.f32 %v3277_v53, %v621_v41  ;;  %v3279_v61 = vpop.f32.mrb[2].mxu0  ;;  %3806 = vmatprep.mubr.bf16.mxu0 %v13795_v49  ;;  %v4068_v36 = vshrl.u32 %v4058_v20, 13  ;;  %v12253_v41 = vld [vmem:[#allocation10 + $0x2d0] ss:$40 sps:$4 sm:$0xff]  }
 0x211   :  { %8734 = vmatpush1.bf16.msra.mxu1 %v12229_v37  ;;  %v3280_v3 = vpop.f32.mrb[3].mxu0  ;;  %3776 = vmatprep.subr.bf16.mxu0 %v12234_v38  ;;  %v3948_v37 = vmin.f32 %v13898_v22, 0.0  ;;  %v12264_v61 = vld [vmem:[#allocation7 + $0x204] ss:$40 sps:$4 sm:$0xff]   ;;  %vm4126_vm1 = vcmp.ge.s32.totalorder %v4116_v48, 644245094 }
 0x212   :  { %8735 = vmatprep.subr.bf16.mxu1 %v12237_v42  ;;  %v3949_v4 = vmin.f32 %v13891_v60, 0.0  ;;  %vm3939_vm2 = vcmp.gt.f32.partialorder %v13891_v60, 0.0  ;;  %v12262_v3 = vld [vmem:[#allocation7 + $0x200] ss:$40 sps:$4 sm:$0xff]   ;;  %vm13908_vm3 = vmpackc.low %vm4126_vm1, %vm4126_vm1  ;;  %vm3938_vm6 = vcmp.gt.f32.partialorder %v13898_v22, 0.0 }
 0x213   :  { %v3958_v53 = vmul.f32 1.442695, %v3948_v37 }
 0x214   :  { %v3960_v14 = vmul.f32 1.442695, %v3949_v4  ;;  %3777 = vmatpush1.bf16.msra.mxu0 %v12232_v51  ;;  %v4085_v51 = vmul.u32 3266489909, %v4075_v35  ;;  %v12265_v4 = vld [vmem:[#allocation10 + $0x370] ss:$40 sps:$4 sm:$0xff]  }
 0x215   :  { %8736 = vmatpush1.bf16.msra.mxu1 %v12235_v52  ;;  %3778 = vmatprep.subr.bf16.mxu0 %v12240_v57  ;;  %v4078_v52 = vxor.u32 %v4068_v36, %v4058_v20  ;;  %v12259_v57 = vld [vmem:[#allocation10 + $0x320] ss:$40 sps:$4 sm:$0xff]  }
 0x216   :  { %8737 = vmatprep.subr.bf16.mxu1 %v12243_v63  ;;  %13483 = vpow2.f32 %v3960_v14  ;;  %v3439_v24 = vpop.f32.mrb[4].mxu0  ;;  %v4095_v2 = vshrl.u32 %v4085_v51, 16  ;;  %v12271_v20 = vld [vmem:[#allocation10 + $0x3c0] ss:$40 sps:$4 sm:$0xff]  }
 0x217   :  { %v13900_v49 = vadd.f32 %v11460_v8, %v3439_v24  ;;  %v3441_v15 = vpop.f32.mrb[5].mxu0  ;;  %v4088_v0 = vmul.u32 3266489909, %v4078_v52  ;;  %13485 = vpow2.f32 %v3958_v53  ;;  %v12279_v24 = vld [vmem:[#allocation10 + $0x414] ss:$40 sps:$4 sm:$0xff]  }
 0x218   :  { %3779 = vmatpush1.bf16.msra.mxu0 %v12238_v5  ;;  %v13902_v29 = vadd.f32 %v11462_v17, %v3441_v15  ;;  %v3443_v30 = vpop.f32.mrb[6].mxu0  ;;  %v4105_v11 = vxor.u32 %v4095_v2, %v4085_v51  ;;  %v12274_v15 = vld [vmem:[#allocation7 + $0x2a0] ss:$40 sps:$4 sm:$0xff]   ;;  %v12294_v53 = vld [vmem:[#allocation7 + $0x394] ss:$40 sps:$4 sm:$0xff]  }
 0x219   :  { %8738 = vmatpush1.bf16.msra.mxu1 %v12241_v7  ;;  %v3444_v38 = vpop.f32.mrb[7].mxu0  ;;  %3780 = vmatprep.subr.bf16.mxu0 %v12246_v9  ;;  %v12270_v9 = vld [vmem:[#allocation7 + $0x254] ss:$40 sps:$4 sm:$0xff]   ;;  %v4098_v14 = vshrl.u32 %v4088_v0, 16  ;;  %v12286_v51 = vld [vmem:[#allocation7 + $0x340] ss:$40 sps:$4 sm:$0xff]  }
 0x21a   :  { %8739 = vmatprep.subr.bf16.mxu1 %v12249_v10  ;;  %v3951_v42 = vmin.f32 %v13902_v29, 0.0  ;;  %v12273_v10 = vld [vmem:[#allocation10 + $0x3c4] ss:$40 sps:$4 sm:$0xff]   ;;  %v12277_v30 = vld [vmem:[#allocation10 + $0x410] ss:$40 sps:$4 sm:$0xff]   ;;  %vm3941_vm8 = vcmp.gt.f32.partialorder %v13902_v29, 0.0 }
 0x21b   :  { %v12280_v38 = vld [vmem:[#allocation7 + $0x2f0] ss:$40 sps:$4 sm:$0xff]   ;;  %vm3940_vm11 = vcmp.gt.f32.partialorder %v13900_v49, 0.0 }
 0x21c   :  { %3781 = vmatpush1.bf16.msra.mxu0 %v12244_v25  ;;  %v3964_v58 = vmul.f32 1.442695, %v3951_v42  ;;  %v4115_v25 = vshrl.u32 %v4105_v11, 1  ;;  %v12289_v52 = vld [vmem:[#allocation10 + $0x4b0] ss:$40 sps:$4 sm:$0xff]  }
 0x21d   :  { %8740 = vmatpush1.bf16.msra.mxu1 %v12247_v26  ;;  %3782 = vmatprep.subr.bf16.mxu0 %v12252_v27  ;;  %v4108_v26 = vxor.u32 %v4098_v14, %v4088_v0  ;;  %v12300_v0 = vld [vmem:[#allocation7 + $0x3e4] ss:$40 sps:$4 sm:$0xff]  }
 0x21e   :  { %8741 = vmatprep.subr.bf16.mxu1 %v12255_v16  ;;  %13487 = vpow2.f32 %v3964_v58  ;;  %v12282_v16 = vld [vmem:[#allocation7 + $0x2f4] ss:$40 sps:$4 sm:$0xff]   ;;  %vm4125_vm4 = vcmp.ge.s32.totalorder %v4115_v25, 644245094  ;;  %v12312_v11 = vld [vmem:[#allocation7 + $0x484] ss:$40 sps:$4 sm:$0xff]  }
 0x21f   :  { %v4118_v36 = vshrl.u32 %v4108_v26, 1  ;;  %vm13917_vm5 = vmpackc.low %vm4125_vm4, %vm4125_vm4  ;;  %v12315_v14 = vld [vmem:[#allocation10 + $0x5f4] ss:$40 sps:$4 sm:$0xff]   ;;  %v12321_v25 = vld [vmem:[#allocation10 + $0x644] ss:$40 sps:$4 sm:$0xff]  }
 0x220   :  { %v13484_v63 = vpop.eup %13483  ;;  %3783 = vmatpush1.bf16.msra.mxu0 %v12250_v40  ;;  %v12283_v40 = vld [vmem:[#allocation10 + $0x460] ss:$40 sps:$4 sm:$0xff]   ;;  %v13167_v8 = vld [vmem:[#allocation10 + $0xc54] ss:$40 sps:$4 sm:$0xff]  }
 0x221   :  { %8742 = vmatpush1.bf16.msra.mxu1 %v12253_v41  ;;  %v10548_v1 = vadd.f32 -1.0, %v13484_v63  ;;  %3784 = vmatprep.subr.bf16.mxu0 %v12258_v44  ;;  %v13486_v27 = vpop.eup %13485  ;;  %v12288_v41 = vld [vmem:[#allocation7 + $0x344] ss:$40 sps:$4 sm:$0xff]   ;;  %vm4128_vm7 = vcmp.ge.s32.totalorder %v4118_v36, 644245094 }
 0x222   :  { %8743 = vmatprep.subr.bf16.mxu1 %v12261_v46  ;;  %v10547_v37 = vadd.f32 -1.0, %v13486_v27  ;;  %v12291_v44 = vld [vmem:[#allocation10 + $0x4b4] ss:$40 sps:$4 sm:$0xff]   ;;  %vm13925_vm9 = vmpackc.low %vm4128_vm7, %vm4128_vm7  ;;  %v12295_v63 = vld [vmem:[#allocation10 + $0x500] ss:$40 sps:$4 sm:$0xff]  }
 0x223   :  { %v3989_v5 = vsel %vm3939_vm2, %v13891_v60, %v10548_v1  ;;  %v12276_v60 = vld [vmem:[#allocation7 + $0x2a4] ss:$40 sps:$4 sm:$0xff]  }
 0x224   :  { %v4136_v7 = vmul.f32 1.4285715, %v3989_v5  ;;  %3785 = vmatpush1.bf16.msra.mxu0 %v12256_v55  ;;  %v3988_v48 = vsel %vm3938_vm6, %v13898_v22, %v10547_v37  ;;  %v12303_v1 = vld [vmem:[#allocation10 + $0x554] ss:$40 sps:$4 sm:$0xff]   ;;  %v12319_v27 = vld [vmem:[#allocation10 + $0x640] ss:$40 sps:$4 sm:$0xff]  }
 0x225   :  { %8744 = vmatpush1.bf16.msra.mxu1 %v12259_v57  ;;  %3786 = vmatprep.subr.bf16.mxu0 %v12264_v61  ;;  %v12297_v57 = vld [vmem:[#allocation10 + $0x504] ss:$40 sps:$4 sm:$0xff]   ;;  %v4135_v61 = vmul.f32 1.4285715, %v3988_v48  ;;  %v12325_v36 = vld [vmem:[#allocation10 + $0x690] ss:$40 sps:$4 sm:$0xff]  }
 0x226   :  { %8745 = vmatprep.subr.bf16.mxu1 %v12267_v62  ;;  %v13912_v17 = vpack.c.bf16 %v4136_v7, %v4136_v7  ;;  %v12292_v62 = vld [vmem:[#allocation7 + $0x390] ss:$40 sps:$4 sm:$0xff]   ;;  %v12306_v5 = vld [vmem:[#allocation7 + $0x434] ss:$40 sps:$4 sm:$0xff]   ;;  %v12336_v48 = vld [vmem:[#allocation7 + $0x5c4] ss:$40 sps:$4 sm:$0xff]  }
 0x227   :  { %v13929_v2 = vpack.c.bf16 %v4135_v61, %v4135_v61  ;;  %v12309_v7 = vld [vmem:[#allocation10 + $0x5a4] ss:$40 sps:$4 sm:$0xff]   ;;  %v13255_v58 = vld [vmem:[#allocation10 + $0x1100] ss:$40 sps:$4 sm:$0xff]  }
 0x228   :  { %3787 = vmatpush1.bf16.msra.mxu0 %v12262_v3  ;;  %11309 = vmatprep.mubr.msk.bf16.mxu1 %vm13908_vm3, %v13912_v17  ;;  %v13488_v35 = vpop.eup %13487  ;;  %v12298_v3 = vld [vmem:[#allocation7 + $0x3e0] ss:$40 sps:$4 sm:$0xff]   ;;  %v12330_v37 = vld [vmem:[#allocation7 + $0x574] ss:$40 sps:$4 sm:$0xff]  }
 0x229   :  { %8746 = vmatpush1.bf16.msra.mxu1 %v12265_v4  ;;  %3788 = vmatprep.subr.bf16.mxu0 %v12270_v9  ;;  %v10550_v42 = vadd.f32 -1.0, %v13488_v35  ;;  %v12301_v4 = vld [vmem:[#allocation10 + $0x550] ss:$40 sps:$4 sm:$0xff]  }
 0x22a   :  { %8747 = vmatprep.subr.bf16.mxu1 %v12273_v10  ;;  %v12304_v9 = vld [vmem:[#allocation7 + $0x430] ss:$40 sps:$4 sm:$0xff]   ;;  %v12322_v35 = vld [vmem:[#allocation7 + $0x520] ss:$40 sps:$4 sm:$0xff]  }
 0x22b   :  { %v3991_v55 = vsel %vm3941_vm8, %v13902_v29, %v10550_v42  ;;  %v12307_v10 = vld [vmem:[#allocation10 + $0x5a0] ss:$40 sps:$4 sm:$0xff]  }
 0x22c   :  { %3789 = vmatpush1.bf16.msra.mxu0 %v12268_v19  ;;  %v4138_v22 = vmul.f32 1.4285715, %v3991_v55  ;;  %v4003_v19 = vadd.s32 256, %v13837_v45  ;;  %v12331_v42 = vld [vmem:[#allocation10 + $0x6e0] ss:$40 sps:$4 sm:$0xff]  }
 0x22d   :  { %8748 = vmatpush1.bf16.msra.mxu1 %v12271_v20  ;;  %3790 = vmatprep.subr.bf16.mxu0 %v12276_v60  ;;  %v12310_v20 = vld [vmem:[#allocation7 + $0x480] ss:$40 sps:$4 sm:$0xff]   ;;  %v12342_v55 = vld [vmem:[#allocation7 + $0x614] ss:$40 sps:$4 sm:$0xff]  }
 0x22e   :  { %8749 = vmatprep.subr.bf16.mxu1 %v12279_v24  ;;  %v13931_v29 = vpack.c.bf16 %v4138_v22, %v4138_v22  ;;  %v12313_v60 = vld [vmem:[#allocation10 + $0x5f0] ss:$40 sps:$4 sm:$0xff]   ;;  %v13941_v26 = vadd.s32 %v13847_v54, %v4003_v19  ;;  %v12351_v22 = vld [vmem:[#allocation10 + $0x7d4] ss:$40 sps:$4 sm:$0xff]  }
 0x22f   :  { %v12318_v24 = vld [vmem:[#allocation7 + $0x4d4] ss:$40 sps:$4 sm:$0xff]  }
 0x230   :  { %3791 = vmatpush1.bf16.msra.mxu0 %v12274_v15  ;;  %v12316_v15 = vld [vmem:[#allocation7 + $0x4d0] ss:$40 sps:$4 sm:$0xff]  }
 0x231   :  { %8750 = vmatpush1.bf16.msra.mxu1 %v12277_v30  ;;  %3792 = vmatprep.subr.bf16.mxu0 %v12282_v16  ;;  %v12324_v30 = vld [vmem:[#allocation7 + $0x524] ss:$40 sps:$4 sm:$0xff]  }
 0x232   :  { %8751 = vmatprep.subr.bf16.mxu1 %v12285_v34  ;;  %v12327_v16 = vld [vmem:[#allocation10 + $0x694] ss:$40 sps:$4 sm:$0xff]   ;;  %v4027_v34 = vadd.s32 %v13853_v59, %v13941_v26 }
 0x233   :  { %v12363_v19 = vld [vmem:[#allocation10 + $0x874] ss:$40 sps:$4 sm:$0xff]  }
 0x234   :  { %3793 = vmatpush1.bf16.msra.mxu0 %v12280_v38  ;;  %v12333_v38 = vld [vmem:[#allocation10 + $0x6e4] ss:$40 sps:$4 sm:$0xff]  }
 0x235   :  { %8752 = vmatpush1.bf16.msra.mxu1 %v12283_v40  ;;  %3794 = vmatprep.subr.bf16.mxu0 %v12288_v41  ;;  %v4037_v40 = vshrl.u32 %v4027_v34, 16  ;;  %v12328_v41 = vld [vmem:[#allocation7 + $0x570] ss:$40 sps:$4 sm:$0xff]  }
 0x236   :  { %8753 = vmatprep.subr.bf16.mxu1 %v12291_v44 }
 0x237   :  { %v4047_v44 = vxor.u32 %v4037_v40, %v4027_v34  ;;  %v12372_v34 = vld [vmem:[#allocation7 + $0x7a4] ss:$40 sps:$4 sm:$0xff]  }
 0x238   :  { %3795 = vmatpush1.bf16.msra.mxu0 %v12286_v51  ;;  %v12339_v51 = vld [vmem:[#allocation10 + $0x734] ss:$40 sps:$4 sm:$0xff]  }
 0x239   :  { %8754 = vmatpush1.bf16.msra.mxu1 %v12289_v52  ;;  %3796 = vmatprep.subr.bf16.mxu0 %v12294_v53  ;;  %v12334_v52 = vld [vmem:[#allocation7 + $0x5c0] ss:$40 sps:$4 sm:$0xff]   ;;  %v4057_v61 = vmul.u32 2246822507, %v4047_v44 }
 0x23a   :  { %8764 = vmatprep.subr.bf16.mxu1 %v12297_v57  ;;  %v12337_v53 = vld [vmem:[#allocation10 + $0x730] ss:$40 sps:$4 sm:$0xff]   ;;  %v12345_v57 = vld [vmem:[#allocation10 + $0x784] ss:$40 sps:$4 sm:$0xff]  }
 0x23c   :  { %11312 = vmatmul.mubr.msk.bf16.vlgmr.msra.gmra.mrb[8].mxu1 %vm13917_vm5, %v13929_v2  ;;  %3797 = vmatpush1.bf16.msra.mxu0 %v12292_v62  ;;  %v12343_v62 = vld [vmem:[#allocation10 + $0x780] ss:$40 sps:$4 sm:$0xff]  }
 0x23d   :  { %8765 = vmatpush1.bf16.msra.mxu1 %v12295_v63  ;;  %11315 = vmatprep.mubr.msk.bf16.mxu1 %vm13925_vm9, %v13931_v29  ;;  %v12348_v63 = vld [vmem:[#allocation7 + $0x664] ss:$40 sps:$4 sm:$0xff]  }
 0x23e   :  { %3798 = vmatprep.subr.bf16.mxu0 %v12300_v0  ;;  %8766 = vmatprep.subr.bf16.mxu1 %v12303_v1  ;;  %v4067_v0 = vshrl.u32 %v4057_v61, 13  ;;  %v3950_v1 = vmin.f32 %v13900_v49, 0.0 }
 0x240   :  { %3799 = vmatpush1.bf16.msra.mxu0 %v12298_v3  ;;  %v12346_v3 = vld [vmem:[#allocation7 + $0x660] ss:$40 sps:$4 sm:$0xff]  }
 0x241   :  { %8767 = vmatpush1.bf16.msra.mxu1 %v12301_v4  ;;  %3800 = vmatprep.subr.bf16.mxu0 %v12306_v5  ;;  %v12354_v4 = vld [vmem:[#allocation7 + $0x6b4] ss:$40 sps:$4 sm:$0xff]  }
 0x242   :  { %8768 = vmatprep.subr.bf16.mxu1 %v12309_v7  ;;  %v12357_v5 = vld [vmem:[#allocation10 + $0x824] ss:$40 sps:$4 sm:$0xff]   ;;  %v4077_v7 = vxor.u32 %v4067_v0, %v4057_v61 }
 0x243   :  { %v12382_v61 = vld [vmem:[#allocation7 + $0x840] ss:$40 sps:$4 sm:$0xff]  }
 0x244   :  { %3801 = vmatpush1.bf16.msra.mxu0 %v12304_v9  ;;  %v3962_v9 = vmul.f32 1.442695, %v3950_v1  ;;  %v12388_v1 = vld [vmem:[#allocation7 + $0x890] ss:$40 sps:$4 sm:$0xff]  }
 0x245   :  { %8769 = vmatpush1.bf16.msra.mxu1 %v12307_v10  ;;  %3802 = vmatprep.subr.bf16.mxu0 %v12312_v11  ;;  %v12352_v10 = vld [vmem:[#allocation7 + $0x6b0] ss:$40 sps:$4 sm:$0xff]  }
 0x246   :  { %8770 = vmatprep.subr.bf16.mxu1 %v12315_v14  ;;  %v12355_v11 = vld [vmem:[#allocation10 + $0x820] ss:$40 sps:$4 sm:$0xff]   ;;  %13489 = vpow2.f32 %v3962_v9  ;;  %v12445_v9 = vld [vmem:[#allocation10 + $0xa50] ss:$40 sps:$4 sm:$0xff]  }
 0x247   :  { %v12360_v14 = vld [vmem:[#allocation7 + $0x704] ss:$40 sps:$4 sm:$0xff]  }
 0x248   :  { %3803 = vmatpush1.bf16.msra.mxu0 %v12310_v20  ;;  %v4087_v20 = vmul.u32 3266489909, %v4077_v7  ;;  %v12396_v7 = vld [vmem:[#allocation7 + $0x934] ss:$40 sps:$4 sm:$0xff]  }
 0x249   :  { %8771 = vmatpush1.bf16.msra.mxu1 %v12313_v60  ;;  %3804 = vmatprep.subr.bf16.mxu0 %v12318_v24  ;;  %v12358_v60 = vld [vmem:[#allocation7 + $0x700] ss:$40 sps:$4 sm:$0xff]  }
 0x24a   :  { %8772 = vmatprep.subr.bf16.mxu1 %v12321_v25  ;;  %v12361_v24 = vld [vmem:[#allocation10 + $0x870] ss:$40 sps:$4 sm:$0xff]  }
 0x24b   :  { %v12366_v25 = vld [vmem:[#allocation7 + $0x754] ss:$40 sps:$4 sm:$0xff]  }
 0x24c   :  { %3805 = vmatpush1.bf16.msra.mxu0 %v12316_v15  ;;  %v12369_v15 = vld [vmem:[#allocation10 + $0x8c4] ss:$40 sps:$4 sm:$0xff]  }
 0x24d   :  { %8773 = vmatpush1.bf16.msra.mxu1 %v12319_v27  ;;  %3815 = vmatprep.subr.bf16.mxu0 %v12324_v30  ;;  %v4097_v27 = vshrl.u32 %v4087_v20, 16  ;;  %v12364_v30 = vld [vmem:[#allocation7 + $0x750] ss:$40 sps:$4 sm:$0xff]  }
 0x24e   :  { %8774 = vmatprep.subr.bf16.mxu1 %v12327_v16  ;;  %v12367_v16 = vld [vmem:[#allocation10 + $0x8c0] ss:$40 sps:$4 sm:$0xff]  }
 0x24f   :  { %3807 = vmatmul.mubr.bf16.vlgmr.msra.gmra.mrb[12].mxu0 %v13799_v6  ;;  %v12340_v6 = vld [vmem:[#allocation7 + $0x610] ss:$40 sps:$4 sm:$0xff]  }
 0x250   :  { %3816 = vmatpush1.bf16.msra.mxu0 %v12322_v35  ;;  %3847 = vmatprep.mubr.bf16.mxu0 %v13803_v33  ;;  %v12349_v33 = vld [vmem:[#allocation10 + $0x7d0] ss:$40 sps:$4 sm:$0xff]   ;;  %v12375_v35 = vld [vmem:[#allocation10 + $0x914] ss:$40 sps:$4 sm:$0xff]   ;;  %v13490_v40 = vpop.eup %13489 }
 0x251   :  { %8775 = vmatpush1.bf16.msra.mxu1 %v12325_v36  ;;  %3817 = vmatprep.subr.bf16.mxu0 %v12330_v37  ;;  %v4107_v36 = vxor.u32 %v4097_v27, %v4087_v20  ;;  %v12370_v37 = vld [vmem:[#allocation7 + $0x7a0] ss:$40 sps:$4 sm:$0xff]   ;;  %v12459_v20 = vld [vmem:[#allocation10 + $0xaf4] ss:$40 sps:$4 sm:$0xff]  }
 0x252   :  { %8776 = vmatprep.subr.bf16.mxu1 %v12333_v38  ;;  %v12373_v38 = vld [vmem:[#allocation10 + $0x910] ss:$40 sps:$4 sm:$0xff]  }
 0x253   :  { %v4117_v44 = vshrl.u32 %v4107_v36, 1  ;;  %v12400_v27 = vld [vmem:[#allocation7 + $0x9d0] ss:$40 sps:$4 sm:$0xff]   ;;  %v12408_v36 = vld [vmem:[#allocation7 + $0xa74] ss:$40 sps:$4 sm:$0xff]  }
 0x254   :  { %3818 = vmatpush1.bf16.msra.mxu0 %v12328_v41  ;;  %v12378_v41 = vld [vmem:[#allocation7 + $0x7f4] ss:$40 sps:$4 sm:$0xff]  }
 0x255   :  { %8777 = vmatpush1.bf16.msra.mxu1 %v12331_v42  ;;  %3819 = vmatprep.subr.bf16.mxu0 %v12336_v48  ;;  %v12381_v42 = vld [vmem:[#allocation10 + $0x964] ss:$40 sps:$4 sm:$0xff]   ;;  %v10549_v48 = vadd.f32 -1.0, %v13490_v40  ;;  %vm4127_vm10 = vcmp.ge.s32.totalorder %v4117_v44, 644245094 }
 0x256   :  { %8778 = vmatprep.subr.bf16.mxu1 %v12339_v51  ;;  %v12376_v51 = vld [vmem:[#allocation7 + $0x7f0] ss:$40 sps:$4 sm:$0xff]   ;;  %vm13950_vm12 = vmpackc.low %vm4127_vm10, %vm4127_vm10  ;;  %v12474_v40 = vld [vmem:[#allocation10 + $0xbe4] ss:$40 sps:$4 sm:$0xff]  }
 0x257   :  { %v12409_v44 = vld [vmem:[#allocation7 + $0xac0] ss:$40 sps:$4 sm:$0xff]  }
 0x258   :  { %3820 = vmatpush1.bf16.msra.mxu0 %v12334_v52  ;;  %v12379_v52 = vld [vmem:[#allocation10 + $0x960] ss:$40 sps:$4 sm:$0xff]  }
 0x259   :  { %8779 = vmatpush1.bf16.msra.mxu1 %v12337_v53  ;;  %3821 = vmatprep.subr.bf16.mxu0 %v12342_v55  ;;  %v12384_v53 = vld [vmem:[#allocation7 + $0x844] ss:$40 sps:$4 sm:$0xff]  }
 0x25a   :  { %8780 = vmatprep.subr.bf16.mxu1 %v12345_v57  ;;  %v12387_v55 = vld [vmem:[#allocation10 + $0x9b4] ss:$40 sps:$4 sm:$0xff]   ;;  %v3990_v57 = vsel %vm3940_vm11, %v13900_v49, %v10549_v48 }
 0x25b   :  { %v4137_v0 = vmul.f32 1.4285715, %v3990_v57  ;;  %v12477_v48 = vld [vmem:[#allocation10 + $0xc34] ss:$40 sps:$4 sm:$0xff]  }
 0x25c   :  { %3822 = vmatpush1.bf16.msra.mxu0 %v12340_v6  ;;  %v12385_v6 = vld [vmem:[#allocation10 + $0x9b0] ss:$40 sps:$4 sm:$0xff]  }
 0x25d   :  { %8781 = vmatpush1.bf16.msra.mxu1 %v12343_v62  ;;  %3823 = vmatprep.subr.bf16.mxu0 %v12348_v63  ;;  %v12390_v62 = vld [vmem:[#allocation7 + $0x894] ss:$40 sps:$4 sm:$0xff]   ;;  %v13954_v49 = vpack.c.bf16 %v4137_v0, %v4137_v0  ;;  %v12417_v57 = vld [vmem:[#allocation7 + $0xb64] ss:$40 sps:$4 sm:$0xff]  }
 0x25e   :  { %8782 = vmatprep.subr.bf16.mxu1 %v12351_v22  ;;  %v12441_v22 = vld [vmem:[#allocation10 + $0xa04] ss:$40 sps:$4 sm:$0xff]  }
 0x25f   :  { %v12486_v0 = vld [vmem:[#allocation10 + $0xd24] ss:$40 sps:$4 sm:$0xff]  }
 0x260   :  { %3824 = vmatpush1.bf16.msra.mxu0 %v12346_v3  ;;  %v12393_v3 = vld [vmem:[#allocation7 + $0x8e4] ss:$40 sps:$4 sm:$0xff]  }
 0x261   :  { %8783 = vmatpush1.bf16.msra.mxu1 %v12349_v33  ;;  %3825 = vmatprep.subr.bf16.mxu0 %v12354_v4  ;;  %v12439_v33 = vld [vmem:[#allocation10 + $0xa00] ss:$40 sps:$4 sm:$0xff]   ;;  %v12447_v4 = vld [vmem:[#allocation10 + $0xa54] ss:$40 sps:$4 sm:$0xff]  }
 0x262   :  { %8784 = vmatprep.subr.bf16.mxu1 %v12357_v5  ;;  %v12391_v5 = vld [vmem:[#allocation7 + $0x8e0] ss:$40 sps:$4 sm:$0xff]  }
 0x263   :  { %v13350_v63 = vld [vmem:[#allocation10 + $0xb0c] ss:$40 sps:$4 sm:$0xff]  }
 0x264   :  { %3826 = vmatpush1.bf16.msra.mxu0 %v12352_v10  ;;  %v12453_v10 = vld [vmem:[#allocation10 + $0xaa4] ss:$40 sps:$4 sm:$0xff]  }
 0x265   :  { %8785 = vmatpush1.bf16.msra.mxu1 %v12355_v11  ;;  %3827 = vmatprep.subr.bf16.mxu0 %v12360_v14  ;;  %v12394_v11 = vld [vmem:[#allocation7 + $0x930] ss:$40 sps:$4 sm:$0xff]  }
 0x266   :  { %8786 = vmatprep.subr.bf16.mxu1 %v12363_v19  ;;  %v12451_v14 = vld [vmem:[#allocation10 + $0xaa0] ss:$40 sps:$4 sm:$0xff]  }
 0x267   :  { %v12399_v19 = vld [vmem:[#allocation7 + $0x984] ss:$40 sps:$4 sm:$0xff]  }
 0x268   :  { %3828 = vmatpush1.bf16.msra.mxu0 %v12358_v60  ;;  %v12397_v60 = vld [vmem:[#allocation7 + $0x980] ss:$40 sps:$4 sm:$0xff]  }
 0x269   :  { %8787 = vmatpush1.bf16.msra.mxu1 %v12361_v24  ;;  %3829 = vmatprep.subr.bf16.mxu0 %v12366_v25  ;;  %v12457_v24 = vld [vmem:[#allocation10 + $0xaf0] ss:$40 sps:$4 sm:$0xff]  }
 0x26a   :  { %8788 = vmatprep.subr.bf16.mxu1 %v12369_v15  ;;  %v12402_v25 = vld [vmem:[#allocation7 + $0x9d4] ss:$40 sps:$4 sm:$0xff]  }
 0x26b   :  { %v12465_v15 = vld [vmem:[#allocation10 + $0xb44] ss:$40 sps:$4 sm:$0xff]  }
 0x26c   :  { %3830 = vmatpush1.bf16.msra.mxu0 %v12364_v30  ;;  %v12463_v30 = vld [vmem:[#allocation10 + $0xb40] ss:$40 sps:$4 sm:$0xff]  }
 0x26d   :  { %8789 = vmatpush1.bf16.msra.mxu1 %v12367_v16  ;;  %3831 = vmatprep.subr.bf16.mxu0 %v12372_v34  ;;  %v12405_v16 = vld [vmem:[#allocation7 + $0xa24] ss:$40 sps:$4 sm:$0xff]  }
 0x26e   :  { %8790 = vmatprep.subr.bf16.mxu1 %v12375_v35  ;;  %v12471_v34 = vld [vmem:[#allocation10 + $0xb94] ss:$40 sps:$4 sm:$0xff]   ;;  %v12403_v35 = vld [vmem:[#allocation7 + $0xa20] ss:$40 sps:$4 sm:$0xff]  }
 0x270   :  { %3832 = vmatpush1.bf16.msra.mxu0 %v12370_v37  ;;  %v12469_v37 = vld [vmem:[#allocation10 + $0xb90] ss:$40 sps:$4 sm:$0xff]  }
 0x271   :  { %8791 = vmatpush1.bf16.msra.mxu1 %v12373_v38  ;;  %3833 = vmatprep.subr.bf16.mxu0 %v12378_v41  ;;  %v12406_v38 = vld [vmem:[#allocation7 + $0xa70] ss:$40 sps:$4 sm:$0xff]   ;;  %v12411_v41 = vld [vmem:[#allocation7 + $0xac4] ss:$40 sps:$4 sm:$0xff]  }
 0x272   :  { %8792 = vmatprep.subr.bf16.mxu1 %v12381_v42  ;;  %v12472_v42 = vld [vmem:[#allocation10 + $0xbe0] ss:$40 sps:$4 sm:$0xff]  }
 0x274   :  { %3834 = vmatpush1.bf16.msra.mxu0 %v12376_v51  ;;  %v12414_v51 = vld [vmem:[#allocation7 + $0xb14] ss:$40 sps:$4 sm:$0xff]  }
 0x275   :  { %8793 = vmatpush1.bf16.msra.mxu1 %v12379_v52  ;;  %3835 = vmatprep.subr.bf16.mxu0 %v12384_v53  ;;  %v12475_v52 = vld [vmem:[#allocation10 + $0xc30] ss:$40 sps:$4 sm:$0xff]  }
 0x276   :  { %8794 = vmatprep.subr.bf16.mxu1 %v12387_v55  ;;  %v12412_v53 = vld [vmem:[#allocation7 + $0xb10] ss:$40 sps:$4 sm:$0xff]   ;;  %v12480_v55 = vld [vmem:[#allocation10 + $0xc84] ss:$40 sps:$4 sm:$0xff]  }
 0x278   :  { %3836 = vmatpush1.bf16.msra.mxu0 %v12382_v61  ;;  %v12415_v61 = vld [vmem:[#allocation7 + $0xb60] ss:$40 sps:$4 sm:$0xff]  }
 0x279   :  { %8795 = vmatpush1.bf16.msra.mxu1 %v12385_v6  ;;  %3837 = vmatprep.subr.bf16.mxu0 %v12390_v62  ;;  %v12420_v6 = vld [vmem:[#allocation7 + $0xbb4] ss:$40 sps:$4 sm:$0xff]  }
 0x27a   :  { %8805 = vmatprep.subr.bf16.mxu1 %v12441_v22  ;;  %v12481_v62 = vld [vmem:[#allocation10 + $0xcd0] ss:$40 sps:$4 sm:$0xff]  }
 0x27b   :  { %v12418_v22 = vld [vmem:[#allocation7 + $0xbb0] ss:$40 sps:$4 sm:$0xff]  }
 0x27c   :  { %11318 = vmatmul.mubr.msk.bf16.vlgmr.msra.gmra.mrb[8].mxu1 %vm13950_vm12, %v13954_v49  ;;  %3838 = vmatpush1.bf16.msra.mxu0 %v12388_v1  ;;  %v12423_v1 = vld [vmem:[#allocation7 + $0xc04] ss:$40 sps:$4 sm:$0xff]  }
 0x27d   :  { %8806 = vmatpush1.bf16.msra.mxu1 %v12439_v33  ;;  %3839 = vmatprep.subr.bf16.mxu0 %v12393_v3  ;;  %v12484_v3 = vld [vmem:[#allocation10 + $0xd20] ss:$40 sps:$4 sm:$0xff]  }
 0x27e   :  { %8807 = vmatprep.subr.bf16.mxu1 %v12447_v4  ;;  %v12421_v33 = vld [vmem:[#allocation7 + $0xc00] ss:$40 sps:$4 sm:$0xff]   ;;  %v12489_v4 = vld [vmem:[#allocation10 + $0xd74] ss:$40 sps:$4 sm:$0xff]  }
 0x280   :  { %3840 = vmatpush1.bf16.msra.mxu0 %v12391_v5  ;;  %v12426_v5 = vld [vmem:[#allocation7 + $0xc54] ss:$40 sps:$4 sm:$0xff]  }
 0x281   :  { %8808 = vmatpush1.bf16.msra.mxu1 %v12445_v9  ;;  %3841 = vmatprep.subr.bf16.mxu0 %v12396_v7  ;;  %v12487_v7 = vld [vmem:[#allocation10 + $0xd70] ss:$40 sps:$4 sm:$0xff]  }
 0x282   :  { %8809 = vmatprep.subr.bf16.mxu1 %v12453_v10  ;;  %v12424_v9 = vld [vmem:[#allocation7 + $0xc50] ss:$40 sps:$4 sm:$0xff]   ;;  %v12492_v10 = vld [vmem:[#allocation10 + $0xdc4] ss:$40 sps:$4 sm:$0xff]  }
 0x284   :  { %3842 = vmatpush1.bf16.msra.mxu0 %v12394_v11  ;;  %v12429_v11 = vld [vmem:[#allocation7 + $0xca4] ss:$40 sps:$4 sm:$0xff]  }
 0x285   :  { %8810 = vmatpush1.bf16.msra.mxu1 %v12451_v14  ;;  %3843 = vmatprep.subr.bf16.mxu0 %v12399_v19  ;;  %v12490_v14 = vld [vmem:[#allocation10 + $0xdc0] ss:$40 sps:$4 sm:$0xff]  }
 0x286   :  { %8811 = vmatprep.subr.bf16.mxu1 %v12459_v20  ;;  %v12427_v19 = vld [vmem:[#allocation7 + $0xca0] ss:$40 sps:$4 sm:$0xff]   ;;  %v12495_v20 = vld [vmem:[#allocation10 + $0xe14] ss:$40 sps:$4 sm:$0xff]  }
 0x288   :  { %3844 = vmatpush1.bf16.msra.mxu0 %v12397_v60  ;;  %v12432_v60 = vld [vmem:[#allocation7 + $0xcf4] ss:$40 sps:$4 sm:$0xff]  }
 0x289   :  { %8812 = vmatpush1.bf16.msra.mxu1 %v12457_v24  ;;  %3845 = vmatprep.subr.bf16.mxu0 %v12402_v25  ;;  %v12493_v24 = vld [vmem:[#allocation10 + $0xe10] ss:$40 sps:$4 sm:$0xff]  }
 0x28a   :  { %8813 = vmatprep.subr.bf16.mxu1 %v12465_v15  ;;  %v12430_v25 = vld [vmem:[#allocation7 + $0xcf0] ss:$40 sps:$4 sm:$0xff]   ;;  %v12498_v15 = vld [vmem:[#allocation10 + $0xe64] ss:$40 sps:$4 sm:$0xff]  }
 0x28c   :  { %3846 = vmatpush1.bf16.msra.mxu0 %v12400_v27  ;;  %v12435_v27 = vld [vmem:[#allocation7 + $0xd44] ss:$40 sps:$4 sm:$0xff]  }
 0x28d   :  { %8814 = vmatpush1.bf16.msra.mxu1 %v12463_v30  ;;  %3856 = vmatprep.subr.bf16.mxu0 %v12405_v16  ;;  %v12496_v30 = vld [vmem:[#allocation10 + $0xe60] ss:$40 sps:$4 sm:$0xff]  }
 0x28e   :  { %8815 = vmatprep.subr.bf16.mxu1 %v12471_v34  ;;  %v12433_v16 = vld [vmem:[#allocation7 + $0xd40] ss:$40 sps:$4 sm:$0xff]   ;;  %v12501_v34 = vld [vmem:[#allocation10 + $0xeb4] ss:$40 sps:$4 sm:$0xff]  }
 0x28f   :  { %3848 = vmatmul.mubr.bf16.vlgmr.msra.gmra.mrb[12].mxu0 %v13807_v13  ;;  %v12478_v13 = vld [vmem:[#allocation10 + $0xc80] ss:$40 sps:$4 sm:$0xff]  }
 0x290   :  { %3857 = vmatpush1.bf16.msra.mxu0 %v12403_v35  ;;  %3888 = vmatprep.mubr.bf16.mxu0 %v13809_v18  ;;  %v12483_v18 = vld [vmem:[#allocation10 + $0xcd4] ss:$40 sps:$4 sm:$0xff]  }
 0x291   :  { %3858 = vmatprep.subr.bf16.mxu0 %v12408_v36  ;;  %8816 = vmatpush1.bf16.msra.mxu1 %v12469_v37  ;;  %v12438_v35 = vld [vmem:[#allocation7 + $0xd94] ss:$40 sps:$4 sm:$0xff]   ;;  %v12436_v37 = vld [vmem:[#allocation7 + $0xd90] ss:$40 sps:$4 sm:$0xff]  }
 0x292   :  { %8817 = vmatprep.subr.bf16.mxu1 %v12474_v40  ;;  %v12499_v36 = vld [vmem:[#allocation10 + $0xeb0] ss:$40 sps:$4 sm:$0xff]  }
 0x293   :  { %v12444_v40 = vld [vmem:[#allocation7 + $0xde4] ss:$40 sps:$4 sm:$0xff]  }
 0x294   :  { %3859 = vmatpush1.bf16.msra.mxu0 %v12406_v38  ;;  %v12504_v38 = vld [vmem:[#allocation10 + $0xf04] ss:$40 sps:$4 sm:$0xff]  }
 0x295   :  { %3860 = vmatprep.subr.bf16.mxu0 %v12411_v41  ;;  %8818 = vmatpush1.bf16.msra.mxu1 %v12472_v42  ;;  %v12442_v41 = vld [vmem:[#allocation7 + $0xde0] ss:$40 sps:$4 sm:$0xff]   ;;  %v12450_v42 = vld [vmem:[#allocation7 + $0xe34] ss:$40 sps:$4 sm:$0xff]  }
 0x296   :  { %8819 = vmatprep.subr.bf16.mxu1 %v12477_v48  ;;  %v12456_v48 = vld [vmem:[#allocation7 + $0xe84] ss:$40 sps:$4 sm:$0xff]  }
 0x298   :  { %3861 = vmatpush1.bf16.msra.mxu0 %v12409_v44  ;;  %v12448_v44 = vld [vmem:[#allocation7 + $0xe30] ss:$40 sps:$4 sm:$0xff]  }
 0x299   :  { %3862 = vmatprep.subr.bf16.mxu0 %v12414_v51  ;;  %8820 = vmatpush1.bf16.msra.mxu1 %v12475_v52  ;;  %v12454_v51 = vld [vmem:[#allocation7 + $0xe80] ss:$40 sps:$4 sm:$0xff]   ;;  %v12462_v52 = vld [vmem:[#allocation7 + $0xed4] ss:$40 sps:$4 sm:$0xff]  }
 0x29a   :  { %8821 = vmatprep.subr.bf16.mxu1 %v12480_v55  ;;  %v4006_v55 = vadd.s32 640, %v13837_v45 }
 0x29c   :  { %3863 = vmatpush1.bf16.msra.mxu0 %v12412_v53  ;;  %v12460_v53 = vld [vmem:[#allocation7 + $0xed0] ss:$40 sps:$4 sm:$0xff]  }
 0x29d   :  { %3864 = vmatprep.subr.bf16.mxu0 %v12417_v57  ;;  %8822 = vmatpush1.bf16.msra.mxu1 %v12478_v13  ;;  %v4005_v57 = vadd.s32 512, %v13837_v45  ;;  %v12468_v13 = vld [vmem:[#allocation7 + $0xf24] ss:$40 sps:$4 sm:$0xff]  }
 0x29e   :  { %8823 = vmatprep.subr.bf16.mxu1 %v12483_v18  ;;  %v12466_v18 = vld [vmem:[#allocation7 + $0xf20] ss:$40 sps:$4 sm:$0xff]  }
 0x2a0   :  { %3865 = vmatpush1.bf16.msra.mxu0 %v12415_v61  ;;  %v4008_v61 = vadd.s32 896, %v13837_v45 }
 0x2a1   :  { %3866 = vmatprep.subr.bf16.mxu0 %v12420_v6  ;;  %8824 = vmatpush1.bf16.msra.mxu1 %v12481_v62  ;;  %v13965_v6 = vadd.s32 %v13847_v54, %v4006_v55  ;;  %v13968_v62 = vadd.s32 %v13847_v54, %v4005_v57 }
 0x2a2   :  { %8825 = vmatprep.subr.bf16.mxu1 %v12486_v0 }
 0x2a3   :  { %v4030_v0 = vadd.s32 %v13853_v59, %v13965_v6 }
 0x2a4   :  { %3867 = vmatpush1.bf16.msra.mxu0 %v12418_v22  ;;  %v13971_v22 = vadd.s32 %v13847_v54, %v4008_v61 }
 0x2a5   :  { %3868 = vmatprep.subr.bf16.mxu0 %v12423_v1  ;;  %8826 = vmatpush1.bf16.msra.mxu1 %v12484_v3  ;;  %v4029_v1 = vadd.s32 %v13853_v59, %v13968_v62 }
 0x2a6   :  { %8827 = vmatprep.subr.bf16.mxu1 %v12489_v4 }
 0x2a8   :  { %3869 = vmatpush1.bf16.msra.mxu0 %v12421_v33  ;;  %v13980_v33 = vsub.s32 7, %v13839_v50 }
 0x2a9   :  { %3870 = vmatprep.subr.bf16.mxu0 %v12426_v5  ;;  %8828 = vmatpush1.bf16.msra.mxu1 %v12487_v7  ;;  %v4032_v7 = vadd.s32 %v13853_v59, %v13971_v22 }
 0x2aa   :  { %8829 = vmatprep.subr.bf16.mxu1 %v12492_v10  ;;  %v4040_v10 = vshrl.u32 %v4030_v0, 16 }
 0x2ac   :  { %3871 = vmatpush1.bf16.msra.mxu0 %v12424_v9 }
 0x2ad   :  { %3872 = vmatprep.subr.bf16.mxu0 %v12429_v11  ;;  %8830 = vmatpush1.bf16.msra.mxu1 %v12490_v14  ;;  %v4039_v11 = vshrl.u32 %v4029_v1, 16  ;;  %v13986_v14 = vld [vmem:[#allocation9] sm:$0xff] }
 0x2ae   :  { %8831 = vmatprep.subr.bf16.mxu1 %v12495_v20  ;;  %v4042_v20 = vshrl.u32 %v4032_v7, 16 }
 0x2b0   :  { %3873 = vmatpush1.bf16.msra.mxu0 %v12427_v19  ;;  %v645_v19 = vrot.slane %v13986_v14, %v13980_v33 }
 0x2b1   :  { %3874 = vmatprep.subr.bf16.mxu0 %v12432_v60  ;;  %8832 = vmatpush1.bf16.msra.mxu1 %v12493_v24  ;;  %v4050_v60 = vxor.u32 %v4040_v10, %v4030_v0  ;;  %v4049_v24 = vxor.u32 %v4039_v11, %v4029_v1 }
 0x2b2   :  { %8833 = vmatprep.subr.bf16.mxu1 %v12498_v15 }
 0x2b3   :  { %v4060_v15 = vmul.u32 2246822507, %v4050_v60 }
 0x2b4   :  { %3875 = vmatpush1.bf16.msra.mxu0 %v12430_v25  ;;  %v4052_v25 = vxor.u32 %v4042_v20, %v4032_v7 }
 0x2b5   :  { %3876 = vmatprep.subr.bf16.mxu0 %v12435_v27  ;;  %8834 = vmatpush1.bf16.msra.mxu1 %v12496_v30  ;;  %v4059_v27 = vmul.u32 2246822507, %v4049_v24  ;;  %v13993_v30 = vsub.s32 4, %v13839_v50 }
 0x2b6   :  { %8835 = vmatprep.subr.bf16.mxu1 %v12501_v34  ;;  %v4062_v34 = vmul.u32 2246822507, %v4052_v25 }
 0x2b8   :  { %3877 = vmatpush1.bf16.msra.mxu0 %v12433_v16  ;;  %v13996_v16 = vsub.s32 5, %v13839_v50 }
 0x2b9   :  { %3878 = vmatprep.subr.bf16.mxu0 %v12438_v35  ;;  %8836 = vmatpush1.bf16.msra.mxu1 %v12499_v36  ;;  %v4070_v35 = vshrl.u32 %v4060_v15, 13  ;;  %v4069_v36 = vshrl.u32 %v4059_v27, 13 }
 0x2ba   :  { %8846 = vmatprep.subr.bf16.mxu1 %v12504_v38  ;;  %v633_v38 = vrot.slane %v13986_v14, %v13993_v30 }
 0x2bc   :  { %3879 = vmatpush1.bf16.msra.mxu0 %v12436_v37 }
 0x2bd   :  { %3880 = vmatprep.subr.bf16.mxu0 %v12444_v40  ;;  %v637_v40 = vrot.slane %v13986_v14, %v13996_v16 }
 0x2c0   :  { %3881 = vmatpush1.bf16.msra.mxu0 %v12442_v41  ;;  %v4072_v41 = vshrl.u32 %v4062_v34, 13 }
 0x2c1   :  { %3882 = vmatprep.subr.bf16.mxu0 %v12450_v42 }
 0x2c2   :  { %v4082_v55 = vxor.u32 %v4072_v41, %v4062_v34 }
 0x2c4   :  { %3883 = vmatpush1.bf16.msra.mxu0 %v12448_v44  ;;  %v4080_v44 = vxor.u32 %v4070_v35, %v4060_v15 }
 0x2c5   :  { %3884 = vmatprep.subr.bf16.mxu0 %v12456_v48 }
 0x2c8   :  { %3885 = vmatpush1.bf16.msra.mxu0 %v12454_v51 }
 0x2c9   :  { %3886 = vmatprep.subr.bf16.mxu0 %v12462_v52 }
 0x2cc   :  { %3887 = vmatpush1.bf16.msra.mxu0 %v12460_v53 }
 0x2cd   :  { %3897 = vmatprep.subr.bf16.mxu0 %v12468_v13 }
 0x2cf   :  { %v13977_v3 = vpop.f32.mrb[4].mxu1  ;;  %3889 = vmatmul.mubr.bf16.vlgmr.msra.gmra.mrb[12].mxu0 %v13815_v21 }
 0x2d0   :  { %v3769_v4 = vpop.f32.mrb[5].mxu1  ;;  %3898 = vmatpush1.bf16.msra.mxu0 %v12466_v18  ;;  %3929 = vmatprep.mubr.bf16.mxu0 %v13674_v28  ;;  %v4090_v18 = vmul.u32 3266489909, %v4080_v44 }
 0x2d1   :  { %v3771_v5 = vpop.f32.mrb[6].mxu1  ;;  %v11467_v21 = vadd.f32 %v3769_v4, %v645_v19 }
 0x2d2   :  { %v3772_v9 = vpop.f32.mrb[7].mxu1  ;;  %v4092_v5 = vmul.u32 3266489909, %v4082_v55  ;;  %v4100_v7 = vshrl.u32 %v4090_v18, 16 }
 0x2d3   :  { %v3955_v28 = vmin.f32 %v11467_v21, 0.0  ;;  %vm3945_vm13 = vcmp.gt.f32.partialorder %v11467_v21, 0.0 }
 0x2d4   :  { %v4102_v11 = vshrl.u32 %v4092_v5, 16  ;;  %v4110_v19 = vxor.u32 %v4100_v7, %v4090_v18  ;;  %v12508_v18 = vld [vmem:[#allocation10 + $0xfa0] ss:$40 sps:$4 sm:$0xff]  }
 0x2d5   :  { %v3972_v37 = vmul.f32 1.442695, %v3955_v28  ;;  %v12514_v7 = vld [vmem:[#allocation10 + $0x1040] ss:$40 sps:$4 sm:$0xff]  }
 0x2d6   :  { %v4112_v24 = vxor.u32 %v4102_v11, %v4092_v5  ;;  %v4120_v25 = vshrl.u32 %v4110_v19, 1  ;;  %v12516_v5 = vld [vmem:[#allocation10 + $0x1044] ss:$40 sps:$4 sm:$0xff]   ;;  %v12517_v11 = vld [vmem:[#allocation10 + $0x1090] ss:$40 sps:$4 sm:$0xff]  }
 0x2d7   :  { %13491 = vpow2.f32 %v3972_v37 }
 0x2db   :  { %10546 = vmatmul.mubr.msk.bf16.vlgmr.msra.gmra.mrb[12].mxu0 %vm3114_vm0, %v13821_v32  ;;  %v4079_v32 = vxor.u32 %v4069_v36, %v4059_v27  ;;  %v4122_v36 = vshrl.u32 %v4112_v24, 1  ;;  %vm4130_vm0 = vcmp.ge.s32.totalorder %v4120_v25, 644245094  ;;  %v12520_v24 = vld [vmem:[#allocation10 + $0x10e0] ss:$40 sps:$4 sm:$0xff]  }
 0x2dc   :  { %vm14002_vm4 = vmpackc.low %vm4130_vm0, %vm4130_vm0 }
 0x2dd   :  { %v4089_v0 = vmul.u32 3266489909, %v4079_v32  ;;  %vm4132_vm2 = vcmp.ge.s32.totalorder %v4122_v36, 644245094  ;;  %v12528_v36 = vld [vmem:[#allocation10 + $0x1184] ss:$40 sps:$4 sm:$0xff]  }
 0x2de   :  { %vm14016_vm7 = vmpackc.low %vm4132_vm2, %vm4132_vm2  ;;  %v13359_v32 = vld [vmem:[#allocation10 + $0x1654] ss:$40 sps:$4 sm:$0xff]  }
 0x2df   :  { %v4099_v9 = vshrl.u32 %v4089_v0, 16 }
 0x2e1   :  { %v13492_v10 = vpop.eup %13491  ;;  %v4109_v20 = vxor.u32 %v4099_v9, %v4089_v0  ;;  %v12513_v0 = vld [vmem:[#allocation10 + $0xff4] ss:$40 sps:$4 sm:$0xff]  }
 0x2e2   :  { %v3603_v42 = vpop.f32.mrb[8].mxu0  ;;  %v10554_v60 = vadd.f32 -1.0, %v13492_v10  ;;  %v12519_v10 = vld [vmem:[#allocation10 + $0x1094] ss:$40 sps:$4 sm:$0xff]  }
 0x2e3   :  { %v11464_v48 = vadd.f32 %v3603_v42, %v633_v38  ;;  %v3605_v51 = vpop.f32.mrb[9].mxu0  ;;  %v4119_v27 = vshrl.u32 %v4109_v20, 1  ;;  %v14036_v20 = vsub.s32 6, %v13839_v50 }
 0x2e4   :  { %v11465_v52 = vadd.f32 %v3605_v51, %v637_v40  ;;  %v3607_v53 = vpop.f32.mrb[10].mxu0  ;;  %v3995_v28 = vsel %vm3945_vm13, %v11467_v21, %v10554_v60  ;;  %v12502_v21 = vld [vmem:[#allocation10 + $0xf00] ss:$40 sps:$4 sm:$0xff]   ;;  %v12522_v60 = vld [vmem:[#allocation10 + $0x10e4] ss:$40 sps:$4 sm:$0xff]  }
 0x2e5   :  { %v3952_v57 = vmin.f32 %v11464_v48, 0.0  ;;  %v3608_v13 = vpop.f32.mrb[11].mxu0  ;;  %vm3942_vm14 = vcmp.gt.f32.partialorder %v11464_v48, 0.0  ;;  %v4142_v40 = vmul.f32 1.4285715, %v3995_v28 }
 0x2e6   :  { %v3953_v61 = vmin.f32 %v11465_v52, 0.0  ;;  %vm3943_vm15 = vcmp.gt.f32.partialorder %v11465_v52, 0.0  ;;  %vm4129_vm1 = vcmp.ge.s32.totalorder %v4119_v27, 644245094  ;;  %v12505_v13 = vld [vmem:[#allocation10 + $0xf50] ss:$40 sps:$4 sm:$0xff]  }
 0x2e7   :  { %v3966_v1 = vmul.f32 1.442695, %v3952_v57  ;;  %vm14008_vm6 = vmpackc.low %vm4129_vm1, %vm4129_vm1  ;;  %v12507_v57 = vld [vmem:[#allocation10 + $0xf54] ss:$40 sps:$4 sm:$0xff]   ;;  %v12523_v28 = vld [vmem:[#allocation10 + $0x1130] ss:$40 sps:$4 sm:$0xff]  }
 0x2e8   :  { %v3968_v4 = vmul.f32 1.442695, %v3953_v61  ;;  %v12510_v61 = vld [vmem:[#allocation10 + $0xfa4] ss:$40 sps:$4 sm:$0xff]   ;;  %v12525_v27 = vld [vmem:[#allocation10 + $0x1134] ss:$40 sps:$4 sm:$0xff]  }
 0x2e9   :  { %13493 = vpow2.f32 %v3966_v1  ;;  %v12511_v1 = vld [vmem:[#allocation10 + $0xff0] ss:$40 sps:$4 sm:$0xff]   ;;  %vm8719_vm1 = vcmask 392192   ;;  %v13410_v53 = vld [vmem:[#allocation10 + $0xfbc] ss:$40 sps:$4 sm:$0xff]  }
 0x2ea   :  { %13495 = vpow2.f32 %v3968_v4  ;;  %v4007_v4 = vadd.s32 768, %v13837_v45 }
 0x2ec   :  { %v14031_v9 = vadd.s32 %v13847_v54, %v4007_v4  ;;  %v12636_v4 = vld [vmem:[#allocation10 + $0x14a4] ss:$40 sps:$4 sm:$0xff]  }
 0x2ee   :  { %v4031_v19 = vadd.s32 %v13853_v59, %v14031_v9 }
 0x2f0   :  { %v4041_v25 = vshrl.u32 %v4031_v19, 16 }
 0x2f3   :  { %v13494_v15 = vpop.eup %13493 }
 0x2f4   :  { %v13496_v34 = vpop.eup %13495  ;;  %v10551_v35 = vadd.f32 -1.0, %v13494_v15  ;;  %v641_v15 = vrot.slane %v13986_v14, %v14036_v20  ;;  %v12529_v14 = vld [vmem:[#allocation10 + $0x11d0] ss:$40 sps:$4 sm:$0xff]  }
 0x2f5   :  { %v10552_v37 = vadd.f32 -1.0, %v13496_v34  ;;  %v4051_v34 = vxor.u32 %v4041_v25, %v4031_v19  ;;  %v12642_v19 = vld [vmem:[#allocation10 + $0x14f4] ss:$40 sps:$4 sm:$0xff]  }
 0x2f6   :  { %v3992_v38 = vsel %vm3942_vm14, %v11464_v48, %v10551_v35  ;;  %v14012_v48 = vpack.c.bf16 %v4142_v40, %v4142_v40  ;;  %v14041_v35 = vadd.f32 %v13977_v3, %v641_v15  ;;  %v12622_v40 = vld [vmem:[#allocation10 + $0x1400] ss:$40 sps:$4 sm:$0xff]  }
 0x2f7   :  { %v4139_v41 = vmul.f32 1.4285715, %v3992_v38  ;;  %v3993_v42 = vsel %vm3943_vm15, %v11465_v52, %v10552_v37  ;;  %v12526_v37 = vld [vmem:[#allocation10 + $0x1180] ss:$40 sps:$4 sm:$0xff]   ;;  %v4061_v38 = vmul.u32 2246822507, %v4051_v34 }
 0x2f8   :  { %v4140_v44 = vmul.f32 1.4285715, %v3993_v42  ;;  %v3954_v42 = vmin.f32 %v14041_v35, 0.0  ;;  %v12646_v15 = vld [vmem:[#allocation10 + $0x1540] ss:$40 sps:$4 sm:$0xff]   ;;  %vm3944_vm8 = vcmp.gt.f32.partialorder %v14041_v35, 0.0 }
 0x2f9   :  { %v14014_v55 = vpack.c.bf16 %v4139_v41, %v4139_v41  ;;  %v12624_v41 = vld [vmem:[#allocation10 + $0x1404] ss:$40 sps:$4 sm:$0xff]  }
 0x2fa   :  { %v14006_v51 = vpack.c.bf16 %v4140_v44, %v4140_v44  ;;  %v12531_v44 = vld [vmem:[#allocation10 + $0x11d4] ss:$40 sps:$4 sm:$0xff]   ;;  %8887 = vmatprep.subr.bf16.mxu0 %v12624_v41  ;;  %v3970_v3 = vmul.f32 1.442695, %v3954_v42  ;;  %v12652_v42 = vld [vmem:[#allocation10 + $0x1590] ss:$40 sps:$4 sm:$0xff]  }
 0x2fb   :  { %8888 = vmatpush1.bf16.msra.mxu0 %v12622_v40  ;;  %v12654_v40 = vld [vmem:[#allocation10 + $0x1594] ss:$40 sps:$4 sm:$0xff]  }
 0x2fc   :  { %11321 = vmatprep.mubr.msk.bf16.mxu1 %vm14002_vm4, %v14006_v51  ;;  %13497 = vpow2.f32 %v3970_v3  ;;  %v12658_v3 = vld [vmem:[#allocation10 + $0x15e0] ss:$40 sps:$4 sm:$0xff]  }
 0x2fd   :  { %11324 = vmatmul.mubr.msk.bf16.vlgmr.msra.gmra.mrb[8].mxu1 %vm14008_vm6, %v14014_v55 }
 0x2fe   :  { %8847 = vmatpush1.bf16.msra.mxu1 %v12502_v21  ;;  %11327 = vmatprep.mubr.msk.bf16.mxu1 %vm14016_vm7, %v14012_v48  ;;  %v4071_v21 = vshrl.u32 %v4061_v38, 13 }
 0x2ff   :  { %8848 = vmatprep.subr.bf16.mxu1 %v12507_v57  ;;  %v12628_v57 = vld [vmem:[#allocation10 + $0x1450] ss:$40 sps:$4 sm:$0xff]  }
 0x302   :  { %8849 = vmatpush1.bf16.msra.mxu1 %v12505_v13  ;;  %v12630_v13 = vld [vmem:[#allocation10 + $0x1454] ss:$40 sps:$4 sm:$0xff]  }
 0x303   :  { %8850 = vmatprep.subr.bf16.mxu1 %v12510_v61  ;;  %v12534_v61 = vld [vmem:[#allocation10 + $0x1224] ss:$40 sps:$4 sm:$0xff]   ;;  %8889 = vmatprep.subr.bf16.mxu0 %v12630_v13 }
 0x304   :  { %8890 = vmatpush1.bf16.msra.mxu0 %v12628_v57  ;;  %v12660_v57 = vld [vmem:[#allocation10 + $0x15e4] ss:$40 sps:$4 sm:$0xff]  }
 0x305   :  { %8891 = vmatprep.subr.bf16.mxu0 %v12636_v4  ;;  %v12664_v4 = vld [vmem:[#allocation10 + $0x1630] ss:$40 sps:$4 sm:$0xff]  }
 0x306   :  { %8851 = vmatpush1.bf16.msra.mxu1 %v12508_v18  ;;  %v12532_v18 = vld [vmem:[#allocation10 + $0x1220] ss:$40 sps:$4 sm:$0xff]   ;;  %v13498_v34 = vpop.eup %13497 }
 0x307   :  { %8852 = vmatprep.subr.bf16.mxu1 %v12513_v0  ;;  %v4081_v0 = vxor.u32 %v4071_v21, %v4061_v38  ;;  %v12546_v38 = vld [vmem:[#allocation10 + $0x1364] ss:$40 sps:$4 sm:$0xff]   ;;  %v10553_v41 = vadd.f32 -1.0, %v13498_v34  ;;  %v12549_v21 = vld [vmem:[#allocation10 + $0x13b4] ss:$40 sps:$4 sm:$0xff]  }
 0x308   :  { %v12684_v34 = vld [vmem:[#allocation10 + $0x1724] ss:$40 sps:$4 sm:$0xff]  }
 0x309   :  { %v3994_v13 = vsel %vm3944_vm8, %v14041_v35, %v10553_v41  ;;  %v12562_v41 = vld [vmem:[#allocation10 + $0x150] ss:$40 sps:$4 sm:$0xff]  }
 0x30a   :  { %8853 = vmatpush1.bf16.msra.mxu1 %v12511_v1  ;;  %v12634_v1 = vld [vmem:[#allocation10 + $0x14a0] ss:$40 sps:$4 sm:$0xff]  }
 0x30b   :  { %8854 = vmatprep.subr.bf16.mxu1 %v12516_v5  ;;  %v12537_v5 = vld [vmem:[#allocation10 + $0x1274] ss:$40 sps:$4 sm:$0xff]   ;;  %8892 = vmatpush1.bf16.msra.mxu0 %v12634_v1 }
 0x30c   :  { %8893 = vmatprep.subr.bf16.mxu0 %v12642_v19  ;;  %v12666_v1 = vld [vmem:[#allocation10 + $0x1634] ss:$40 sps:$4 sm:$0xff]   ;;  %v12670_v19 = vld [vmem:[#allocation10 + $0x1680] ss:$40 sps:$4 sm:$0xff]  }
 0x30e   :  { %8855 = vmatpush1.bf16.msra.mxu1 %v12514_v7  ;;  %v12535_v7 = vld [vmem:[#allocation10 + $0x1270] ss:$40 sps:$4 sm:$0xff]  }
 0x30f   :  { %8856 = vmatprep.subr.bf16.mxu1 %v12519_v10  ;;  %v4091_v10 = vmul.u32 3266489909, %v4081_v0  ;;  %v12552_v0 = vld [vmem:[#allocation10 + $0x14] ss:$40 sps:$4 sm:$0xff]  }
 0x311   :  { %v4101_v25 = vshrl.u32 %v4091_v10, 16 }
 0x312   :  { %8857 = vmatpush1.bf16.msra.mxu1 %v12517_v11  ;;  %v12640_v11 = vld [vmem:[#allocation10 + $0x14f0] ss:$40 sps:$4 sm:$0xff]  }
 0x313   :  { %8858 = vmatprep.subr.bf16.mxu1 %v12522_v60  ;;  %v12540_v60 = vld [vmem:[#allocation10 + $0x12c4] ss:$40 sps:$4 sm:$0xff]   ;;  %8894 = vmatpush1.bf16.msra.mxu0 %v12640_v11 }
 0x314   :  { %v12672_v11 = vld [vmem:[#allocation10 + $0x1684] ss:$40 sps:$4 sm:$0xff]  }
 0x316   :  { %8859 = vmatpush1.bf16.msra.mxu1 %v12520_v24  ;;  %v12538_v24 = vld [vmem:[#allocation10 + $0x12c0] ss:$40 sps:$4 sm:$0xff]  }
 0x317   :  { %8860 = vmatprep.subr.bf16.mxu1 %v12525_v27  ;;  %v12648_v27 = vld [vmem:[#allocation10 + $0x1544] ss:$40 sps:$4 sm:$0xff]  }
 0x318   :  { %8895 = vmatprep.subr.bf16.mxu0 %v12648_v27  ;;  %v12556_v27 = vld [vmem:[#allocation10 + $0xb0] ss:$40 sps:$4 sm:$0xff]  }
 0x319   :  { %8896 = vmatpush1.bf16.msra.mxu0 %v12646_v15  ;;  %v12676_v15 = vld [vmem:[#allocation10 + $0x16d0] ss:$40 sps:$4 sm:$0xff]  }
 0x31a   :  { %8861 = vmatpush1.bf16.msra.mxu1 %v12523_v28  ;;  %v12543_v28 = vld [vmem:[#allocation10 + $0x1314] ss:$40 sps:$4 sm:$0xff]   ;;  %8897 = vmatprep.subr.bf16.mxu0 %v12654_v40 }
 0x31b   :  { %8862 = vmatprep.subr.bf16.mxu1 %v12528_v36  ;;  %v12541_v36 = vld [vmem:[#allocation10 + $0x1310] ss:$40 sps:$4 sm:$0xff]   ;;  %v12690_v40 = vld [vmem:[#allocation10 + $0xc] ss:$40 sps:$4 sm:$0xff]  }
 0x31d   :  { %8898 = vmatpush1.bf16.msra.mxu0 %v12652_v42  ;;  %v12567_v42 = vld [vmem:[#allocation10 + $0x1a4] ss:$40 sps:$4 sm:$0xff]  }
 0x31e   :  { %8863 = vmatpush1.bf16.msra.mxu1 %v12526_v37  ;;  %v4111_v37 = vxor.u32 %v4101_v25, %v4091_v10  ;;  %8899 = vmatprep.subr.bf16.mxu0 %v12660_v57  ;;  %v12555_v10 = vld [vmem:[#allocation10 + $0x64] ss:$40 sps:$4 sm:$0xff]   ;;  %v12678_v25 = vld [vmem:[#allocation10 + $0x16d4] ss:$40 sps:$4 sm:$0xff]  }
 0x31f   :  { %8864 = vmatprep.subr.bf16.mxu1 %v12531_v44  ;;  %v12544_v44 = vld [vmem:[#allocation10 + $0x1360] ss:$40 sps:$4 sm:$0xff]   ;;  %v12573_v57 = vld [vmem:[#allocation10 + $0x244] ss:$40 sps:$4 sm:$0xff]  }
 0x321   :  { %8900 = vmatpush1.bf16.msra.mxu0 %v12658_v3  ;;  %v12576_v3 = vld [vmem:[#allocation10 + $0x294] ss:$40 sps:$4 sm:$0xff]  }
 0x322   :  { %8865 = vmatpush1.bf16.msra.mxu1 %v12529_v14  ;;  %v4121_v14 = vshrl.u32 %v4111_v37, 1  ;;  %8901 = vmatprep.subr.bf16.mxu0 %v12666_v1  ;;  %v12559_v37 = vld [vmem:[#allocation10 + $0x100] ss:$40 sps:$4 sm:$0xff]   ;;  %v12582_v1 = vld [vmem:[#allocation10 + $0x334] ss:$40 sps:$4 sm:$0xff]  }
 0x323   :  { %8866 = vmatprep.subr.bf16.mxu1 %v12534_v61  ;;  %v12547_v61 = vld [vmem:[#allocation10 + $0x13b0] ss:$40 sps:$4 sm:$0xff]  }
 0x324   :  { %vm4131_vm10 = vcmp.ge.s32.totalorder %v4121_v14, 644245094  ;;  %v12570_v14 = vld [vmem:[#allocation10 + $0x1f4] ss:$40 sps:$4 sm:$0xff]  }
 0x325   :  { %vm14046_vm11 = vmpackc.low %vm4131_vm10, %vm4131_vm10  ;;  %8902 = vmatpush1.bf16.msra.mxu0 %v12664_v4  ;;  %v12580_v4 = vld [vmem:[#allocation10 + $0x330] ss:$40 sps:$4 sm:$0xff]  }
 0x326   :  { %8867 = vmatpush1.bf16.msra.mxu1 %v12532_v18  ;;  %v4141_v18 = vmul.f32 1.4285715, %v3994_v13  ;;  %8903 = vmatprep.subr.bf16.mxu0 %v12672_v11  ;;  %v12571_v13 = vld [vmem:[#allocation10 + $0x240] ss:$40 sps:$4 sm:$0xff]   ;;  %v12588_v11 = vld [vmem:[#allocation10 + $0x3d4] ss:$40 sps:$4 sm:$0xff]  }
 0x327   :  { %8868 = vmatprep.subr.bf16.mxu1 %v12537_v5  ;;  %v13467_v5 = vld [vmem:[#allocation10 + $0x15ac] ss:$40 sps:$4 sm:$0xff]  }
 0x328   :  { %v14050_v35 = vpack.c.bf16 %v4141_v18, %v4141_v18  ;;  %v12579_v18 = vld [vmem:[#allocation10 + $0x2e4] ss:$40 sps:$4 sm:$0xff]  }
 0x329   :  { %8904 = vmatpush1.bf16.msra.mxu0 %v12670_v19  ;;  %v12586_v19 = vld [vmem:[#allocation10 + $0x3d0] ss:$40 sps:$4 sm:$0xff]  }
 0x32a   :  { %8869 = vmatpush1.bf16.msra.mxu1 %v12535_v7  ;;  %v12550_v7 = vld [vmem:[#allocation10 + $0x10] ss:$40 sps:$4 sm:$0xff]   ;;  %8905 = vmatprep.subr.bf16.mxu0 %v12678_v25  ;;  %v12594_v25 = vld [vmem:[#allocation10 + $0x474] ss:$40 sps:$4 sm:$0xff]  }
 0x32b   :  { %8870 = vmatprep.subr.bf16.mxu1 %v12540_v60  ;;  %v12553_v60 = vld [vmem:[#allocation10 + $0x60] ss:$40 sps:$4 sm:$0xff]  }
 0x32d   :  { %8906 = vmatpush1.bf16.msra.mxu0 %v12676_v15  ;;  %v12592_v15 = vld [vmem:[#allocation10 + $0x470] ss:$40 sps:$4 sm:$0xff]  }
 0x32e   :  { %8871 = vmatpush1.bf16.msra.mxu1 %v12538_v24  ;;  %v12558_v24 = vld [vmem:[#allocation10 + $0xb4] ss:$40 sps:$4 sm:$0xff]   ;;  %8907 = vmatprep.subr.bf16.mxu0 %v12684_v34 }
 0x32f   :  { %8872 = vmatprep.subr.bf16.mxu1 %v12543_v28  ;;  %v12561_v28 = vld [vmem:[#allocation10 + $0x104] ss:$40 sps:$4 sm:$0xff]   ;;  %v12600_v34 = vld [vmem:[#allocation10 + $0x514] ss:$40 sps:$4 sm:$0xff]  }
 0x332   :  { %8873 = vmatpush1.bf16.msra.mxu1 %v12541_v36  ;;  %v12682_v36 = vld [vmem:[#allocation10 + $0x1720] ss:$40 sps:$4 sm:$0xff]  }
 0x333   :  { %8874 = vmatprep.subr.bf16.mxu1 %v12546_v38  ;;  %v12564_v38 = vld [vmem:[#allocation10 + $0x154] ss:$40 sps:$4 sm:$0xff]   ;;  %8908 = vmatpush1.bf16.msra.mxu0 %v12682_v36  ;;  %v12598_v36 = vld [vmem:[#allocation10 + $0x510] ss:$40 sps:$4 sm:$0xff]  }
 0x334   :  { %8928 = vmatprep.subr.bf16.mxu0 %v12690_v40  ;;  %v12606_v40 = vld [vmem:[#allocation10 + $0x5b4] ss:$40 sps:$4 sm:$0xff]  }
 0x336   :  { %8875 = vmatpush1.bf16.msra.mxu1 %v12544_v44  ;;  %v12565_v44 = vld [vmem:[#allocation10 + $0x1a0] ss:$40 sps:$4 sm:$0xff]  }
 0x337   :  { %8876 = vmatprep.subr.bf16.mxu1 %v12549_v21  ;;  %v12568_v21 = vld [vmem:[#allocation10 + $0x1f0] ss:$40 sps:$4 sm:$0xff]  }
 0x33a   :  { %8877 = vmatpush1.bf16.msra.mxu1 %v12547_v61  ;;  %v12574_v61 = vld [vmem:[#allocation10 + $0x290] ss:$40 sps:$4 sm:$0xff]  }
 0x33b   :  { %9133 = vmatprep.subr.bf16.mxu1 %v12552_v0  ;;  %v12577_v0 = vld [vmem:[#allocation10 + $0x2e0] ss:$40 sps:$4 sm:$0xff]  }
 0x33d   :  { %11330 = vmatmul.mubr.msk.bf16.vlgmr.msra.gmra.mrb[8].mxu1 %vm14046_vm11, %v14050_v35 }
 0x33e   :  { %9134 = vmatpush1.bf16.msra.mxu1 %v12550_v7  ;;  %11365 = vmatprep.mubr.msk.bf16.mxu1 %vm13908_vm3, %v13912_v17  ;;  %v12585_v7 = vld [vmem:[#allocation10 + $0x384] ss:$40 sps:$4 sm:$0xff]  }
 0x33f   :  { %9135 = vmatprep.subr.bf16.mxu1 %v12555_v10  ;;  %v12583_v10 = vld [vmem:[#allocation10 + $0x380] ss:$40 sps:$4 sm:$0xff]  }
 0x342   :  { %9136 = vmatpush1.bf16.msra.mxu1 %v12553_v60  ;;  %v12591_v60 = vld [vmem:[#allocation10 + $0x424] ss:$40 sps:$4 sm:$0xff]  }
 0x343   :  { %9137 = vmatprep.subr.bf16.mxu1 %v12558_v24  ;;  %v12589_v24 = vld [vmem:[#allocation10 + $0x420] ss:$40 sps:$4 sm:$0xff]  }
 0x346   :  { %9138 = vmatpush1.bf16.msra.mxu1 %v12556_v27  ;;  %v12597_v27 = vld [vmem:[#allocation10 + $0x4c4] ss:$40 sps:$4 sm:$0xff]  }
 0x347   :  { %9139 = vmatprep.subr.bf16.mxu1 %v12561_v28  ;;  %v12595_v28 = vld [vmem:[#allocation10 + $0x4c0] ss:$40 sps:$4 sm:$0xff]  }
 0x34a   :  { %9140 = vmatpush1.bf16.msra.mxu1 %v12559_v37  ;;  %v12603_v37 = vld [vmem:[#allocation10 + $0x564] ss:$40 sps:$4 sm:$0xff]  }
 0x34b   :  { %9141 = vmatprep.subr.bf16.mxu1 %v12564_v38  ;;  %v12601_v38 = vld [vmem:[#allocation10 + $0x560] ss:$40 sps:$4 sm:$0xff]  }
 0x34e   :  { %9142 = vmatpush1.bf16.msra.mxu1 %v12562_v41  ;;  %v12604_v41 = vld [vmem:[#allocation10 + $0x5b0] ss:$40 sps:$4 sm:$0xff]  }
 0x34f   :  { %9143 = vmatprep.subr.bf16.mxu1 %v12567_v42  ;;  %v12609_v42 = vld [vmem:[#allocation10 + $0x604] ss:$40 sps:$4 sm:$0xff]  }
 0x352   :  { %9144 = vmatpush1.bf16.msra.mxu1 %v12565_v44  ;;  %v12607_v44 = vld [vmem:[#allocation10 + $0x600] ss:$40 sps:$4 sm:$0xff]  }
 0x353   :  { %9145 = vmatprep.subr.bf16.mxu1 %v12570_v14  ;;  %v12612_v14 = vld [vmem:[#allocation10 + $0x654] ss:$40 sps:$4 sm:$0xff]  }
 0x356   :  { %9146 = vmatpush1.bf16.msra.mxu1 %v12568_v21  ;;  %v12610_v21 = vld [vmem:[#allocation10 + $0x650] ss:$40 sps:$4 sm:$0xff]  }
 0x357   :  { %9147 = vmatprep.subr.bf16.mxu1 %v12573_v57  ;;  %v12615_v57 = vld [vmem:[#allocation10 + $0x6a4] ss:$40 sps:$4 sm:$0xff]  }
 0x35a   :  { %9148 = vmatpush1.bf16.msra.mxu1 %v12571_v13  ;;  %v12613_v13 = vld [vmem:[#allocation10 + $0x6a0] ss:$40 sps:$4 sm:$0xff]  }
 0x35b   :  { %9149 = vmatprep.subr.bf16.mxu1 %v12576_v3  ;;  %v12618_v3 = vld [vmem:[#allocation10 + $0x6f4] ss:$40 sps:$4 sm:$0xff]  }
 0x35e   :  { %9150 = vmatpush1.bf16.msra.mxu1 %v12574_v61  ;;  %v12616_v61 = vld [vmem:[#allocation10 + $0x6f0] ss:$40 sps:$4 sm:$0xff]  }
 0x35f   :  { %9151 = vmatprep.subr.bf16.mxu1 %v12579_v18  ;;  %v12621_v18 = vld [vmem:[#allocation10 + $0x744] ss:$40 sps:$4 sm:$0xff]  }
 0x362   :  { %9152 = vmatpush1.bf16.msra.mxu1 %v12577_v0  ;;  %v4010_v0 = vadd.s32 1152, %v13837_v45 }
 0x363   :  { %9153 = vmatprep.subr.bf16.mxu1 %v12582_v1  ;;  %v4009_v1 = vadd.s32 1024, %v13837_v45 }
 0x366   :  { %9154 = vmatpush1.bf16.msra.mxu1 %v12580_v4  ;;  %v12619_v4 = vld [vmem:[#allocation10 + $0x740] ss:$40 sps:$4 sm:$0xff]  }
 0x367   :  { %9155 = vmatprep.subr.bf16.mxu1 %v12585_v7  ;;  %v12627_v7 = vld [vmem:[#allocation10 + $0x794] ss:$40 sps:$4 sm:$0xff]  }
 0x36a   :  { %9156 = vmatpush1.bf16.msra.mxu1 %v12583_v10  ;;  %v14067_v10 = vadd.s32 %v13847_v54, %v4010_v0  ;;  %v12655_v0 = vld [vmem:[#allocation10 + $0x920] ss:$40 sps:$4 sm:$0xff]  }
 0x36b   :  { %9157 = vmatprep.subr.bf16.mxu1 %v12588_v11  ;;  %v14070_v11 = vadd.s32 %v13847_v54, %v4009_v1  ;;  %v12645_v54 = vld [vmem:[#allocation10 + $0x884] ss:$40 sps:$4 sm:$0xff]  }
 0x36e   :  { %9158 = vmatpush1.bf16.msra.mxu1 %v12586_v19  ;;  %v12625_v19 = vld [vmem:[#allocation10 + $0x790] ss:$40 sps:$4 sm:$0xff]  }
 0x36f   :  { %9159 = vmatprep.subr.bf16.mxu1 %v12591_v60  ;;  %v12633_v60 = vld [vmem:[#allocation10 + $0x7e4] ss:$40 sps:$4 sm:$0xff]  }
 0x372   :  { %9160 = vmatpush1.bf16.msra.mxu1 %v12589_v24  ;;  %v4034_v24 = vadd.s32 %v13853_v59, %v14067_v10 }
 0x373   :  { %9161 = vmatprep.subr.bf16.mxu1 %v12594_v25  ;;  %v4033_v25 = vadd.s32 %v13853_v59, %v14070_v11  ;;  %v12649_v59 = vld [vmem:[#allocation10 + $0x8d0] ss:$40 sps:$4 sm:$0xff]  }
 0x376   :  { %9162 = vmatpush1.bf16.msra.mxu1 %v12592_v15  ;;  %v12631_v15 = vld [vmem:[#allocation10 + $0x7e0] ss:$40 sps:$4 sm:$0xff]  }
 0x377   :  { %9163 = vmatprep.subr.bf16.mxu1 %v12597_v27  ;;  %v12639_v27 = vld [vmem:[#allocation10 + $0x834] ss:$40 sps:$4 sm:$0xff]  }
 0x37a   :  { %9164 = vmatpush1.bf16.msra.mxu1 %v12595_v28  ;;  %v4044_v28 = vshrl.u32 %v4034_v24, 16 }
 0x37b   :  { %9174 = vmatprep.subr.bf16.mxu1 %v12600_v34  ;;  %v4043_v34 = vshrl.u32 %v4033_v25, 16 }
 0x37d   :  { %11368 = vmatmul.mubr.msk.bf16.vlgmr.msra.gmra.mrb[12].mxu1 %vm13917_vm5, %v13929_v2 }
 0x37e   :  { %9175 = vmatpush1.bf16.msra.mxu1 %v12598_v36  ;;  %11371 = vmatprep.mubr.msk.bf16.mxu1 %vm13925_vm9, %v13931_v29  ;;  %v12637_v36 = vld [vmem:[#allocation10 + $0x830] ss:$40 sps:$4 sm:$0xff]  }
 0x37f   :  { %9176 = vmatprep.subr.bf16.mxu1 %v12603_v37  ;;  %v4054_v37 = vxor.u32 %v4044_v28, %v4034_v24 }
 0x382   :  { %9177 = vmatpush1.bf16.msra.mxu1 %v12601_v38  ;;  %v4053_v38 = vxor.u32 %v4043_v34, %v4033_v25  ;;  %v12661_v34 = vld [vmem:[#allocation10 + $0x970] ss:$40 sps:$4 sm:$0xff]  }
 0x383   :  { %9178 = vmatprep.subr.bf16.mxu1 %v12606_v40  ;;  %v12643_v40 = vld [vmem:[#allocation10 + $0x880] ss:$40 sps:$4 sm:$0xff]  }
 0x386   :  { %9179 = vmatpush1.bf16.msra.mxu1 %v12604_v41  ;;  %v12651_v41 = vld [vmem:[#allocation10 + $0x8d4] ss:$40 sps:$4 sm:$0xff]  }
 0x387   :  { %9180 = vmatprep.subr.bf16.mxu1 %v12609_v42  ;;  %v4064_v42 = vmul.u32 2246822507, %v4054_v37  ;;  %v12669_v37 = vld [vmem:[#allocation10 + $0x9c4] ss:$40 sps:$4 sm:$0xff]  }
 0x38a   :  { %9181 = vmatpush1.bf16.msra.mxu1 %v12607_v44  ;;  %v611_v44 = vld [vmem:[#allocation9 + $0x8] sm:$0x3] }
 0x38b   :  { %9182 = vmatprep.subr.bf16.mxu1 %v12612_v14  ;;  %v4063_v14 = vmul.u32 2246822507, %v4053_v38 }
 0x38e   :  { %9183 = vmatpush1.bf16.msra.mxu1 %v12610_v21  ;;  %v649_v21 = vrot.slane %v611_v44, %v13886_v47 }
 0x38f   :  { %9184 = vmatprep.subr.bf16.mxu1 %v12615_v57  ;;  %v4074_v57 = vshrl.u32 %v4064_v42, 13 }
 0x392   :  { %9185 = vmatpush1.bf16.msra.mxu1 %v12613_v13  ;;  %v12657_v13 = vld [vmem:[#allocation10 + $0x924] ss:$40 sps:$4 sm:$0xff]  }
 0x393   :  { %9186 = vmatprep.subr.bf16.mxu1 %v12618_v3  ;;  %v653_v3 = vrot.slane %v611_v44, %v13874_v31  ;;  %v12675_v44 = vld [vmem:[#allocation10 + $0xa14] ss:$40 sps:$4 sm:$0xff]  }
 0x396   :  { %9187 = vmatpush1.bf16.msra.mxu1 %v12616_v61  ;;  %v4073_v61 = vshrl.u32 %v4063_v14, 13 }
 0x397   :  { %9188 = vmatprep.subr.bf16.mxu1 %v12621_v18 }
 0x398   :  { %v4083_v25 = vxor.u32 %v4073_v61, %v4063_v14  ;;  %v12673_v14 = vld [vmem:[#allocation10 + $0xa10] ss:$40 sps:$4 sm:$0xff]  }
 0x39a   :  { %9189 = vmatpush1.bf16.msra.mxu1 %v12619_v4 }
 0x39b   :  { %9190 = vmatprep.subr.bf16.mxu1 %v12627_v7  ;;  %v4084_v7 = vxor.u32 %v4074_v57, %v4064_v42  ;;  %v12681_v57 = vld [vmem:[#allocation10 + $0xa64] ss:$40 sps:$4 sm:$0xff]  }
 0x39e   :  { %9191 = vmatpush1.bf16.msra.mxu1 %v12625_v19  ;;  %v12663_v19 = vld [vmem:[#allocation10 + $0x974] ss:$40 sps:$4 sm:$0xff]  }
 0x39f   :  { %9192 = vmatprep.subr.bf16.mxu1 %v12633_v60 }
 0x3a2   :  { %9193 = vmatpush1.bf16.msra.mxu1 %v12631_v15 }
 0x3a3   :  { %9194 = vmatprep.subr.bf16.mxu1 %v12639_v27 }
 0x3a6   :  { %9195 = vmatpush1.bf16.msra.mxu1 %v12637_v36 }
 0x3a7   :  { %9196 = vmatprep.subr.bf16.mxu1 %v12645_v54  ;;  %v4094_v54 = vmul.u32 3266489909, %v4084_v7 }
 0x3a9   :  { %v4104_v42 = vshrl.u32 %v4094_v54, 16 }
 0x3aa   :  { %9197 = vmatpush1.bf16.msra.mxu1 %v12643_v40  ;;  %v4093_v40 = vmul.u32 3266489909, %v4083_v25 }
 0x3ab   :  { %9198 = vmatprep.subr.bf16.mxu1 %v12651_v41  ;;  %v12667_v41 = vld [vmem:[#allocation10 + $0x9c0] ss:$40 sps:$4 sm:$0xff]  }
 0x3ae   :  { %v3931_v18 = vpop.f32.mrb[12].mxu0  ;;  %9199 = vmatpush1.bf16.msra.mxu1 %v12649_v59  ;;  %v4103_v59 = vshrl.u32 %v4093_v40, 16 }
 0x3af   :  { %v11468_v1 = vadd.f32 %v3931_v18, %v649_v21  ;;  %v3933_v4 = vpop.f32.mrb[13].mxu0  ;;  %9200 = vmatprep.subr.bf16.mxu1 %v12657_v13  ;;  %v4114_v21 = vxor.u32 %v4104_v42, %v4094_v54  ;;  %v12699_v42 = vld [vmem:[#allocation10 + $0xb54] ss:$40 sps:$4 sm:$0xff]  }
 0x3b0   :  { %v11469_v60 = vadd.f32 %v3933_v4, %v653_v3  ;;  %v3935_v24 = vpop.f32.mrb[14].mxu0  ;;  %v4113_v13 = vxor.u32 %v4103_v59, %v4093_v40  ;;  %v12679_v3 = vld [vmem:[#allocation10 + $0xa60] ss:$40 sps:$4 sm:$0xff]  }
 0x3b1   :  { %v3956_v15 = vmin.f32 %v11468_v1, 0.0  ;;  %v3936_v27 = vpop.f32.mrb[15].mxu0  ;;  %v4124_v18 = vshrl.u32 %v4114_v21, 1  ;;  %vm3946_vm13 = vcmp.gt.f32.partialorder %v11468_v1, 0.0  ;;  %v12688_v40 = vld [vmem:[#allocation10 + $0x8] ss:$40 sps:$4 sm:$0xff]  }
 0x3b2   :  { %v3957_v28 = vmin.f32 %v11469_v60, 0.0  ;;  %9201 = vmatpush1.bf16.msra.mxu1 %v12655_v0  ;;  %v12687_v0 = vld [vmem:[#allocation10 + $0xab4] ss:$40 sps:$4 sm:$0xff]   ;;  %vm3947_vm14 = vcmp.gt.f32.partialorder %v11469_v60, 0.0  ;;  %v12694_v59 = vld [vmem:[#allocation10 + $0x58] ss:$40 sps:$4 sm:$0xff]  }
 0x3b3   :  { %v3974_v36 = vmul.f32 1.442695, %v3956_v15  ;;  %9202 = vmatprep.subr.bf16.mxu1 %v12663_v19  ;;  %v4123_v19 = vshrl.u32 %v4113_v13, 1  ;;  %v12685_v15 = vld [vmem:[#allocation10 + $0xab0] ss:$40 sps:$4 sm:$0xff]  }
 0x3b4   :  { %v3976_v38 = vmul.f32 1.442695, %v3957_v28  ;;  %vm4134_vm15 = vcmp.ge.s32.totalorder %v4124_v18, 644245094  ;;  %v12693_v28 = vld [vmem:[#allocation10 + $0xb04] ss:$40 sps:$4 sm:$0xff]  }
 0x3b5   :  { %13499 = vpow2.f32 %v3974_v36  ;;  %vm4133_vm0 = vcmp.ge.s32.totalorder %v4123_v19, 644245094  ;;  %v12702_v21 = vld [vmem:[#allocation10 + $0xac] ss:$40 sps:$4 sm:$0xff]   ;;  %v12700_v13 = vld [vmem:[#allocation10 + $0xa8] ss:$40 sps:$4 sm:$0xff]  }
 0x3b6   :  { %13501 = vpow2.f32 %v3976_v38  ;;  %9203 = vmatpush1.bf16.msra.mxu1 %v12661_v34  ;;  %vm14086_vm2 = vmpackc.low %vm4133_vm0, %vm4133_vm0  ;;  %v12709_v18 = vld [vmem:[#allocation10 + $0xbf0] ss:$40 sps:$4 sm:$0xff]   ;;  %v12715_v19 = vld [vmem:[#allocation10 + $0xc40] ss:$40 sps:$4 sm:$0xff]  }
 0x3b7   :  { %9204 = vmatprep.subr.bf16.mxu1 %v12669_v37  ;;  %v12691_v37 = vld [vmem:[#allocation10 + $0xb00] ss:$40 sps:$4 sm:$0xff]  }
 0x3ba   :  { %9205 = vmatpush1.bf16.msra.mxu1 %v12667_v41 }
 0x3bb   :  { %9215 = vmatprep.subr.bf16.mxu1 %v12675_v44  ;;  %v12697_v44 = vld [vmem:[#allocation10 + $0xb50] ss:$40 sps:$4 sm:$0xff]  }
 0x3bd   :  { %11374 = vmatmul.mubr.msk.bf16.vlgmr.msra.gmra.mrb[12].mxu1 %vm13950_vm12, %v13954_v49 }
 0x3be   :  { %9216 = vmatpush1.bf16.msra.mxu1 %v12673_v14  ;;  %11377 = vmatprep.mubr.msk.bf16.mxu1 %vm14002_vm4, %v14006_v51  ;;  %v12705_v14 = vld [vmem:[#allocation10 + $0xba4] ss:$40 sps:$4 sm:$0xff]  }
 0x3bf   :  { %v13500_v61 = vpop.eup %13499  ;;  %9217 = vmatprep.subr.bf16.mxu1 %v12681_v57  ;;  %v12703_v57 = vld [vmem:[#allocation10 + $0xba0] ss:$40 sps:$4 sm:$0xff]  }
 0x3c0   :  { %v13502_v4 = vpop.eup %13501  ;;  %v10555_v7 = vadd.f32 -1.0, %v13500_v61  ;;  %v12708_v61 = vld [vmem:[#allocation10 + $0xfc] ss:$40 sps:$4 sm:$0xff]  }
 0x3c1   :  { %v10556_v24 = vadd.f32 -1.0, %v13502_v4  ;;  %v12717_v4 = vld [vmem:[#allocation10 + $0xc44] ss:$40 sps:$4 sm:$0xff]  }
 0x3c2   :  { %v3996_v25 = vsel %vm3946_vm13, %v11468_v1, %v10555_v7  ;;  %9218 = vmatpush1.bf16.msra.mxu1 %v12679_v3  ;;  %v12711_v3 = vld [vmem:[#allocation10 + $0xbf4] ss:$40 sps:$4 sm:$0xff]  }
 0x3c3   :  { %v3997_v27 = vsel %vm3947_vm14, %v11469_v60, %v10556_v24  ;;  %9219 = vmatprep.subr.bf16.mxu1 %v12687_v0  ;;  %v4143_v34 = vmul.f32 1.4285715, %v3996_v25  ;;  %v12696_v60 = vld [vmem:[#allocation10 + $0x5c] ss:$40 sps:$4 sm:$0xff]   ;;  %v12706_v0 = vld [vmem:[#allocation10 + $0xf8] ss:$40 sps:$4 sm:$0xff]  }
 0x3c4   :  { %v4144_v36 = vmul.f32 1.4285715, %v3997_v27  ;;  %v12714_v7 = vld [vmem:[#allocation10 + $0x14c] ss:$40 sps:$4 sm:$0xff]   ;;  %v12712_v24 = vld [vmem:[#allocation10 + $0x148] ss:$40 sps:$4 sm:$0xff]  }
 0x3c5   :  { %v14090_v41 = vpack.c.bf16 %v4143_v34, %v4143_v34  ;;  %v12723_v25 = vld [vmem:[#allocation10 + $0xc94] ss:$40 sps:$4 sm:$0xff]   ;;  %v12721_v27 = vld [vmem:[#allocation10 + $0xc90] ss:$40 sps:$4 sm:$0xff]   ;;  %v12729_v34 = vld [vmem:[#allocation10 + $0xce4] ss:$40 sps:$4 sm:$0xff]  }
 0x3c6   :  { %v4154_v54 = vsel %vm4134_vm15, %v4144_v36, 0.0  ;;  %9220 = vmatpush1.bf16.msra.mxu1 %v12685_v15  ;;  %v12720_v15 = vld [vmem:[#allocation10 + $0x19c] ss:$40 sps:$4 sm:$0xff]   ;;  %v12726_v36 = vld [vmem:[#allocation10 + $0x1ec] ss:$40 sps:$4 sm:$0xff]  }
 0x3c7   :  { %v14084_v38 = vpack.c.bf16 %v4154_v54, %v4154_v54  ;;  %9221 = vmatprep.subr.bf16.mxu1 %v12693_v28  ;;  %v12718_v28 = vld [vmem:[#allocation10 + $0x198] ss:$40 sps:$4 sm:$0xff]  }
 0x3c8   :  { %v12727_v54 = vld [vmem:[#allocation10 + $0xce0] ss:$40 sps:$4 sm:$0xff]  }
 0x3c9   :  { %11331 = vmatprep.mubr.msk.bf16.mxu0 %vm8719_vm1, %v14084_v38 }
 0x3ca   :  { %11334 = vmatmul.mubr.msk.bf16.vlgmr.msra.gmra.mrb[16].mxu0 %vm14086_vm2, %v14090_v41  ;;  %9222 = vmatpush1.bf16.msra.mxu1 %v12691_v37  ;;  %v12724_v37 = vld [vmem:[#allocation10 + $0x1e8] ss:$40 sps:$4 sm:$0xff]  }
 0x3cb   :  { %8929 = vmatpush1.bf16.msra.mxu0 %v12688_v40  ;;  %11337 = vmatprep.mubr.msk.bf16.mxu0 %vm13908_vm3, %v13912_v17  ;;  %v12735_v40 = vld [vmem:[#allocation10 + $0xd34] ss:$40 sps:$4 sm:$0xff]  }
 0x3cc   :  { %8930 = vmatprep.subr.bf16.mxu0 %v12696_v60  ;;  %9223 = vmatprep.subr.bf16.mxu1 %v12699_v42  ;;  %v12732_v60 = vld [vmem:[#allocation10 + $0x23c] ss:$40 sps:$4 sm:$0xff]   ;;  %v12733_v42 = vld [vmem:[#allocation10 + $0xd30] ss:$40 sps:$4 sm:$0xff]  }
 0x3ce   :  { %9224 = vmatpush1.bf16.msra.mxu1 %v12697_v44  ;;  %v12730_v44 = vld [vmem:[#allocation10 + $0x238] ss:$40 sps:$4 sm:$0xff]  }
 0x3cf   :  { %8931 = vmatpush1.bf16.msra.mxu0 %v12694_v59  ;;  %9225 = vmatprep.subr.bf16.mxu1 %v12705_v14  ;;  %v12741_v59 = vld [vmem:[#allocation10 + $0xd84] ss:$40 sps:$4 sm:$0xff]  }
 0x3d0   :  { %8932 = vmatprep.subr.bf16.mxu0 %v12702_v21  ;;  %v12738_v14 = vld [vmem:[#allocation10 + $0x28c] ss:$40 sps:$4 sm:$0xff]   ;;  %v12739_v21 = vld [vmem:[#allocation10 + $0xd80] ss:$40 sps:$4 sm:$0xff]  }
 0x3d2   :  { %9226 = vmatpush1.bf16.msra.mxu1 %v12703_v57  ;;  %v12736_v57 = vld [vmem:[#allocation10 + $0x288] ss:$40 sps:$4 sm:$0xff]  }
 0x3d3   :  { %8933 = vmatpush1.bf16.msra.mxu0 %v12700_v13  ;;  %9227 = vmatprep.subr.bf16.mxu1 %v12711_v3  ;;  %v12747_v13 = vld [vmem:[#allocation10 + $0xdd4] ss:$40 sps:$4 sm:$0xff]  }
 0x3d4   :  { %8934 = vmatprep.subr.bf16.mxu0 %v12708_v61  ;;  %v12744_v3 = vld [vmem:[#allocation10 + $0x2dc] ss:$40 sps:$4 sm:$0xff]   ;;  %v12745_v61 = vld [vmem:[#allocation10 + $0xdd0] ss:$40 sps:$4 sm:$0xff]  }
 0x3d6   :  { %9228 = vmatpush1.bf16.msra.mxu1 %v12709_v18  ;;  %v12742_v18 = vld [vmem:[#allocation10 + $0x2d8] ss:$40 sps:$4 sm:$0xff]  }
 0x3d7   :  { %8935 = vmatpush1.bf16.msra.mxu0 %v12706_v0  ;;  %9229 = vmatprep.subr.bf16.mxu1 %v12717_v4  ;;  %v12753_v0 = vld [vmem:[#allocation10 + $0xe24] ss:$40 sps:$4 sm:$0xff]  }
 0x3d8   :  { %8936 = vmatprep.subr.bf16.mxu0 %v12714_v7  ;;  %v12750_v4 = vld [vmem:[#allocation10 + $0x32c] ss:$40 sps:$4 sm:$0xff]   ;;  %v12751_v7 = vld [vmem:[#allocation10 + $0xe20] ss:$40 sps:$4 sm:$0xff]  }
 0x3da   :  { %9230 = vmatpush1.bf16.msra.mxu1 %v12715_v19  ;;  %v12748_v19 = vld [vmem:[#allocation10 + $0x328] ss:$40 sps:$4 sm:$0xff]  }
 0x3db   :  { %8937 = vmatpush1.bf16.msra.mxu0 %v12712_v24  ;;  %9231 = vmatprep.subr.bf16.mxu1 %v12723_v25  ;;  %v12759_v24 = vld [vmem:[#allocation10 + $0xe74] ss:$40 sps:$4 sm:$0xff]  }
 0x3dc   :  { %8938 = vmatprep.subr.bf16.mxu0 %v12720_v15  ;;  %v12756_v25 = vld [vmem:[#allocation10 + $0x37c] ss:$40 sps:$4 sm:$0xff]   ;;  %v12757_v15 = vld [vmem:[#allocation10 + $0xe70] ss:$40 sps:$4 sm:$0xff]  }
 0x3de   :  { %9232 = vmatpush1.bf16.msra.mxu1 %v12721_v27  ;;  %v12754_v27 = vld [vmem:[#allocation10 + $0x378] ss:$40 sps:$4 sm:$0xff]  }
 0x3df   :  { %8939 = vmatpush1.bf16.msra.mxu0 %v12718_v28  ;;  %9233 = vmatprep.subr.bf16.mxu1 %v12729_v34  ;;  %v12765_v28 = vld [vmem:[#allocation10 + $0xec4] ss:$40 sps:$4 sm:$0xff]  }
 0x3e0   :  { %8940 = vmatprep.subr.bf16.mxu0 %v12726_v36  ;;  %v12762_v34 = vld [vmem:[#allocation10 + $0x3cc] ss:$40 sps:$4 sm:$0xff]   ;;  %v12763_v36 = vld [vmem:[#allocation10 + $0xec0] ss:$40 sps:$4 sm:$0xff]  }
 0x3e2   :  { %9234 = vmatpush1.bf16.msra.mxu1 %v12727_v54  ;;  %v12760_v54 = vld [vmem:[#allocation10 + $0x3c8] ss:$40 sps:$4 sm:$0xff]  }
 0x3e3   :  { %8941 = vmatpush1.bf16.msra.mxu0 %v12724_v37  ;;  %9235 = vmatprep.subr.bf16.mxu1 %v12735_v40  ;;  %v12771_v37 = vld [vmem:[#allocation10 + $0xf14] ss:$40 sps:$4 sm:$0xff]  }
 0x3e4   :  { %8942 = vmatprep.subr.bf16.mxu0 %v12732_v60  ;;  %v12768_v40 = vld [vmem:[#allocation10 + $0x41c] ss:$40 sps:$4 sm:$0xff]   ;;  %v12769_v60 = vld [vmem:[#allocation10 + $0xf10] ss:$40 sps:$4 sm:$0xff]  }
 0x3e6   :  { %9236 = vmatpush1.bf16.msra.mxu1 %v12733_v42  ;;  %v12766_v42 = vld [vmem:[#allocation10 + $0x418] ss:$40 sps:$4 sm:$0xff]  }
 0x3e7   :  { %8943 = vmatpush1.bf16.msra.mxu0 %v12730_v44  ;;  %9237 = vmatprep.subr.bf16.mxu1 %v12741_v59  ;;  %v12777_v44 = vld [vmem:[#allocation10 + $0xf64] ss:$40 sps:$4 sm:$0xff]  }
 0x3e8   :  { %8944 = vmatprep.subr.bf16.mxu0 %v12738_v14  ;;  %v12774_v59 = vld [vmem:[#allocation10 + $0x46c] ss:$40 sps:$4 sm:$0xff]   ;;  %v12775_v14 = vld [vmem:[#allocation10 + $0xf60] ss:$40 sps:$4 sm:$0xff]  }
 0x3ea   :  { %9238 = vmatpush1.bf16.msra.mxu1 %v12739_v21  ;;  %v12772_v21 = vld [vmem:[#allocation10 + $0x468] ss:$40 sps:$4 sm:$0xff]  }
 0x3eb   :  { %8945 = vmatpush1.bf16.msra.mxu0 %v12736_v57  ;;  %9239 = vmatprep.subr.bf16.mxu1 %v12747_v13  ;;  %v12783_v57 = vld [vmem:[#allocation10 + $0xfb4] ss:$40 sps:$4 sm:$0xff]  }
 0x3ec   :  { %8946 = vmatprep.subr.bf16.mxu0 %v12744_v3  ;;  %v12780_v13 = vld [vmem:[#allocation10 + $0x4bc] ss:$40 sps:$4 sm:$0xff]   ;;  %v12781_v3 = vld [vmem:[#allocation10 + $0xfb0] ss:$40 sps:$4 sm:$0xff]  }
 0x3ee   :  { %9240 = vmatpush1.bf16.msra.mxu1 %v12745_v61  ;;  %v12778_v61 = vld [vmem:[#allocation10 + $0x4b8] ss:$40 sps:$4 sm:$0xff]  }
 0x3ef   :  { %8947 = vmatpush1.bf16.msra.mxu0 %v12742_v18  ;;  %9241 = vmatprep.subr.bf16.mxu1 %v12753_v0  ;;  %v12789_v18 = vld [vmem:[#allocation10 + $0x1004] ss:$40 sps:$4 sm:$0xff]  }
 0x3f0   :  { %8948 = vmatprep.subr.bf16.mxu0 %v12750_v4  ;;  %v12786_v0 = vld [vmem:[#allocation10 + $0x50c] ss:$40 sps:$4 sm:$0xff]   ;;  %v12787_v4 = vld [vmem:[#allocation10 + $0x1000] ss:$40 sps:$4 sm:$0xff]  }
 0x3f2   :  { %9242 = vmatpush1.bf16.msra.mxu1 %v12751_v7  ;;  %v12784_v7 = vld [vmem:[#allocation10 + $0x508] ss:$40 sps:$4 sm:$0xff]  }
 0x3f3   :  { %8949 = vmatpush1.bf16.msra.mxu0 %v12748_v19  ;;  %9243 = vmatprep.subr.bf16.mxu1 %v12759_v24  ;;  %v12792_v19 = vld [vmem:[#allocation10 + $0x55c] ss:$40 sps:$4 sm:$0xff]  }
 0x3f4   :  { %8950 = vmatprep.subr.bf16.mxu0 %v12756_v25  ;;  %v12795_v24 = vld [vmem:[#allocation10 + $0x1054] ss:$40 sps:$4 sm:$0xff]   ;;  %v12793_v25 = vld [vmem:[#allocation10 + $0x1050] ss:$40 sps:$4 sm:$0xff]  }
 0x3f6   :  { %9244 = vmatpush1.bf16.msra.mxu1 %v12757_v15  ;;  %v12790_v15 = vld [vmem:[#allocation10 + $0x558] ss:$40 sps:$4 sm:$0xff]  }
 0x3f7   :  { %8951 = vmatpush1.bf16.msra.mxu0 %v12754_v27  ;;  %9245 = vmatprep.subr.bf16.mxu1 %v12765_v28  ;;  %v12801_v27 = vld [vmem:[#allocation10 + $0x10a4] ss:$40 sps:$4 sm:$0xff]  }
 0x3f8   :  { %8952 = vmatprep.subr.bf16.mxu0 %v12762_v34  ;;  %v12798_v28 = vld [vmem:[#allocation10 + $0x5ac] ss:$40 sps:$4 sm:$0xff]   ;;  %v12799_v34 = vld [vmem:[#allocation10 + $0x10a0] ss:$40 sps:$4 sm:$0xff]  }
 0x3fa   :  { %9246 = vmatpush1.bf16.msra.mxu1 %v12763_v36  ;;  %v12796_v36 = vld [vmem:[#allocation10 + $0x5a8] ss:$40 sps:$4 sm:$0xff]  }
 0x3fb   :  { %8953 = vmatpush1.bf16.msra.mxu0 %v12760_v54  ;;  %9256 = vmatprep.subr.bf16.mxu1 %v12771_v37  ;;  %v12807_v54 = vld [vmem:[#allocation10 + $0x10f4] ss:$40 sps:$4 sm:$0xff]  }
 0x3fc   :  { %8954 = vmatprep.subr.bf16.mxu0 %v12768_v40  ;;  %v12804_v40 = vld [vmem:[#allocation10 + $0x5fc] ss:$40 sps:$4 sm:$0xff]  }
 0x3fd   :  { %11380 = vmatmul.mubr.msk.bf16.vlgmr.msra.gmra.mrb[12].mxu1 %vm14008_vm6, %v14014_v55 }
 0x3fe   :  { %9257 = vmatpush1.bf16.msra.mxu1 %v12769_v60  ;;  %11383 = vmatprep.mubr.msk.bf16.mxu1 %vm14016_vm7, %v14012_v48 }
 0x3ff   :  { %8955 = vmatpush1.bf16.msra.mxu0 %v12766_v42  ;;  %9258 = vmatprep.subr.bf16.mxu1 %v12777_v44  ;;  %v12805_v44 = vld [vmem:[#allocation10 + $0x10f0] ss:$40 sps:$4 sm:$0xff]  }
 0x400   :  { %8956 = vmatprep.subr.bf16.mxu0 %v12774_v59 }
 0x402   :  { %9259 = vmatpush1.bf16.msra.mxu1 %v12775_v14  ;;  %v12802_v14 = vld [vmem:[#allocation10 + $0x5f8] ss:$40 sps:$4 sm:$0xff]  }
 0x403   :  { %8957 = vmatpush1.bf16.msra.mxu0 %v12772_v21  ;;  %9260 = vmatprep.subr.bf16.mxu1 %v12783_v57  ;;  %v12813_v21 = vld [vmem:[#allocation10 + $0x1144] ss:$40 sps:$4 sm:$0xff]  }
 0x404   :  { %8958 = vmatprep.subr.bf16.mxu0 %v12780_v13  ;;  %v12810_v57 = vld [vmem:[#allocation10 + $0x64c] ss:$40 sps:$4 sm:$0xff]   ;;  %v12811_v13 = vld [vmem:[#allocation10 + $0x1140] ss:$40 sps:$4 sm:$0xff]  }
 0x406   :  { %9261 = vmatpush1.bf16.msra.mxu1 %v12781_v3  ;;  %v12808_v3 = vld [vmem:[#allocation10 + $0x648] ss:$40 sps:$4 sm:$0xff]  }
 0x407   :  { %8959 = vmatpush1.bf16.msra.mxu0 %v12778_v61  ;;  %9262 = vmatprep.subr.bf16.mxu1 %v12789_v18  ;;  %v12819_v61 = vld [vmem:[#allocation10 + $0x1194] ss:$40 sps:$4 sm:$0xff]  }
 0x408   :  { %8969 = vmatprep.subr.bf16.mxu0 %v12786_v0  ;;  %v12816_v18 = vld [vmem:[#allocation10 + $0x69c] ss:$40 sps:$4 sm:$0xff]   ;;  %v12817_v0 = vld [vmem:[#allocation10 + $0x1190] ss:$40 sps:$4 sm:$0xff]  }
 0x40a   :  { %11340 = vmatmul.mubr.msk.bf16.vlgmr.msra.gmra.mrb[20].mxu0 %vm13917_vm5, %v13929_v2  ;;  %9263 = vmatpush1.bf16.msra.mxu1 %v12787_v4  ;;  %v12814_v4 = vld [vmem:[#allocation10 + $0x698] ss:$40 sps:$4 sm:$0xff]  }
 0x40b   :  { %8970 = vmatpush1.bf16.msra.mxu0 %v12784_v7  ;;  %11343 = vmatprep.mubr.msk.bf16.mxu0 %vm13925_vm9, %v13931_v29  ;;  %v12825_v7 = vld [vmem:[#allocation10 + $0x11e4] ss:$40 sps:$4 sm:$0xff]  }
 0x40c   :  { %8971 = vmatprep.subr.bf16.mxu0 %v12792_v19  ;;  %9264 = vmatprep.subr.bf16.mxu1 %v12795_v24  ;;  %v12822_v19 = vld [vmem:[#allocation10 + $0x6ec] ss:$40 sps:$4 sm:$0xff]   ;;  %v12823_v24 = vld [vmem:[#allocation10 + $0x11e0] ss:$40 sps:$4 sm:$0xff]  }
 0x40e   :  { %9265 = vmatpush1.bf16.msra.mxu1 %v12793_v25  ;;  %v12820_v25 = vld [vmem:[#allocation10 + $0x6e8] ss:$40 sps:$4 sm:$0xff]  }
 0x40f   :  { %8972 = vmatpush1.bf16.msra.mxu0 %v12790_v15  ;;  %9266 = vmatprep.subr.bf16.mxu1 %v12801_v27  ;;  %v12831_v15 = vld [vmem:[#allocation10 + $0x1234] ss:$40 sps:$4 sm:$0xff]  }
 0x410   :  { %v14112_v37 = vpop.f32.mrb[8].mxu1  ;;  %8973 = vmatprep.subr.bf16.mxu0 %v12798_v28  ;;  %v12828_v27 = vld [vmem:[#allocation10 + $0x73c] ss:$40 sps:$4 sm:$0xff]   ;;  %v12829_v28 = vld [vmem:[#allocation10 + $0x1230] ss:$40 sps:$4 sm:$0xff]  }
 0x411   :  { %v14114_v60 = vpop.f32.mrb[9].mxu1 }
 0x412   :  { %v8884_v42 = vpop.f32.mrb[10].mxu1  ;;  %9267 = vmatpush1.bf16.msra.mxu1 %v12799_v34  ;;  %v12826_v34 = vld [vmem:[#allocation10 + $0x738] ss:$40 sps:$4 sm:$0xff]  }
 0x413   :  { %8974 = vmatpush1.bf16.msra.mxu0 %v12796_v36  ;;  %v8885_v59 = vpop.f32.mrb[11].mxu1  ;;  %9268 = vmatprep.subr.bf16.mxu1 %v12807_v54  ;;  %v12837_v36 = vld [vmem:[#allocation10 + $0x1284] ss:$40 sps:$4 sm:$0xff]   ;;  %v12832_v42 = vld [vmem:[#allocation10 + $0x788] ss:$40 sps:$4 sm:$0xff]  }
 0x414   :  { %8975 = vmatprep.subr.bf16.mxu0 %v12804_v40  ;;  %v12834_v54 = vld [vmem:[#allocation10 + $0x78c] ss:$40 sps:$4 sm:$0xff]   ;;  %v12835_v40 = vld [vmem:[#allocation10 + $0x1280] ss:$40 sps:$4 sm:$0xff]   ;;  %v12840_v59 = vld [vmem:[#allocation10 + $0x7dc] ss:$40 sps:$4 sm:$0xff]  }
 0x416   :  { %9269 = vmatpush1.bf16.msra.mxu1 %v12805_v44  ;;  %v12843_v44 = vld [vmem:[#allocation10 + $0x12d4] ss:$40 sps:$4 sm:$0xff]  }
 0x417   :  { %8976 = vmatpush1.bf16.msra.mxu0 %v12802_v14  ;;  %9270 = vmatprep.subr.bf16.mxu1 %v12813_v21  ;;  %v12841_v14 = vld [vmem:[#allocation10 + $0x12d0] ss:$40 sps:$4 sm:$0xff]  }
 0x418   :  { %8977 = vmatprep.subr.bf16.mxu0 %v12810_v57  ;;  %v12838_v21 = vld [vmem:[#allocation10 + $0x7d8] ss:$40 sps:$4 sm:$0xff]   ;;  %v12849_v57 = vld [vmem:[#allocation10 + $0x1324] ss:$40 sps:$4 sm:$0xff]  }
 0x41a   :  { %9271 = vmatpush1.bf16.msra.mxu1 %v12811_v13  ;;  %v12846_v13 = vld [vmem:[#allocation10 + $0x82c] ss:$40 sps:$4 sm:$0xff]  }
 0x41b   :  { %8978 = vmatpush1.bf16.msra.mxu0 %v12808_v3  ;;  %9272 = vmatprep.subr.bf16.mxu1 %v12819_v61  ;;  %v12847_v3 = vld [vmem:[#allocation10 + $0x1320] ss:$40 sps:$4 sm:$0xff]  }
 0x41c   :  { %8979 = vmatprep.subr.bf16.mxu0 %v12816_v18  ;;  %v12844_v61 = vld [vmem:[#allocation10 + $0x828] ss:$40 sps:$4 sm:$0xff]   ;;  %v12855_v18 = vld [vmem:[#allocation10 + $0x1374] ss:$40 sps:$4 sm:$0xff]  }
 0x41e   :  { %9273 = vmatpush1.bf16.msra.mxu1 %v12817_v0  ;;  %v12852_v0 = vld [vmem:[#allocation10 + $0x87c] ss:$40 sps:$4 sm:$0xff]  }
 0x41f   :  { %8980 = vmatpush1.bf16.msra.mxu0 %v12814_v4  ;;  %9274 = vmatprep.subr.bf16.mxu1 %v12825_v7  ;;  %v12853_v4 = vld [vmem:[#allocation10 + $0x1370] ss:$40 sps:$4 sm:$0xff]  }
 0x420   :  { %8981 = vmatprep.subr.bf16.mxu0 %v12822_v19  ;;  %v12850_v7 = vld [vmem:[#allocation10 + $0x878] ss:$40 sps:$4 sm:$0xff]   ;;  %v12861_v19 = vld [vmem:[#allocation10 + $0x13c4] ss:$40 sps:$4 sm:$0xff]  }
 0x422   :  { %9275 = vmatpush1.bf16.msra.mxu1 %v12823_v24  ;;  %v12858_v24 = vld [vmem:[#allocation10 + $0x8cc] ss:$40 sps:$4 sm:$0xff]  }
 0x423   :  { %8982 = vmatpush1.bf16.msra.mxu0 %v12820_v25  ;;  %9276 = vmatprep.subr.bf16.mxu1 %v12831_v15  ;;  %v12859_v25 = vld [vmem:[#allocation10 + $0x13c0] ss:$40 sps:$4 sm:$0xff]  }
 0x424   :  { %8983 = vmatprep.subr.bf16.mxu0 %v12828_v27  ;;  %v12856_v15 = vld [vmem:[#allocation10 + $0x8c8] ss:$40 sps:$4 sm:$0xff]   ;;  %v12867_v27 = vld [vmem:[#allocation10 + $0x1414] ss:$40 sps:$4 sm:$0xff]  }
 0x426   :  { %9277 = vmatpush1.bf16.msra.mxu1 %v12829_v28  ;;  %v12864_v28 = vld [vmem:[#allocation10 + $0x91c] ss:$40 sps:$4 sm:$0xff]  }
 0x427   :  { %8984 = vmatpush1.bf16.msra.mxu0 %v12826_v34  ;;  %9278 = vmatprep.subr.bf16.mxu1 %v12837_v36  ;;  %v12865_v34 = vld [vmem:[#allocation10 + $0x1410] ss:$40 sps:$4 sm:$0xff]  }
 0x428   :  { %8985 = vmatprep.subr.bf16.mxu0 %v12834_v54  ;;  %v12862_v36 = vld [vmem:[#allocation10 + $0x918] ss:$40 sps:$4 sm:$0xff]   ;;  %v12873_v54 = vld [vmem:[#allocation10 + $0x1464] ss:$40 sps:$4 sm:$0xff]  }
 0x42a   :  { %9279 = vmatpush1.bf16.msra.mxu1 %v12835_v40  ;;  %v12870_v40 = vld [vmem:[#allocation10 + $0x96c] ss:$40 sps:$4 sm:$0xff]  }
 0x42b   :  { %8986 = vmatpush1.bf16.msra.mxu0 %v12832_v42  ;;  %9280 = vmatprep.subr.bf16.mxu1 %v12843_v44  ;;  %v12871_v42 = vld [vmem:[#allocation10 + $0x1460] ss:$40 sps:$4 sm:$0xff]  }
 0x42c   :  { %8987 = vmatprep.subr.bf16.mxu0 %v12840_v59  ;;  %v12868_v44 = vld [vmem:[#allocation10 + $0x968] ss:$40 sps:$4 sm:$0xff]   ;;  %v12879_v59 = vld [vmem:[#allocation10 + $0x14b4] ss:$40 sps:$4 sm:$0xff]  }
 0x42e   :  { %9281 = vmatpush1.bf16.msra.mxu1 %v12841_v14  ;;  %v12876_v14 = vld [vmem:[#allocation10 + $0x9bc] ss:$40 sps:$4 sm:$0xff]  }
 0x42f   :  { %8988 = vmatpush1.bf16.msra.mxu0 %v12838_v21  ;;  %9282 = vmatprep.subr.bf16.mxu1 %v12849_v57  ;;  %v12877_v21 = vld [vmem:[#allocation10 + $0x14b0] ss:$40 sps:$4 sm:$0xff]  }
 0x430   :  { %8989 = vmatprep.subr.bf16.mxu0 %v12846_v13  ;;  %v12874_v57 = vld [vmem:[#allocation10 + $0x9b8] ss:$40 sps:$4 sm:$0xff]   ;;  %v12885_v13 = vld [vmem:[#allocation10 + $0x1504] ss:$40 sps:$4 sm:$0xff]  }
 0x432   :  { %9283 = vmatpush1.bf16.msra.mxu1 %v12847_v3  ;;  %v12882_v3 = vld [vmem:[#allocation10 + $0xa0c] ss:$40 sps:$4 sm:$0xff]  }
 0x433   :  { %8990 = vmatpush1.bf16.msra.mxu0 %v12844_v61  ;;  %9284 = vmatprep.subr.bf16.mxu1 %v12855_v18  ;;  %v12883_v61 = vld [vmem:[#allocation10 + $0x1500] ss:$40 sps:$4 sm:$0xff]  }
 0x434   :  { %8991 = vmatprep.subr.bf16.mxu0 %v12852_v0  ;;  %v12880_v18 = vld [vmem:[#allocation10 + $0xa08] ss:$40 sps:$4 sm:$0xff]   ;;  %v12888_v0 = vld [vmem:[#allocation10 + $0xa5c] ss:$40 sps:$4 sm:$0xff]  }
 0x436   :  { %9285 = vmatpush1.bf16.msra.mxu1 %v12853_v4  ;;  %v12891_v4 = vld [vmem:[#allocation10 + $0x1554] ss:$40 sps:$4 sm:$0xff]  }
 0x437   :  { %8992 = vmatpush1.bf16.msra.mxu0 %v12850_v7  ;;  %9286 = vmatprep.subr.bf16.mxu1 %v12861_v19  ;;  %v12889_v7 = vld [vmem:[#allocation10 + $0x1550] ss:$40 sps:$4 sm:$0xff]  }
 0x438   :  { %8993 = vmatprep.subr.bf16.mxu0 %v12858_v24  ;;  %v12886_v19 = vld [vmem:[#allocation10 + $0xa58] ss:$40 sps:$4 sm:$0xff]   ;;  %v12897_v24 = vld [vmem:[#allocation10 + $0x15a4] ss:$40 sps:$4 sm:$0xff]  }
 0x43a   :  { %9287 = vmatpush1.bf16.msra.mxu1 %v12859_v25  ;;  %v12894_v25 = vld [vmem:[#allocation10 + $0xaac] ss:$40 sps:$4 sm:$0xff]  }
 0x43b   :  { %8994 = vmatpush1.bf16.msra.mxu0 %v12856_v15  ;;  %9297 = vmatprep.subr.bf16.mxu1 %v12867_v27  ;;  %v12895_v15 = vld [vmem:[#allocation10 + $0x15a0] ss:$40 sps:$4 sm:$0xff]  }
 0x43c   :  { %8995 = vmatprep.subr.bf16.mxu0 %v12864_v28  ;;  %v12892_v27 = vld [vmem:[#allocation10 + $0xaa8] ss:$40 sps:$4 sm:$0xff]   ;;  %v12903_v28 = vld [vmem:[#allocation10 + $0x15f4] ss:$40 sps:$4 sm:$0xff]  }
 0x43d   :  { %11386 = vmatmul.mubr.msk.bf16.vlgmr.msra.gmra.mrb[12].mxu1 %vm14046_vm11, %v14050_v35 }
 0x43e   :  { %9298 = vmatpush1.bf16.msra.mxu1 %v12865_v34  ;;  %11387 = vmatprep.mubr.msk.bf16.mxu1 %vm8719_vm1, %v14084_v38  ;;  %v12900_v34 = vld [vmem:[#allocation10 + $0xafc] ss:$40 sps:$4 sm:$0xff]  }
 0x43f   :  { %8996 = vmatpush1.bf16.msra.mxu0 %v12862_v36  ;;  %9299 = vmatprep.subr.bf16.mxu1 %v12873_v54  ;;  %v12901_v36 = vld [vmem:[#allocation10 + $0x15f0] ss:$40 sps:$4 sm:$0xff]  }
 0x440   :  { %8997 = vmatprep.subr.bf16.mxu0 %v12870_v40  ;;  %v12898_v54 = vld [vmem:[#allocation10 + $0xaf8] ss:$40 sps:$4 sm:$0xff]   ;;  %v12909_v40 = vld [vmem:[#allocation10 + $0x1644] ss:$40 sps:$4 sm:$0xff]  }
 0x442   :  { %9300 = vmatpush1.bf16.msra.mxu1 %v12871_v42  ;;  %v12906_v42 = vld [vmem:[#allocation10 + $0xb4c] ss:$40 sps:$4 sm:$0xff]  }
 0x443   :  { %8998 = vmatpush1.bf16.msra.mxu0 %v12868_v44  ;;  %9301 = vmatprep.subr.bf16.mxu1 %v12879_v59  ;;  %v12907_v44 = vld [vmem:[#allocation10 + $0x1640] ss:$40 sps:$4 sm:$0xff]  }
 0x444   :  { %8999 = vmatprep.subr.bf16.mxu0 %v12876_v14  ;;  %v12904_v59 = vld [vmem:[#allocation10 + $0xb48] ss:$40 sps:$4 sm:$0xff]   ;;  %v12915_v14 = vld [vmem:[#allocation10 + $0x1694] ss:$40 sps:$4 sm:$0xff]  }
 0x446   :  { %9302 = vmatpush1.bf16.msra.mxu1 %v12877_v21  ;;  %v12912_v21 = vld [vmem:[#allocation10 + $0xb9c] ss:$40 sps:$4 sm:$0xff]  }
 0x447   :  { %9000 = vmatpush1.bf16.msra.mxu0 %v12874_v57  ;;  %9303 = vmatprep.subr.bf16.mxu1 %v12885_v13  ;;  %v12913_v57 = vld [vmem:[#allocation10 + $0x1690] ss:$40 sps:$4 sm:$0xff]  }
 0x448   :  { %9010 = vmatprep.subr.bf16.mxu0 %v12882_v3  ;;  %v12910_v13 = vld [vmem:[#allocation10 + $0xb98] ss:$40 sps:$4 sm:$0xff]   ;;  %v12921_v3 = vld [vmem:[#allocation10 + $0x16e4] ss:$40 sps:$4 sm:$0xff]  }
 0x44a   :  { %11346 = vmatmul.mubr.msk.bf16.vlgmr.msra.gmra.mrb[20].mxu0 %vm13950_vm12, %v13954_v49  ;;  %9304 = vmatpush1.bf16.msra.mxu1 %v12883_v61  ;;  %v12918_v61 = vld [vmem:[#allocation10 + $0xbec] ss:$40 sps:$4 sm:$0xff]  }
 0x44b   :  { %9011 = vmatpush1.bf16.msra.mxu0 %v12880_v18  ;;  %11349 = vmatprep.mubr.msk.bf16.mxu0 %vm14002_vm4, %v14006_v51  ;;  %v12919_v18 = vld [vmem:[#allocation10 + $0x16e0] ss:$40 sps:$4 sm:$0xff]  }
 0x44c   :  { %9012 = vmatprep.subr.bf16.mxu0 %v12888_v0  ;;  %9305 = vmatprep.subr.bf16.mxu1 %v12891_v4  ;;  %v12916_v0 = vld [vmem:[#allocation10 + $0xbe8] ss:$40 sps:$4 sm:$0xff]   ;;  %v12927_v4 = vld [vmem:[#allocation10 + $0x1734] ss:$40 sps:$4 sm:$0xff]  }
 0x44e   :  { %9306 = vmatpush1.bf16.msra.mxu1 %v12889_v7  ;;  %v12924_v7 = vld [vmem:[#allocation10 + $0xc3c] ss:$40 sps:$4 sm:$0xff]  }
 0x44f   :  { %9013 = vmatpush1.bf16.msra.mxu0 %v12886_v19  ;;  %9307 = vmatprep.subr.bf16.mxu1 %v12897_v24  ;;  %v12925_v19 = vld [vmem:[#allocation10 + $0x1730] ss:$40 sps:$4 sm:$0xff]  }
 0x450   :  { %9014 = vmatprep.subr.bf16.mxu0 %v12894_v25  ;;  %v12922_v24 = vld [vmem:[#allocation10 + $0xc38] ss:$40 sps:$4 sm:$0xff]   ;;  %v12933_v25 = vld [vmem:[#allocation10 + $0x24] ss:$40 sps:$4 sm:$0xff]  }
 0x452   :  { %9308 = vmatpush1.bf16.msra.mxu1 %v12895_v15  ;;  %v12930_v15 = vld [vmem:[#allocation10 + $0xc8c] ss:$40 sps:$4 sm:$0xff]  }
 0x453   :  { %9015 = vmatpush1.bf16.msra.mxu0 %v12892_v27  ;;  %9309 = vmatprep.subr.bf16.mxu1 %v12903_v28  ;;  %v12931_v27 = vld [vmem:[#allocation10 + $0x20] ss:$40 sps:$4 sm:$0xff]  }
 0x454   :  { %9016 = vmatprep.subr.bf16.mxu0 %v12900_v34  ;;  %v12928_v28 = vld [vmem:[#allocation10 + $0xc88] ss:$40 sps:$4 sm:$0xff]   ;;  %v12939_v34 = vld [vmem:[#allocation10 + $0x74] ss:$40 sps:$4 sm:$0xff]  }
 0x456   :  { %9310 = vmatpush1.bf16.msra.mxu1 %v12901_v36  ;;  %v12936_v36 = vld [vmem:[#allocation10 + $0xcdc] ss:$40 sps:$4 sm:$0xff]  }
 0x457   :  { %9017 = vmatpush1.bf16.msra.mxu0 %v12898_v54  ;;  %9311 = vmatprep.subr.bf16.mxu1 %v12909_v40  ;;  %v12937_v54 = vld [vmem:[#allocation10 + $0x70] ss:$40 sps:$4 sm:$0xff]  }
 0x458   :  { %9018 = vmatprep.subr.bf16.mxu0 %v12906_v42  ;;  %v12934_v40 = vld [vmem:[#allocation10 + $0xcd8] ss:$40 sps:$4 sm:$0xff]   ;;  %v12945_v42 = vld [vmem:[#allocation10 + $0xc4] ss:$40 sps:$4 sm:$0xff]  }
 0x45a   :  { %9312 = vmatpush1.bf16.msra.mxu1 %v12907_v44  ;;  %v12942_v44 = vld [vmem:[#allocation10 + $0xd2c] ss:$40 sps:$4 sm:$0xff]  }
 0x45b   :  { %9019 = vmatpush1.bf16.msra.mxu0 %v12904_v59  ;;  %9313 = vmatprep.subr.bf16.mxu1 %v12915_v14  ;;  %v12943_v59 = vld [vmem:[#allocation10 + $0xc0] ss:$40 sps:$4 sm:$0xff]  }
 0x45c   :  { %9020 = vmatprep.subr.bf16.mxu0 %v12912_v21  ;;  %v12940_v14 = vld [vmem:[#allocation10 + $0xd28] ss:$40 sps:$4 sm:$0xff]   ;;  %v12951_v21 = vld [vmem:[#allocation10 + $0x114] ss:$40 sps:$4 sm:$0xff]  }
 0x45e   :  { %9314 = vmatpush1.bf16.msra.mxu1 %v12913_v57  ;;  %v12948_v57 = vld [vmem:[#allocation10 + $0xd7c] ss:$40 sps:$4 sm:$0xff]  }
 0x45f   :  { %9021 = vmatpush1.bf16.msra.mxu0 %v12910_v13  ;;  %9315 = vmatprep.subr.bf16.mxu1 %v12921_v3  ;;  %v12949_v13 = vld [vmem:[#allocation10 + $0x110] ss:$40 sps:$4 sm:$0xff]  }
 0x460   :  { %9022 = vmatprep.subr.bf16.mxu0 %v12918_v61  ;;  %v12946_v3 = vld [vmem:[#allocation10 + $0xd78] ss:$40 sps:$4 sm:$0xff]   ;;  %v12957_v61 = vld [vmem:[#allocation10 + $0x164] ss:$40 sps:$4 sm:$0xff]  }
 0x462   :  { %9316 = vmatpush1.bf16.msra.mxu1 %v12919_v18  ;;  %v12954_v18 = vld [vmem:[#allocation10 + $0xdcc] ss:$40 sps:$4 sm:$0xff]  }
 0x463   :  { %9023 = vmatpush1.bf16.msra.mxu0 %v12916_v0  ;;  %9317 = vmatprep.subr.bf16.mxu1 %v12927_v4  ;;  %v12955_v0 = vld [vmem:[#allocation10 + $0x160] ss:$40 sps:$4 sm:$0xff]  }
 0x464   :  { %9024 = vmatprep.subr.bf16.mxu0 %v12924_v7  ;;  %v12952_v4 = vld [vmem:[#allocation10 + $0xdc8] ss:$40 sps:$4 sm:$0xff]   ;;  %v12963_v7 = vld [vmem:[#allocation10 + $0x1b4] ss:$40 sps:$4 sm:$0xff]  }
 0x466   :  { %9318 = vmatpush1.bf16.msra.mxu1 %v12925_v19  ;;  %v12960_v19 = vld [vmem:[#allocation10 + $0xe1c] ss:$40 sps:$4 sm:$0xff]  }
 0x467   :  { %9025 = vmatpush1.bf16.msra.mxu0 %v12922_v24  ;;  %9543 = vmatprep.subr.bf16.mxu1 %v12933_v25  ;;  %v12961_v24 = vld [vmem:[#allocation10 + $0x1b0] ss:$40 sps:$4 sm:$0xff]  }
 0x468   :  { %9026 = vmatprep.subr.bf16.mxu0 %v12930_v15  ;;  %v12958_v25 = vld [vmem:[#allocation10 + $0xe18] ss:$40 sps:$4 sm:$0xff]   ;;  %v12969_v15 = vld [vmem:[#allocation10 + $0x204] ss:$40 sps:$4 sm:$0xff]  }
 0x469   :  { %11390 = vmatmul.mubr.msk.bf16.vlgmr.msra.gmra.mrb[12].mxu1 %vm14086_vm2, %v14090_v41 }
 0x46a   :  { %9544 = vmatpush1.bf16.msra.mxu1 %v12931_v27  ;;  %11421 = vmatprep.mubr.msk.bf16.mxu1 %vm13908_vm3, %v13912_v17  ;;  %v12966_v27 = vld [vmem:[#allocation10 + $0xe6c] ss:$40 sps:$4 sm:$0xff]  }
 0x46b   :  { %9027 = vmatpush1.bf16.msra.mxu0 %v12928_v28  ;;  %9545 = vmatprep.subr.bf16.mxu1 %v12939_v34  ;;  %v12967_v28 = vld [vmem:[#allocation10 + $0x200] ss:$40 sps:$4 sm:$0xff]  }
 0x46c   :  { %9028 = vmatprep.subr.bf16.mxu0 %v12936_v36  ;;  %v12964_v34 = vld [vmem:[#allocation10 + $0xe68] ss:$40 sps:$4 sm:$0xff]   ;;  %v12975_v36 = vld [vmem:[#allocation10 + $0x254] ss:$40 sps:$4 sm:$0xff]  }
 0x46e   :  { %9546 = vmatpush1.bf16.msra.mxu1 %v12937_v54  ;;  %v12972_v54 = vld [vmem:[#allocation10 + $0xebc] ss:$40 sps:$4 sm:$0xff]  }
 0x46f   :  { %9029 = vmatpush1.bf16.msra.mxu0 %v12934_v40  ;;  %9547 = vmatprep.subr.bf16.mxu1 %v12945_v42  ;;  %v12973_v40 = vld [vmem:[#allocation10 + $0x250] ss:$40 sps:$4 sm:$0xff]  }
 0x470   :  { %9030 = vmatprep.subr.bf16.mxu0 %v12942_v44  ;;  %v12970_v42 = vld [vmem:[#allocation10 + $0xeb8] ss:$40 sps:$4 sm:$0xff]   ;;  %v12981_v44 = vld [vmem:[#allocation10 + $0x2a4] ss:$40 sps:$4 sm:$0xff]  }
 0x472   :  { %9548 = vmatpush1.bf16.msra.mxu1 %v12943_v59  ;;  %v12978_v59 = vld [vmem:[#allocation10 + $0xf0c] ss:$40 sps:$4 sm:$0xff]  }
 0x473   :  { %9031 = vmatpush1.bf16.msra.mxu0 %v12940_v14  ;;  %9549 = vmatprep.subr.bf16.mxu1 %v12951_v21  ;;  %v12979_v14 = vld [vmem:[#allocation10 + $0x2a0] ss:$40 sps:$4 sm:$0xff]   ;;  %v14136_v21 = vstv %s9809_s30 }
 0x474   :  { %9032 = vmatprep.subr.bf16.mxu0 %v12948_v57  ;;  %v12976_v57 = vld [vmem:[#allocation10 + $0xf08] ss:$40 sps:$4 sm:$0xff]   ;;  %v9819_v1 = vadd.s32 %v14136_v21, %v14070_v11 }
 0x476   :  { %9550 = vmatpush1.bf16.msra.mxu1 %v12949_v13  ;;  %v12984_v13 = vld [vmem:[#allocation10 + $0xf5c] ss:$40 sps:$4 sm:$0xff]  }
 0x477   :  { %9033 = vmatpush1.bf16.msra.mxu0 %v12946_v3  ;;  %9551 = vmatprep.subr.bf16.mxu1 %v12957_v61  ;;  %v12987_v3 = vld [vmem:[#allocation10 + $0x2f4] ss:$40 sps:$4 sm:$0xff]   ;;  %v9811_v61 = vadd.s32 %v14136_v21, %v13861_v12 }
 0x478   :  { %9034 = vmatprep.subr.bf16.mxu0 %v12954_v18  ;;  %v12985_v18 = vld [vmem:[#allocation10 + $0x2f0] ss:$40 sps:$4 sm:$0xff]  }
 0x479   :  { %v9821_v12 = vshrl.u32 %v9811_v61, 16 }
 0x47a   :  { %9552 = vmatpush1.bf16.msra.mxu1 %v12955_v0  ;;  %v9812_v0 = vadd.s32 %v14136_v21, %v13851_v56  ;;  %v12996_v56 = vld [vmem:[#allocation10 + $0xffc] ss:$40 sps:$4 sm:$0xff]  }
 0x47b   :  { %9035 = vmatpush1.bf16.msra.mxu0 %v12952_v4  ;;  %9553 = vmatprep.subr.bf16.mxu1 %v12963_v7  ;;  %v12982_v4 = vld [vmem:[#allocation10 + $0xf58] ss:$40 sps:$4 sm:$0xff]   ;;  %v12993_v7 = vld [vmem:[#allocation10 + $0x344] ss:$40 sps:$4 sm:$0xff]  }
 0x47c   :  { %9036 = vmatprep.subr.bf16.mxu0 %v12960_v19  ;;  %v12990_v19 = vld [vmem:[#allocation10 + $0xfac] ss:$40 sps:$4 sm:$0xff]  }
 0x47e   :  { %9554 = vmatpush1.bf16.msra.mxu1 %v12961_v24  ;;  %v12991_v24 = vld [vmem:[#allocation10 + $0x340] ss:$40 sps:$4 sm:$0xff]  }
 0x47f   :  { %9037 = vmatpush1.bf16.msra.mxu0 %v12958_v25  ;;  %9555 = vmatprep.subr.bf16.mxu1 %v12969_v15  ;;  %v9822_v25 = vshrl.u32 %v9812_v0, 16  ;;  %v12988_v15 = vld [vmem:[#allocation10 + $0xfa8] ss:$40 sps:$4 sm:$0xff]  }
 0x480   :  { %9038 = vmatprep.subr.bf16.mxu0 %v12966_v27  ;;  %v12999_v27 = vld [vmem:[#allocation10 + $0x394] ss:$40 sps:$4 sm:$0xff]  }
 0x482   :  { %9556 = vmatpush1.bf16.msra.mxu1 %v12967_v28  ;;  %v9831_v28 = vxor.u32 %v9821_v12, %v9811_v61  ;;  %v13006_v12 = vld [vmem:[#allocation10 + $0x1098] ss:$40 sps:$4 sm:$0xff]  }
 0x483   :  { %9039 = vmatpush1.bf16.msra.mxu0 %v12964_v34  ;;  %9557 = vmatprep.subr.bf16.mxu1 %v12975_v36  ;;  %v12997_v34 = vld [vmem:[#allocation10 + $0x390] ss:$40 sps:$4 sm:$0xff]   ;;  %v9832_v36 = vxor.u32 %v9822_v25, %v9812_v0 }
 0x484   :  { %9040 = vmatprep.subr.bf16.mxu0 %v12972_v54  ;;  %v12994_v54 = vld [vmem:[#allocation10 + $0xff8] ss:$40 sps:$4 sm:$0xff]  }
 0x486   :  { %9558 = vmatpush1.bf16.msra.mxu1 %v12973_v40  ;;  %v13005_v40 = vld [vmem:[#allocation10 + $0x3e4] ss:$40 sps:$4 sm:$0xff]  }
 0x487   :  { %9041 = vmatpush1.bf16.msra.mxu0 %v12970_v42  ;;  %9559 = vmatprep.subr.bf16.mxu1 %v12981_v44  ;;  %v13002_v42 = vld [vmem:[#allocation10 + $0x104c] ss:$40 sps:$4 sm:$0xff]  }
 0x488   :  { %9051 = vmatprep.subr.bf16.mxu0 %v12978_v59  ;;  %v4915_v44 = vld [vmem:[#allocation12] sm:$0xff]  ;;  %v9841_v59 = vmul.u32 2246822507, %v9831_v28 }
 0x489   :  { %v4922_v61 = vrot.slane %v4915_v44, %v13886_v47  ;;  %v4926_v0 = vrot.slane %v4915_v44, %v13874_v31 }
 0x48a   :  { %11352 = vmatmul.mubr.msk.bf16.vlgmr.msra.gmra.mrb[20].mxu0 %vm14008_vm6, %v14014_v55  ;;  %9560 = vmatpush1.bf16.msra.mxu1 %v12979_v14  ;;  %v13003_v14 = vld [vmem:[#allocation10 + $0x3e0] ss:$40 sps:$4 sm:$0xff]  }
 0x48b   :  { %9052 = vmatpush1.bf16.msra.mxu0 %v12976_v57  ;;  %11355 = vmatprep.mubr.msk.bf16.mxu0 %vm14016_vm7, %v14012_v48  ;;  %v9842_v57 = vmul.u32 2246822507, %v9832_v36  ;;  %v11470_v25 = vadd.f32 %v14112_v37, %v4922_v61 }
 0x48c   :  { %9053 = vmatprep.subr.bf16.mxu0 %v12984_v13  ;;  %9561 = vmatprep.subr.bf16.mxu1 %v12987_v3  ;;  %v13000_v13 = vld [vmem:[#allocation10 + $0x1048] ss:$40 sps:$4 sm:$0xff]   ;;  %v13011_v3 = vld [vmem:[#allocation10 + $0x434] ss:$40 sps:$4 sm:$0xff]  }
 0x48e   :  { %9562 = vmatpush1.bf16.msra.mxu1 %v12985_v18  ;;  %v13008_v18 = vld [vmem:[#allocation10 + $0x109c] ss:$40 sps:$4 sm:$0xff]  }
 0x48f   :  { %9054 = vmatpush1.bf16.msra.mxu0 %v12982_v4  ;;  %9563 = vmatprep.subr.bf16.mxu1 %v12993_v7  ;;  %v9851_v4 = vshrl.u32 %v9841_v59, 13  ;;  %v13009_v7 = vld [vmem:[#allocation10 + $0x430] ss:$40 sps:$4 sm:$0xff]  }
 0x490   :  { %9055 = vmatprep.subr.bf16.mxu0 %v12990_v19  ;;  %v9852_v19 = vshrl.u32 %v9842_v57, 13 }
 0x491   :  { %v9861_v28 = vxor.u32 %v9851_v4, %v9841_v59 }
 0x492   :  { %9564 = vmatpush1.bf16.msra.mxu1 %v12991_v24  ;;  %v13017_v24 = vld [vmem:[#allocation10 + $0x484] ss:$40 sps:$4 sm:$0xff]  }
 0x493   :  { %9056 = vmatpush1.bf16.msra.mxu0 %v12988_v15  ;;  %9565 = vmatprep.subr.bf16.mxu1 %v12999_v27  ;;  %v13014_v15 = vld [vmem:[#allocation10 + $0x10ec] ss:$40 sps:$4 sm:$0xff]   ;;  %v11472_v27 = vadd.f32 %v14114_v60, %v4926_v0  ;;  %v13020_v60 = vld [vmem:[#allocation10 + $0x113c] ss:$40 sps:$4 sm:$0xff]   ;;  %v9871_v61 = vmul.u32 3266489909, %v9861_v28 }
 0x494   :  { %9057 = vmatprep.subr.bf16.mxu0 %v12996_v56  ;;  %v13032_v28 = vld [vmem:[#allocation10 + $0x11dc] ss:$40 sps:$4 sm:$0xff]  }
 0x496   :  { %9566 = vmatpush1.bf16.msra.mxu1 %v12997_v34 }
 0x497   :  { %9058 = vmatpush1.bf16.msra.mxu0 %v12994_v54  ;;  %9567 = vmatprep.subr.bf16.mxu1 %v13005_v40  ;;  %v9862_v54 = vxor.u32 %v9852_v19, %v9842_v57  ;;  %v13015_v40 = vld [vmem:[#allocation10 + $0x480] ss:$40 sps:$4 sm:$0xff]   ;;  %v13021_v57 = vld [vmem:[#allocation10 + $0x4d0] ss:$40 sps:$4 sm:$0xff]   ;;  %v13029_v19 = vld [vmem:[#allocation10 + $0x524] ss:$40 sps:$4 sm:$0xff]  }
 0x498   :  { %9059 = vmatprep.subr.bf16.mxu0 %v13002_v42 }
 0x499   :  { %v9872_v0 = vmul.u32 3266489909, %v9862_v54 }
 0x49a   :  { %9568 = vmatpush1.bf16.msra.mxu1 %v13003_v14  ;;  %v13012_v14 = vld [vmem:[#allocation10 + $0x10e8] ss:$40 sps:$4 sm:$0xff]  }
 0x49b   :  { %9060 = vmatpush1.bf16.msra.mxu0 %v13000_v13  ;;  %9569 = vmatprep.subr.bf16.mxu1 %v13011_v3  ;;  %v13023_v13 = vld [vmem:[#allocation10 + $0x4d4] ss:$40 sps:$4 sm:$0xff]  }
 0x49c   :  { %9061 = vmatprep.subr.bf16.mxu0 %v13008_v18 }
 0x49d   :  { %v8921_v56 = vpop.f32.mrb[16].mxu0 }
 0x49e   :  { %v14152_v34 = vadd.f32 %v11470_v25, %v8921_v56  ;;  %v8923_v36 = vpop.f32.mrb[17].mxu0  ;;  %9570 = vmatpush1.bf16.msra.mxu1 %v13009_v7  ;;  %v13018_v7 = vld [vmem:[#allocation10 + $0x1138] ss:$40 sps:$4 sm:$0xff]   ;;  %v9882_v25 = vshrl.u32 %v9872_v0, 16  ;;  %v13035_v56 = vld [vmem:[#allocation10 + $0x574] ss:$40 sps:$4 sm:$0xff]  }
 0x49f   :  { %v14154_v42 = vadd.f32 %v11472_v27, %v8923_v36  ;;  %9062 = vmatpush1.bf16.msra.mxu0 %v13006_v12  ;;  %v8925_v44 = vpop.f32.mrb[18].mxu0  ;;  %9571 = vmatprep.subr.bf16.mxu1 %v13017_v24  ;;  %v13026_v12 = vld [vmem:[#allocation10 + $0x118c] ss:$40 sps:$4 sm:$0xff]   ;;  %v9881_v24 = vshrl.u32 %v9871_v61, 16  ;;  %v13024_v27 = vld [vmem:[#allocation10 + $0x1188] ss:$40 sps:$4 sm:$0xff]  }
 0x4a0   :  { %v9758_v37 = vmin.f32 %v14152_v34, 0.0  ;;  %v8926_v3 = vpop.f32.mrb[19].mxu0  ;;  %9063 = vmatprep.subr.bf16.mxu0 %v13014_v15  ;;  %v13027_v15 = vld [vmem:[#allocation10 + $0x520] ss:$40 sps:$4 sm:$0xff]   ;;  %v9892_v54 = vxor.u32 %v9882_v25, %v9872_v0  ;;  %vm9748_vm8 = vcmp.gt.f32.partialorder %v14152_v34, 0.0 }
 0x4a1   :  { %v9759_v59 = vmin.f32 %v14154_v42, 0.0  ;;  %v9891_v36 = vxor.u32 %v9881_v24, %v9871_v61  ;;  %v13030_v44 = vld [vmem:[#allocation10 + $0x11d8] ss:$40 sps:$4 sm:$0xff]   ;;  %vm9749_vm13 = vcmp.gt.f32.partialorder %v14154_v42, 0.0  ;;  %v13068_v24 = vld [vmem:[#allocation10 + $0x13bc] ss:$40 sps:$4 sm:$0xff]  }
 0x4a2   :  { %v9768_v18 = vmul.f32 1.442695, %v9758_v37  ;;  %9572 = vmatpush1.bf16.msra.mxu1 %v13015_v40  ;;  %v13033_v40 = vld [vmem:[#allocation10 + $0x570] ss:$40 sps:$4 sm:$0xff]   ;;  %v9902_v61 = vshrl.u32 %v9892_v54, 1 }
 0x4a3   :  { %v9770_v4 = vmul.f32 1.442695, %v9759_v59  ;;  %9064 = vmatpush1.bf16.msra.mxu0 %v13012_v14  ;;  %9573 = vmatprep.subr.bf16.mxu1 %v13023_v13  ;;  %v13041_v14 = vld [vmem:[#allocation10 + $0x5c4] ss:$40 sps:$4 sm:$0xff]   ;;  %v9901_v37 = vshrl.u32 %v9891_v36, 1 }
 0x4a4   :  { %13503 = vpow2.f32 %v9768_v18  ;;  %9065 = vmatprep.subr.bf16.mxu0 %v13020_v60  ;;  %v13038_v13 = vld [vmem:[#allocation10 + $0x122c] ss:$40 sps:$4 sm:$0xff]   ;;  %v9941_v60 = vld [vmem:[#allocation13] sm:$0xff]  ;;  %vm9912_vm14 = vcmp.ge.s32.totalorder %v9902_v61, 644245094 }
 0x4a5   :  { %13505 = vpow2.f32 %v9770_v4  ;;  %v13039_v59 = vld [vmem:[#allocation10 + $0x5c0] ss:$40 sps:$4 sm:$0xff]   ;;  %v13047_v4 = vld [vmem:[#allocation10 + $0x614] ss:$40 sps:$4 sm:$0xff]   ;;  %vm14166_vm10 = vcmp.ge.s32.totalorder %v9901_v37, 644245094  ;;  %v9948_v25 = vrot.slane %v9941_v60, %v13886_v47 }
 0x4a6   :  { %9574 = vmatpush1.bf16.msra.mxu1 %v13021_v57  ;;  %v13036_v57 = vld [vmem:[#allocation10 + $0x1228] ss:$40 sps:$4 sm:$0xff]   ;;  %v13042_v54 = vld [vmem:[#allocation10 + $0x1278] ss:$40 sps:$4 sm:$0xff]  }
 0x4a7   :  { %9066 = vmatpush1.bf16.msra.mxu0 %v13018_v7  ;;  %9584 = vmatprep.subr.bf16.mxu1 %v13029_v19  ;;  %v13044_v19 = vld [vmem:[#allocation10 + $0x127c] ss:$40 sps:$4 sm:$0xff]  }
 0x4a8   :  { %9067 = vmatprep.subr.bf16.mxu0 %v13026_v12 }
 0x4a9   :  { %11424 = vmatmul.mubr.msk.bf16.vlgmr.msra.gmra.mrb[16].mxu1 %vm13917_vm5, %v13929_v2 }
 0x4aa   :  { %9585 = vmatpush1.bf16.msra.mxu1 %v13027_v15  ;;  %11427 = vmatprep.mubr.msk.bf16.mxu1 %vm13925_vm9, %v13931_v29 }
 0x4ab   :  { %9068 = vmatpush1.bf16.msra.mxu0 %v13024_v27  ;;  %9586 = vmatprep.subr.bf16.mxu1 %v13035_v56  ;;  %v9952_v56 = vrot.slane %v9941_v60, %v13874_v31  ;;  %v13059_v60 = vld [vmem:[#allocation10 + $0x6b4] ss:$40 sps:$4 sm:$0xff]  }
 0x4ac   :  { %9069 = vmatprep.subr.bf16.mxu0 %v13032_v28  ;;  %v13045_v28 = vld [vmem:[#allocation10 + $0x610] ss:$40 sps:$4 sm:$0xff]  }
 0x4ae   :  { %v13504_v3 = vpop.eup %13503  ;;  %9587 = vmatpush1.bf16.msra.mxu1 %v13033_v40 }
 0x4af   :  { %v13506_v18 = vpop.eup %13505  ;;  %v11447_v0 = vadd.f32 -1.0, %v13504_v3  ;;  %9070 = vmatpush1.bf16.msra.mxu0 %v13030_v44  ;;  %9588 = vmatprep.subr.bf16.mxu1 %v13041_v14  ;;  %v13050_v44 = vld [vmem:[#allocation10 + $0x12cc] ss:$40 sps:$4 sm:$0xff]   ;;  %v13048_v3 = vld [vmem:[#allocation10 + $0x12c8] ss:$40 sps:$4 sm:$0xff]  }
 0x4b0   :  { %v11448_v7 = vadd.f32 -1.0, %v13506_v18  ;;  %9071 = vmatprep.subr.bf16.mxu0 %v13038_v13  ;;  %v13057_v18 = vld [vmem:[#allocation10 + $0x6b0] ss:$40 sps:$4 sm:$0xff]  }
 0x4b1   :  { %v9798_v12 = vsel %vm9748_vm8, %v14152_v34, %v11447_v0  ;;  %v13053_v34 = vld [vmem:[#allocation10 + $0x664] ss:$40 sps:$4 sm:$0xff]   ;;  %v13054_v0 = vld [vmem:[#allocation10 + $0x1318] ss:$40 sps:$4 sm:$0xff]  }
 0x4b2   :  { %v9921_v15 = vmul.f32 1.4285715, %v9798_v12  ;;  %v9799_v27 = vsel %vm9749_vm13, %v14154_v42, %v11448_v7  ;;  %9589 = vmatpush1.bf16.msra.mxu1 %v13039_v59  ;;  %v13051_v42 = vld [vmem:[#allocation10 + $0x660] ss:$40 sps:$4 sm:$0xff]   ;;  %v13056_v59 = vld [vmem:[#allocation10 + $0x131c] ss:$40 sps:$4 sm:$0xff]  }
 0x4b3   :  { %v9922_v36 = vmul.f32 1.4285715, %v9799_v27  ;;  %9072 = vmatpush1.bf16.msra.mxu0 %v13036_v57  ;;  %9590 = vmatprep.subr.bf16.mxu1 %v13047_v4  ;;  %v13065_v57 = vld [vmem:[#allocation10 + $0x704] ss:$40 sps:$4 sm:$0xff]   ;;  %v13063_v7 = vld [vmem:[#allocation10 + $0x700] ss:$40 sps:$4 sm:$0xff]  }
 0x4b4   :  { %v9931_v40 = vsel %vm14166_vm10, %v9921_v15, 0.0  ;;  %9073 = vmatprep.subr.bf16.mxu0 %v13044_v19  ;;  %v13062_v4 = vld [vmem:[#allocation10 + $0x136c] ss:$40 sps:$4 sm:$0xff]   ;;  %v13060_v19 = vld [vmem:[#allocation10 + $0x1368] ss:$40 sps:$4 sm:$0xff]  }
 0x4b5   :  { %v9995_v14 = vmul.f32 %v9948_v25, %v9931_v40  ;;  %v9932_v13 = vsel %vm9912_vm14, %v9922_v36, 0.0  ;;  %v13071_v12 = vld [vmem:[#allocation10 + $0x754] ss:$40 sps:$4 sm:$0xff]   ;;  %v13069_v25 = vld [vmem:[#allocation10 + $0x750] ss:$40 sps:$4 sm:$0xff]  }
 0x4b6   :  { %v9996_v37 = vmul.f32 %v9952_v56, %v9932_v13  ;;  %9591 = vmatpush1.bf16.msra.mxu1 %v13045_v28  ;;  %v13066_v15 = vld [vmem:[#allocation10 + $0x13b8] ss:$40 sps:$4 sm:$0xff]   ;;  %v13077_v27 = vld [vmem:[#allocation10 + $0x7a4] ss:$40 sps:$4 sm:$0xff]   ;;  %v13072_v36 = vld [vmem:[#allocation10 + $0x1408] ss:$40 sps:$4 sm:$0xff]  }
 0x4b7   :  { %9074 = vmatpush1.bf16.msra.mxu0 %v13042_v54  ;;  %9592 = vmatprep.subr.bf16.mxu1 %v13053_v34  ;;  %v13074_v56 = vld [vmem:[#allocation10 + $0x140c] ss:$40 sps:$4 sm:$0xff]   ;;  %v13075_v28 = vld [vmem:[#allocation10 + $0x7a0] ss:$40 sps:$4 sm:$0xff]   ;;  %v13080_v54 = vld [vmem:[#allocation10 + $0x145c] ss:$40 sps:$4 sm:$0xff]  }
 0x4b8   :  { %v14176_v61 = vadd.f32 %v9996_v37, %v9995_v14  ;;  %9075 = vmatprep.subr.bf16.mxu0 %v13050_v44  ;;  %v13083_v34 = vld [vmem:[#allocation10 + $0x7f4] ss:$40 sps:$4 sm:$0xff]   ;;  %v13081_v40 = vld [vmem:[#allocation10 + $0x7f0] ss:$40 sps:$4 sm:$0xff]   ;;  %v13089_v14 = vld [vmem:[#allocation10 + $0x844] ss:$40 sps:$4 sm:$0xff]  }
 0x4b9   :  { %v13078_v44 = vld [vmem:[#allocation10 + $0x1458] ss:$40 sps:$4 sm:$0xff]   ;;  %v13086_v13 = vld [vmem:[#allocation10 + $0x14ac] ss:$40 sps:$4 sm:$0xff]  }
 0x4ba   :  { %9593 = vmatpush1.bf16.msra.mxu1 %v13051_v42  ;;  %v13087_v37 = vld [vmem:[#allocation10 + $0x840] ss:$40 sps:$4 sm:$0xff]  }
 0x4bb   :  { %9076 = vmatpush1.bf16.msra.mxu0 %v13048_v3  ;;  %9594 = vmatprep.subr.bf16.mxu1 %v13059_v60  ;;  %v13084_v42 = vld [vmem:[#allocation10 + $0x14a8] ss:$40 sps:$4 sm:$0xff]   ;;  %v13095_v3 = vld [vmem:[#allocation10 + $0x894] ss:$40 sps:$4 sm:$0xff]  }
 0x4bc   :  { %9077 = vmatprep.subr.bf16.mxu0 %v13056_v59  ;;  %v13092_v60 = vld [vmem:[#allocation10 + $0x14fc] ss:$40 sps:$4 sm:$0xff]   ;;  %v13093_v59 = vld [vmem:[#allocation10 + $0x890] ss:$40 sps:$4 sm:$0xff]  }
 0x4be   :  { %9595 = vmatpush1.bf16.msra.mxu1 %v13057_v18  ;;  %v13090_v18 = vld [vmem:[#allocation10 + $0x14f8] ss:$40 sps:$4 sm:$0xff]  }
 0x4bf   :  { %9078 = vmatpush1.bf16.msra.mxu0 %v13054_v0  ;;  %9596 = vmatprep.subr.bf16.mxu1 %v13065_v57  ;;  %v13101_v0 = vld [vmem:[#allocation10 + $0x8e4] ss:$40 sps:$4 sm:$0xff]  }
 0x4c0   :  { %9079 = vmatprep.subr.bf16.mxu0 %v13062_v4  ;;  %v13098_v57 = vld [vmem:[#allocation10 + $0x154c] ss:$40 sps:$4 sm:$0xff]   ;;  %v13099_v4 = vld [vmem:[#allocation10 + $0x8e0] ss:$40 sps:$4 sm:$0xff]  }
 0x4c2   :  { %9597 = vmatpush1.bf16.msra.mxu1 %v13063_v7  ;;  %v13096_v7 = vld [vmem:[#allocation10 + $0x1548] ss:$40 sps:$4 sm:$0xff]  }
 0x4c3   :  { %9080 = vmatpush1.bf16.msra.mxu0 %v13060_v19  ;;  %9598 = vmatprep.subr.bf16.mxu1 %v13071_v12  ;;  %v13107_v19 = vld [vmem:[#allocation10 + $0x934] ss:$40 sps:$4 sm:$0xff]  }
 0x4c4   :  { %9081 = vmatprep.subr.bf16.mxu0 %v13068_v24  ;;  %v13104_v12 = vld [vmem:[#allocation10 + $0x159c] ss:$40 sps:$4 sm:$0xff]   ;;  %v13105_v24 = vld [vmem:[#allocation10 + $0x930] ss:$40 sps:$4 sm:$0xff]  }
 0x4c6   :  { %9599 = vmatpush1.bf16.msra.mxu1 %v13069_v25  ;;  %v13102_v25 = vld [vmem:[#allocation10 + $0x1598] ss:$40 sps:$4 sm:$0xff]  }
 0x4c7   :  { %9082 = vmatpush1.bf16.msra.mxu0 %v13066_v15  ;;  %9600 = vmatprep.subr.bf16.mxu1 %v13077_v27  ;;  %v13113_v15 = vld [vmem:[#allocation10 + $0x984] ss:$40 sps:$4 sm:$0xff]  }
 0x4c8   :  { %9092 = vmatprep.subr.bf16.mxu0 %v13074_v56  ;;  %v13110_v27 = vld [vmem:[#allocation10 + $0x15ec] ss:$40 sps:$4 sm:$0xff]   ;;  %v13111_v56 = vld [vmem:[#allocation10 + $0x980] ss:$40 sps:$4 sm:$0xff]  }
 0x4ca   :  { %11358 = vmatmul.mubr.msk.bf16.vlgmr.msra.gmra.mrb[20].mxu0 %vm14046_vm11, %v14050_v35  ;;  %9601 = vmatpush1.bf16.msra.mxu1 %v13075_v28  ;;  %v13108_v28 = vld [vmem:[#allocation10 + $0x15e8] ss:$40 sps:$4 sm:$0xff]  }
 0x4cb   :  { %9093 = vmatpush1.bf16.msra.mxu0 %v13072_v36  ;;  %11359 = vmatprep.mubr.msk.bf16.mxu0 %vm8719_vm1, %v14084_v38  ;;  %v13119_v36 = vld [vmem:[#allocation10 + $0x9d4] ss:$40 sps:$4 sm:$0xff]  }
 0x4cc   :  { %9094 = vmatprep.subr.bf16.mxu0 %v13080_v54  ;;  %9602 = vmatprep.subr.bf16.mxu1 %v13083_v34  ;;  %v13116_v54 = vld [vmem:[#allocation10 + $0x163c] ss:$40 sps:$4 sm:$0xff]   ;;  %v13117_v34 = vld [vmem:[#allocation10 + $0x9d0] ss:$40 sps:$4 sm:$0xff]  }
 0x4ce   :  { %9603 = vmatpush1.bf16.msra.mxu1 %v13081_v40  ;;  %v13114_v40 = vld [vmem:[#allocation10 + $0x1638] ss:$40 sps:$4 sm:$0xff]  }
 0x4cf   :  { %9095 = vmatpush1.bf16.msra.mxu0 %v13078_v44  ;;  %9604 = vmatprep.subr.bf16.mxu1 %v13089_v14  ;;  %v13125_v44 = vld [vmem:[#allocation10 + $0xa24] ss:$40 sps:$4 sm:$0xff]  }
 0x4d0   :  { %9096 = vmatprep.subr.bf16.mxu0 %v13086_v13  ;;  %v13122_v14 = vld [vmem:[#allocation10 + $0x168c] ss:$40 sps:$4 sm:$0xff]   ;;  %v13123_v13 = vld [vmem:[#allocation10 + $0xa20] ss:$40 sps:$4 sm:$0xff]  }
 0x4d2   :  { %9605 = vmatpush1.bf16.msra.mxu1 %v13087_v37  ;;  %v13120_v37 = vld [vmem:[#allocation10 + $0x1688] ss:$40 sps:$4 sm:$0xff]  }
 0x4d3   :  { %9097 = vmatpush1.bf16.msra.mxu0 %v13084_v42  ;;  %9606 = vmatprep.subr.bf16.mxu1 %v13095_v3  ;;  %v13131_v42 = vld [vmem:[#allocation10 + $0xa74] ss:$40 sps:$4 sm:$0xff]  }
 0x4d4   :  { %9098 = vmatprep.subr.bf16.mxu0 %v13092_v60  ;;  %v13128_v3 = vld [vmem:[#allocation10 + $0x16dc] ss:$40 sps:$4 sm:$0xff]   ;;  %v13129_v60 = vld [vmem:[#allocation10 + $0xa70] ss:$40 sps:$4 sm:$0xff]  }
 0x4d6   :  { %9607 = vmatpush1.bf16.msra.mxu1 %v13093_v59  ;;  %v13126_v59 = vld [vmem:[#allocation10 + $0x16d8] ss:$40 sps:$4 sm:$0xff]  }
 0x4d7   :  { %9099 = vmatpush1.bf16.msra.mxu0 %v13090_v18  ;;  %9608 = vmatprep.subr.bf16.mxu1 %v13101_v0  ;;  %v13137_v18 = vld [vmem:[#allocation10 + $0xac4] ss:$40 sps:$4 sm:$0xff]  }
 0x4d8   :  { %9100 = vmatprep.subr.bf16.mxu0 %v13098_v57  ;;  %v13134_v0 = vld [vmem:[#allocation10 + $0x172c] ss:$40 sps:$4 sm:$0xff]   ;;  %v13135_v57 = vld [vmem:[#allocation10 + $0xac0] ss:$40 sps:$4 sm:$0xff]  }
 0x4da   :  { %9609 = vmatpush1.bf16.msra.mxu1 %v13099_v4  ;;  %v13132_v4 = vld [vmem:[#allocation10 + $0x1728] ss:$40 sps:$4 sm:$0xff]  }
 0x4db   :  { %9101 = vmatpush1.bf16.msra.mxu0 %v13096_v7  ;;  %9610 = vmatprep.subr.bf16.mxu1 %v13107_v19  ;;  %v13143_v7 = vld [vmem:[#allocation10 + $0xb14] ss:$40 sps:$4 sm:$0xff]  }
 0x4dc   :  { %9102 = vmatprep.subr.bf16.mxu0 %v13104_v12  ;;  %v13140_v19 = vld [vmem:[#allocation10 + $0x1c] ss:$40 sps:$4 sm:$0xff]   ;;  %v13141_v12 = vld [vmem:[#allocation10 + $0xb10] ss:$40 sps:$4 sm:$0xff]  }
 0x4de   :  { %9611 = vmatpush1.bf16.msra.mxu1 %v13105_v24  ;;  %v13138_v24 = vld [vmem:[#allocation10 + $0x18] ss:$40 sps:$4 sm:$0xff]  }
 0x4df   :  { %9103 = vmatpush1.bf16.msra.mxu0 %v13102_v25  ;;  %9612 = vmatprep.subr.bf16.mxu1 %v13113_v15  ;;  %v13146_v25 = vld [vmem:[#allocation10 + $0x6c] ss:$40 sps:$4 sm:$0xff]  }
 0x4e0   :  { %9104 = vmatprep.subr.bf16.mxu0 %v13110_v27  ;;  %v13149_v15 = vld [vmem:[#allocation10 + $0xb64] ss:$40 sps:$4 sm:$0xff]   ;;  %v13147_v27 = vld [vmem:[#allocation10 + $0xb60] ss:$40 sps:$4 sm:$0xff]  }
 0x4e2   :  { %9613 = vmatpush1.bf16.msra.mxu1 %v13111_v56  ;;  %v13144_v56 = vld [vmem:[#allocation10 + $0x68] ss:$40 sps:$4 sm:$0xff]  }
 0x4e3   :  { %9105 = vmatpush1.bf16.msra.mxu0 %v13108_v28  ;;  %9614 = vmatprep.subr.bf16.mxu1 %v13119_v36  ;;  %v13155_v28 = vld [vmem:[#allocation10 + $0xbb4] ss:$40 sps:$4 sm:$0xff]  }
 0x4e4   :  { %9106 = vmatprep.subr.bf16.mxu0 %v13116_v54  ;;  %v13152_v36 = vld [vmem:[#allocation10 + $0xbc] ss:$40 sps:$4 sm:$0xff]   ;;  %v13153_v54 = vld [vmem:[#allocation10 + $0xbb0] ss:$40 sps:$4 sm:$0xff]  }
 0x4e6   :  { %9615 = vmatpush1.bf16.msra.mxu1 %v13117_v34  ;;  %v13150_v34 = vld [vmem:[#allocation10 + $0xb8] ss:$40 sps:$4 sm:$0xff]  }
 0x4e7   :  { %9107 = vmatpush1.bf16.msra.mxu0 %v13114_v40  ;;  %9625 = vmatprep.subr.bf16.mxu1 %v13125_v44  ;;  %v13161_v40 = vld [vmem:[#allocation10 + $0xc04] ss:$40 sps:$4 sm:$0xff]  }
 0x4e8   :  { %9108 = vmatprep.subr.bf16.mxu0 %v13122_v14  ;;  %v13158_v44 = vld [vmem:[#allocation10 + $0x10c] ss:$40 sps:$4 sm:$0xff]   ;;  %v13159_v14 = vld [vmem:[#allocation10 + $0xc00] ss:$40 sps:$4 sm:$0xff]  }
 0x4e9   :  { %11430 = vmatmul.mubr.msk.bf16.vlgmr.msra.gmra.mrb[16].mxu1 %vm13950_vm12, %v13954_v49 }
 0x4ea   :  { %9626 = vmatpush1.bf16.msra.mxu1 %v13123_v13  ;;  %11433 = vmatprep.mubr.msk.bf16.mxu1 %vm14002_vm4, %v14006_v51  ;;  %v13156_v13 = vld [vmem:[#allocation10 + $0x108] ss:$40 sps:$4 sm:$0xff]  }
 0x4eb   :  { %9109 = vmatpush1.bf16.msra.mxu0 %v13120_v37  ;;  %9627 = vmatprep.subr.bf16.mxu1 %v13131_v42  ;;  %v13165_v37 = vld [vmem:[#allocation10 + $0xc50] ss:$40 sps:$4 sm:$0xff]  }
 0x4ec   :  { %9110 = vmatprep.subr.bf16.mxu0 %v13128_v3  ;;  %v13162_v42 = vld [vmem:[#allocation10 + $0x158] ss:$40 sps:$4 sm:$0xff]   ;;  %v13173_v3 = vld [vmem:[#allocation10 + $0xca4] ss:$40 sps:$4 sm:$0xff]  }
 0x4ee   :  { %9628 = vmatpush1.bf16.msra.mxu1 %v13129_v60  ;;  %v13170_v60 = vld [vmem:[#allocation10 + $0x1ac] ss:$40 sps:$4 sm:$0xff]  }
 0x4ef   :  { %9111 = vmatpush1.bf16.msra.mxu0 %v13126_v59  ;;  %9629 = vmatprep.subr.bf16.mxu1 %v13137_v18  ;;  %v13171_v59 = vld [vmem:[#allocation10 + $0xca0] ss:$40 sps:$4 sm:$0xff]  }
 0x4f0   :  { %9112 = vmatprep.subr.bf16.mxu0 %v13134_v0  ;;  %v13168_v18 = vld [vmem:[#allocation10 + $0x1a8] ss:$40 sps:$4 sm:$0xff]   ;;  %v13179_v0 = vld [vmem:[#allocation10 + $0xcf4] ss:$40 sps:$4 sm:$0xff]  }
 0x4f2   :  { %9630 = vmatpush1.bf16.msra.mxu1 %v13135_v57  ;;  %v13176_v57 = vld [vmem:[#allocation10 + $0x1fc] ss:$40 sps:$4 sm:$0xff]  }
 0x4f3   :  { %9113 = vmatpush1.bf16.msra.mxu0 %v13132_v4  ;;  %9631 = vmatprep.subr.bf16.mxu1 %v13143_v7  ;;  %v13177_v4 = vld [vmem:[#allocation10 + $0xcf0] ss:$40 sps:$4 sm:$0xff]  }
 0x4f4   :  { %9338 = vmatprep.subr.bf16.mxu0 %v13140_v19  ;;  %v13174_v7 = vld [vmem:[#allocation10 + $0x1f8] ss:$40 sps:$4 sm:$0xff]   ;;  %v13185_v19 = vld [vmem:[#allocation10 + $0xd44] ss:$40 sps:$4 sm:$0xff]  }
 0x4f6   :  { %11362 = vmatmul.mubr.msk.bf16.vlgmr.msra.gmra.mrb[20].mxu0 %vm14086_vm2, %v14090_v41  ;;  %9632 = vmatpush1.bf16.msra.mxu1 %v13141_v12  ;;  %v13182_v12 = vld [vmem:[#allocation10 + $0x24c] ss:$40 sps:$4 sm:$0xff]  }
 0x4f7   :  { %9339 = vmatpush1.bf16.msra.mxu0 %v13138_v24  ;;  %11393 = vmatprep.mubr.msk.bf16.mxu0 %vm13908_vm3, %v13912_v17  ;;  %v13164_v17 = vld [vmem:[#allocation10 + $0x15c] ss:$40 sps:$4 sm:$0xff]   ;;  %v13183_v24 = vld [vmem:[#allocation10 + $0xd40] ss:$40 sps:$4 sm:$0xff]  }
 0x4f8   :  { %9340 = vmatprep.subr.bf16.mxu0 %v13146_v25  ;;  %9633 = vmatprep.subr.bf16.mxu1 %v13149_v15  ;;  %v13180_v25 = vld [vmem:[#allocation10 + $0x248] ss:$40 sps:$4 sm:$0xff]   ;;  %v13191_v15 = vld [vmem:[#allocation10 + $0xd94] ss:$40 sps:$4 sm:$0xff]  }
 0x4fa   :  { %9634 = vmatpush1.bf16.msra.mxu1 %v13147_v27  ;;  %v13188_v27 = vld [vmem:[#allocation10 + $0x29c] ss:$40 sps:$4 sm:$0xff]  }
 0x4fb   :  { %9341 = vmatpush1.bf16.msra.mxu0 %v13144_v56  ;;  %9635 = vmatprep.subr.bf16.mxu1 %v13155_v28  ;;  %v13189_v56 = vld [vmem:[#allocation10 + $0xd90] ss:$40 sps:$4 sm:$0xff]  }
 0x4fc   :  { %9342 = vmatprep.subr.bf16.mxu0 %v13152_v36  ;;  %v13186_v28 = vld [vmem:[#allocation10 + $0x298] ss:$40 sps:$4 sm:$0xff]   ;;  %v13197_v36 = vld [vmem:[#allocation10 + $0xde4] ss:$40 sps:$4 sm:$0xff]  }
 0x4fe   :  { %9636 = vmatpush1.bf16.msra.mxu1 %v13153_v54  ;;  %v13194_v54 = vld [vmem:[#allocation10 + $0x2ec] ss:$40 sps:$4 sm:$0xff]  }
 0x4ff   :  { %9343 = vmatpush1.bf16.msra.mxu0 %v13150_v34  ;;  %9637 = vmatprep.subr.bf16.mxu1 %v13161_v40  ;;  %v13195_v34 = vld [vmem:[#allocation10 + $0xde0] ss:$40 sps:$4 sm:$0xff]  }
 0x500   :  { %9344 = vmatprep.subr.bf16.mxu0 %v13158_v44  ;;  %v13192_v40 = vld [vmem:[#allocation10 + $0x2e8] ss:$40 sps:$4 sm:$0xff]   ;;  %v13203_v44 = vld [vmem:[#allocation10 + $0xe34] ss:$40 sps:$4 sm:$0xff]  }
 0x502   :  { %9638 = vmatpush1.bf16.msra.mxu1 %v13159_v14  ;;  %v13200_v14 = vld [vmem:[#allocation10 + $0x33c] ss:$40 sps:$4 sm:$0xff]  }
 0x503   :  { %9345 = vmatpush1.bf16.msra.mxu0 %v13156_v13  ;;  %9639 = vmatprep.subr.bf16.mxu1 %v13167_v8  ;;  %v13201_v13 = vld [vmem:[#allocation10 + $0xe30] ss:$40 sps:$4 sm:$0xff]  }
 0x504   :  { %9346 = vmatprep.subr.bf16.mxu0 %v13164_v17  ;;  %v13198_v8 = vld [vmem:[#allocation10 + $0x338] ss:$40 sps:$4 sm:$0xff]   ;;  %v13209_v17 = vld [vmem:[#allocation10 + $0xe84] ss:$40 sps:$4 sm:$0xff]  }
 0x506   :  { %9640 = vmatpush1.bf16.msra.mxu1 %v13165_v37  ;;  %v13206_v37 = vld [vmem:[#allocation10 + $0x38c] ss:$40 sps:$4 sm:$0xff]  }
 0x507   :  { %9347 = vmatpush1.bf16.msra.mxu0 %v13162_v42  ;;  %9641 = vmatprep.subr.bf16.mxu1 %v13173_v3  ;;  %v13207_v42 = vld [vmem:[#allocation10 + $0xe80] ss:$40 sps:$4 sm:$0xff]  }
 0x508   :  { %9348 = vmatprep.subr.bf16.mxu0 %v13170_v60  ;;  %v13204_v3 = vld [vmem:[#allocation10 + $0x388] ss:$40 sps:$4 sm:$0xff]   ;;  %v13215_v60 = vld [vmem:[#allocation10 + $0xed4] ss:$40 sps:$4 sm:$0xff]  }
 0x50a   :  { %9642 = vmatpush1.bf16.msra.mxu1 %v13171_v59  ;;  %v13212_v59 = vld [vmem:[#allocation10 + $0x3dc] ss:$40 sps:$4 sm:$0xff]  }
 0x50b   :  { %9349 = vmatpush1.bf16.msra.mxu0 %v13168_v18  ;;  %9643 = vmatprep.subr.bf16.mxu1 %v13179_v0  ;;  %v13213_v18 = vld [vmem:[#allocation10 + $0xed0] ss:$40 sps:$4 sm:$0xff]  }
 0x50c   :  { %9350 = vmatprep.subr.bf16.mxu0 %v13176_v57  ;;  %v13210_v0 = vld [vmem:[#allocation10 + $0x3d8] ss:$40 sps:$4 sm:$0xff]   ;;  %v13221_v57 = vld [vmem:[#allocation10 + $0xf24] ss:$40 sps:$4 sm:$0xff]  }
 0x50e   :  { %9644 = vmatpush1.bf16.msra.mxu1 %v13177_v4  ;;  %v13218_v4 = vld [vmem:[#allocation10 + $0x42c] ss:$40 sps:$4 sm:$0xff]  }
 0x50f   :  { %9351 = vmatpush1.bf16.msra.mxu0 %v13174_v7  ;;  %9645 = vmatprep.subr.bf16.mxu1 %v13185_v19  ;;  %v13219_v7 = vld [vmem:[#allocation10 + $0xf20] ss:$40 sps:$4 sm:$0xff]  }
 0x510   :  { %9352 = vmatprep.subr.bf16.mxu0 %v13182_v12  ;;  %v13216_v19 = vld [vmem:[#allocation10 + $0x428] ss:$40 sps:$4 sm:$0xff]   ;;  %v13227_v12 = vld [vmem:[#allocation10 + $0xf74] ss:$40 sps:$4 sm:$0xff]  }
 0x512   :  { %9646 = vmatpush1.bf16.msra.mxu1 %v13183_v24  ;;  %v13224_v24 = vld [vmem:[#allocation10 + $0x47c] ss:$40 sps:$4 sm:$0xff]  }
 0x513   :  { %9353 = vmatpush1.bf16.msra.mxu0 %v13180_v25  ;;  %9647 = vmatprep.subr.bf16.mxu1 %v13191_v15  ;;  %v13225_v25 = vld [vmem:[#allocation10 + $0xf70] ss:$40 sps:$4 sm:$0xff]  }
 0x514   :  { %9354 = vmatprep.subr.bf16.mxu0 %v13188_v27  ;;  %v13222_v15 = vld [vmem:[#allocation10 + $0x478] ss:$40 sps:$4 sm:$0xff]   ;;  %v13233_v27 = vld [vmem:[#allocation10 + $0xfc4] ss:$40 sps:$4 sm:$0xff]  }
 0x516   :  { %9648 = vmatpush1.bf16.msra.mxu1 %v13189_v56  ;;  %v13230_v56 = vld [vmem:[#allocation10 + $0x4cc] ss:$40 sps:$4 sm:$0xff]  }
 0x517   :  { %9355 = vmatpush1.bf16.msra.mxu0 %v13186_v28  ;;  %9649 = vmatprep.subr.bf16.mxu1 %v13197_v36  ;;  %v13231_v28 = vld [vmem:[#allocation10 + $0xfc0] ss:$40 sps:$4 sm:$0xff]  }
 0x518   :  { %9356 = vmatprep.subr.bf16.mxu0 %v13194_v54  ;;  %v13228_v36 = vld [vmem:[#allocation10 + $0x4c8] ss:$40 sps:$4 sm:$0xff]   ;;  %v13239_v54 = vld [vmem:[#allocation10 + $0x1014] ss:$40 sps:$4 sm:$0xff]  }
 0x51a   :  { %9650 = vmatpush1.bf16.msra.mxu1 %v13195_v34  ;;  %v13236_v34 = vld [vmem:[#allocation10 + $0x51c] ss:$40 sps:$4 sm:$0xff]  }
 0x51b   :  { %9357 = vmatpush1.bf16.msra.mxu0 %v13192_v40  ;;  %9651 = vmatprep.subr.bf16.mxu1 %v13203_v44  ;;  %v13237_v40 = vld [vmem:[#allocation10 + $0x1010] ss:$40 sps:$4 sm:$0xff]  }
 0x51c   :  { %9358 = vmatprep.subr.bf16.mxu0 %v13200_v14  ;;  %v13234_v44 = vld [vmem:[#allocation10 + $0x518] ss:$40 sps:$4 sm:$0xff]   ;;  %v13242_v14 = vld [vmem:[#allocation10 + $0x56c] ss:$40 sps:$4 sm:$0xff]  }
 0x51e   :  { %9652 = vmatpush1.bf16.msra.mxu1 %v13201_v13  ;;  %v13245_v13 = vld [vmem:[#allocation10 + $0x1064] ss:$40 sps:$4 sm:$0xff]  }
 0x51f   :  { %9359 = vmatpush1.bf16.msra.mxu0 %v13198_v8  ;;  %9653 = vmatprep.subr.bf16.mxu1 %v13209_v17  ;;  %v13243_v8 = vld [vmem:[#allocation10 + $0x1060] ss:$40 sps:$4 sm:$0xff]  }
 0x520   :  { %9360 = vmatprep.subr.bf16.mxu0 %v13206_v37  ;;  %v13240_v17 = vld [vmem:[#allocation10 + $0x568] ss:$40 sps:$4 sm:$0xff]   ;;  %v13251_v37 = vld [vmem:[#allocation10 + $0x10b4] ss:$40 sps:$4 sm:$0xff]  }
 0x522   :  { %9654 = vmatpush1.bf16.msra.mxu1 %v13207_v42  ;;  %v13248_v42 = vld [vmem:[#allocation10 + $0x5bc] ss:$40 sps:$4 sm:$0xff]  }
 0x523   :  { %9361 = vmatpush1.bf16.msra.mxu0 %v13204_v3  ;;  %9655 = vmatprep.subr.bf16.mxu1 %v13215_v60  ;;  %v13249_v3 = vld [vmem:[#allocation10 + $0x10b0] ss:$40 sps:$4 sm:$0xff]  }
 0x524   :  { %9362 = vmatprep.subr.bf16.mxu0 %v13212_v59  ;;  %v13246_v60 = vld [vmem:[#allocation10 + $0x5b8] ss:$40 sps:$4 sm:$0xff]   ;;  %v13257_v59 = vld [vmem:[#allocation10 + $0x1104] ss:$40 sps:$4 sm:$0xff]  }
 0x526   :  { %9656 = vmatpush1.bf16.msra.mxu1 %v13213_v18 }
 0x527   :  { %9363 = vmatpush1.bf16.msra.mxu0 %v13210_v0  ;;  %9666 = vmatprep.subr.bf16.mxu1 %v13221_v57  ;;  %v13252_v57 = vld [vmem:[#allocation10 + $0x608] ss:$40 sps:$4 sm:$0xff]  }
 0x528   :  { %9364 = vmatprep.subr.bf16.mxu0 %v13218_v4  ;;  %v13263_v4 = vld [vmem:[#allocation10 + $0x1154] ss:$40 sps:$4 sm:$0xff]  }
 0x529   :  { %11436 = vmatmul.mubr.msk.bf16.vlgmr.msra.gmra.mrb[16].mxu1 %vm14008_vm6, %v14014_v55 }
 0x52a   :  { %9667 = vmatpush1.bf16.msra.mxu1 %v13219_v7  ;;  %11439 = vmatprep.mubr.msk.bf16.mxu1 %vm14016_vm7, %v14012_v48  ;;  %v13260_v7 = vld [vmem:[#allocation10 + $0x65c] ss:$40 sps:$4 sm:$0xff]  }
 0x52b   :  { %9365 = vmatpush1.bf16.msra.mxu0 %v13216_v19  ;;  %9668 = vmatprep.subr.bf16.mxu1 %v13227_v12  ;;  %v13261_v19 = vld [vmem:[#allocation10 + $0x1150] ss:$40 sps:$4 sm:$0xff]  }
 0x52c   :  { %9366 = vmatprep.subr.bf16.mxu0 %v13224_v24  ;;  %v13258_v12 = vld [vmem:[#allocation10 + $0x658] ss:$40 sps:$4 sm:$0xff]   ;;  %v13269_v24 = vld [vmem:[#allocation10 + $0x11a4] ss:$40 sps:$4 sm:$0xff]  }
 0x52e   :  { %9669 = vmatpush1.bf16.msra.mxu1 %v13225_v25  ;;  %v13266_v25 = vld [vmem:[#allocation10 + $0x6ac] ss:$40 sps:$4 sm:$0xff]  }
 0x52f   :  { %9367 = vmatpush1.bf16.msra.mxu0 %v13222_v15  ;;  %9670 = vmatprep.subr.bf16.mxu1 %v13233_v27  ;;  %v13267_v15 = vld [vmem:[#allocation10 + $0x11a0] ss:$40 sps:$4 sm:$0xff]  }
 0x530   :  { %9368 = vmatprep.subr.bf16.mxu0 %v13230_v56  ;;  %v13264_v27 = vld [vmem:[#allocation10 + $0x6a8] ss:$40 sps:$4 sm:$0xff]   ;;  %v13275_v56 = vld [vmem:[#allocation10 + $0x11f4] ss:$40 sps:$4 sm:$0xff]  }
 0x532   :  { %9671 = vmatpush1.bf16.msra.mxu1 %v13231_v28  ;;  %v13272_v28 = vld [vmem:[#allocation10 + $0x6fc] ss:$40 sps:$4 sm:$0xff]  }
 0x533   :  { %9369 = vmatpush1.bf16.msra.mxu0 %v13228_v36  ;;  %9672 = vmatprep.subr.bf16.mxu1 %v13239_v54  ;;  %v13273_v36 = vld [vmem:[#allocation10 + $0x11f0] ss:$40 sps:$4 sm:$0xff]  }
 0x534   :  { %9379 = vmatprep.subr.bf16.mxu0 %v13236_v34  ;;  %v13270_v54 = vld [vmem:[#allocation10 + $0x6f8] ss:$40 sps:$4 sm:$0xff]   ;;  %v13281_v34 = vld [vmem:[#allocation10 + $0x1244] ss:$40 sps:$4 sm:$0xff]  }
 0x536   :  { %11396 = vmatmul.mubr.msk.bf16.vlgmr.msra.gmra.mrb[24].mxu0 %vm13917_vm5, %v13929_v2  ;;  %9673 = vmatpush1.bf16.msra.mxu1 %v13237_v40  ;;  %v13254_v2 = vld [vmem:[#allocation10 + $0x60c] ss:$40 sps:$4 sm:$0xff]  }
 0x537   :  { %9380 = vmatpush1.bf16.msra.mxu0 %v13234_v44  ;;  %11399 = vmatprep.mubr.msk.bf16.mxu0 %vm13925_vm9, %v13931_v29  ;;  %v13278_v40 = vld [vmem:[#allocation10 + $0x74c] ss:$40 sps:$4 sm:$0xff]   ;;  %v13279_v44 = vld [vmem:[#allocation10 + $0x1240] ss:$40 sps:$4 sm:$0xff]  }
 0x538   :  { %9381 = vmatprep.subr.bf16.mxu0 %v13242_v14  ;;  %9674 = vmatprep.subr.bf16.mxu1 %v13245_v13  ;;  %v13276_v14 = vld [vmem:[#allocation10 + $0x748] ss:$40 sps:$4 sm:$0xff]   ;;  %v13287_v13 = vld [vmem:[#allocation10 + $0x1294] ss:$40 sps:$4 sm:$0xff]  }
 0x53a   :  { %9675 = vmatpush1.bf16.msra.mxu1 %v13243_v8  ;;  %v13284_v8 = vld [vmem:[#allocation10 + $0x79c] ss:$40 sps:$4 sm:$0xff]  }
 0x53b   :  { %9382 = vmatpush1.bf16.msra.mxu0 %v13240_v17  ;;  %9676 = vmatprep.subr.bf16.mxu1 %v13251_v37  ;;  %v13285_v17 = vld [vmem:[#allocation10 + $0x1290] ss:$40 sps:$4 sm:$0xff]  }
 0x53c   :  { %v14207_v46 = vpop.f32.mrb[12].mxu1  ;;  %9383 = vmatprep.subr.bf16.mxu0 %v13248_v42  ;;  %v13282_v37 = vld [vmem:[#allocation10 + $0x798] ss:$40 sps:$4 sm:$0xff]   ;;  %v13293_v42 = vld [vmem:[#allocation10 + $0x12e4] ss:$40 sps:$4 sm:$0xff]  }
 0x53d   :  { %v14209_v18 = vpop.f32.mrb[13].mxu1 }
 0x53e   :  { %v9335_v0 = vpop.f32.mrb[14].mxu1  ;;  %9677 = vmatpush1.bf16.msra.mxu1 %v13249_v3  ;;  %v13290_v3 = vld [vmem:[#allocation10 + $0x7ec] ss:$40 sps:$4 sm:$0xff]  }
 0x53f   :  { %9384 = vmatpush1.bf16.msra.mxu0 %v13246_v60  ;;  %v9336_v29 = vpop.f32.mrb[15].mxu1  ;;  %9678 = vmatprep.subr.bf16.mxu1 %v13257_v59  ;;  %v13291_v60 = vld [vmem:[#allocation10 + $0x12e0] ss:$40 sps:$4 sm:$0xff]   ;;  %v13296_v0 = vld [vmem:[#allocation10 + $0x83c] ss:$40 sps:$4 sm:$0xff]  }
 0x540   :  { %9385 = vmatprep.subr.bf16.mxu0 %v13254_v2  ;;  %v13288_v59 = vld [vmem:[#allocation10 + $0x7e8] ss:$40 sps:$4 sm:$0xff]   ;;  %v13299_v2 = vld [vmem:[#allocation10 + $0x1334] ss:$40 sps:$4 sm:$0xff]   ;;  %v13294_v29 = vld [vmem:[#allocation10 + $0x838] ss:$40 sps:$4 sm:$0xff]  }
 0x542   :  { %9679 = vmatpush1.bf16.msra.mxu1 %v13255_v58  ;;  %v13297_v58 = vld [vmem:[#allocation10 + $0x1330] ss:$40 sps:$4 sm:$0xff]  }
 0x543   :  { %9386 = vmatpush1.bf16.msra.mxu0 %v13252_v57  ;;  %9680 = vmatprep.subr.bf16.mxu1 %v13263_v4  ;;  %v13305_v57 = vld [vmem:[#allocation10 + $0x1384] ss:$40 sps:$4 sm:$0xff]  }
 0x544   :  { %9387 = vmatprep.subr.bf16.mxu0 %v13260_v7  ;;  %v13302_v4 = vld [vmem:[#allocation10 + $0x88c] ss:$40 sps:$4 sm:$0xff]   ;;  %v13303_v7 = vld [vmem:[#allocation10 + $0x1380] ss:$40 sps:$4 sm:$0xff]  }
 0x546   :  { %9681 = vmatpush1.bf16.msra.mxu1 %v13261_v19  ;;  %v13300_v19 = vld [vmem:[#allocation10 + $0x888] ss:$40 sps:$4 sm:$0xff]  }
 0x547   :  { %9388 = vmatpush1.bf16.msra.mxu0 %v13258_v12  ;;  %9682 = vmatprep.subr.bf16.mxu1 %v13269_v24  ;;  %v13311_v12 = vld [vmem:[#allocation10 + $0x13d4] ss:$40 sps:$4 sm:$0xff]  }
 0x548   :  { %9389 = vmatprep.subr.bf16.mxu0 %v13266_v25  ;;  %v13308_v24 = vld [vmem:[#allocation10 + $0x8dc] ss:$40 sps:$4 sm:$0xff]   ;;  %v13309_v25 = vld [vmem:[#allocation10 + $0x13d0] ss:$40 sps:$4 sm:$0xff]  }
 0x54a   :  { %9683 = vmatpush1.bf16.msra.mxu1 %v13267_v15  ;;  %v13306_v15 = vld [vmem:[#allocation10 + $0x8d8] ss:$40 sps:$4 sm:$0xff]  }
 0x54b   :  { %9390 = vmatpush1.bf16.msra.mxu0 %v13264_v27  ;;  %9684 = vmatprep.subr.bf16.mxu1 %v13275_v56  ;;  %v13317_v27 = vld [vmem:[#allocation10 + $0x1424] ss:$40 sps:$4 sm:$0xff]  }
 0x54c   :  { %9391 = vmatprep.subr.bf16.mxu0 %v13272_v28  ;;  %v13314_v56 = vld [vmem:[#allocation10 + $0x92c] ss:$40 sps:$4 sm:$0xff]   ;;  %v13315_v28 = vld [vmem:[#allocation10 + $0x1420] ss:$40 sps:$4 sm:$0xff]  }
 0x54e   :  { %9685 = vmatpush1.bf16.msra.mxu1 %v13273_v36  ;;  %v13312_v36 = vld [vmem:[#allocation10 + $0x928] ss:$40 sps:$4 sm:$0xff]  }
 0x54f   :  { %9392 = vmatpush1.bf16.msra.mxu0 %v13270_v54  ;;  %9686 = vmatprep.subr.bf16.mxu1 %v13281_v34  ;;  %v13323_v54 = vld [vmem:[#allocation10 + $0x1474] ss:$40 sps:$4 sm:$0xff]  }
 0x550   :  { %9393 = vmatprep.subr.bf16.mxu0 %v13278_v40  ;;  %v13320_v34 = vld [vmem:[#allocation10 + $0x97c] ss:$40 sps:$4 sm:$0xff]   ;;  %v13321_v40 = vld [vmem:[#allocation10 + $0x1470] ss:$40 sps:$4 sm:$0xff]  }
 0x552   :  { %9687 = vmatpush1.bf16.msra.mxu1 %v13279_v44  ;;  %v13318_v44 = vld [vmem:[#allocation10 + $0x978] ss:$40 sps:$4 sm:$0xff]  }
 0x553   :  { %9394 = vmatpush1.bf16.msra.mxu0 %v13276_v14  ;;  %9688 = vmatprep.subr.bf16.mxu1 %v13287_v13  ;;  %v13329_v14 = vld [vmem:[#allocation10 + $0x14c4] ss:$40 sps:$4 sm:$0xff]  }
 0x554   :  { %9395 = vmatprep.subr.bf16.mxu0 %v13284_v8  ;;  %v13326_v13 = vld [vmem:[#allocation10 + $0x9cc] ss:$40 sps:$4 sm:$0xff]   ;;  %v13327_v8 = vld [vmem:[#allocation10 + $0x14c0] ss:$40 sps:$4 sm:$0xff]  }
 0x556   :  { %9689 = vmatpush1.bf16.msra.mxu1 %v13285_v17  ;;  %v13324_v17 = vld [vmem:[#allocation10 + $0x9c8] ss:$40 sps:$4 sm:$0xff]  }
 0x557   :  { %9396 = vmatpush1.bf16.msra.mxu0 %v13282_v37  ;;  %9690 = vmatprep.subr.bf16.mxu1 %v13293_v42  ;;  %v13335_v37 = vld [vmem:[#allocation10 + $0x1514] ss:$40 sps:$4 sm:$0xff]  }
 0x558   :  { %9397 = vmatprep.subr.bf16.mxu0 %v13290_v3  ;;  %v13332_v42 = vld [vmem:[#allocation10 + $0xa1c] ss:$40 sps:$4 sm:$0xff]   ;;  %v13333_v3 = vld [vmem:[#allocation10 + $0x1510] ss:$40 sps:$4 sm:$0xff]  }
 0x55a   :  { %9691 = vmatpush1.bf16.msra.mxu1 %v13291_v60  ;;  %v13330_v60 = vld [vmem:[#allocation10 + $0xa18] ss:$40 sps:$4 sm:$0xff]  }
 0x55b   :  { %9398 = vmatpush1.bf16.msra.mxu0 %v13288_v59  ;;  %9692 = vmatprep.subr.bf16.mxu1 %v13299_v2  ;;  %v13338_v59 = vld [vmem:[#allocation10 + $0xa6c] ss:$40 sps:$4 sm:$0xff]  }
 0x55c   :  { %9399 = vmatprep.subr.bf16.mxu0 %v13296_v0  ;;  %v13341_v2 = vld [vmem:[#allocation10 + $0x1564] ss:$40 sps:$4 sm:$0xff]   ;;  %v13339_v0 = vld [vmem:[#allocation10 + $0x1560] ss:$40 sps:$4 sm:$0xff]  }
 0x55e   :  { %9693 = vmatpush1.bf16.msra.mxu1 %v13297_v58  ;;  %v13336_v58 = vld [vmem:[#allocation10 + $0xa68] ss:$40 sps:$4 sm:$0xff]  }
 0x55f   :  { %9400 = vmatpush1.bf16.msra.mxu0 %v13294_v29  ;;  %9694 = vmatprep.subr.bf16.mxu1 %v13305_v57  ;;  %v13347_v29 = vld [vmem:[#allocation10 + $0x15b4] ss:$40 sps:$4 sm:$0xff]  }
 0x560   :  { %9401 = vmatprep.subr.bf16.mxu0 %v13302_v4  ;;  %v13344_v57 = vld [vmem:[#allocation10 + $0xabc] ss:$40 sps:$4 sm:$0xff]   ;;  %v13345_v4 = vld [vmem:[#allocation10 + $0x15b0] ss:$40 sps:$4 sm:$0xff]  }
 0x562   :  { %9695 = vmatpush1.bf16.msra.mxu1 %v13303_v7  ;;  %v13342_v7 = vld [vmem:[#allocation10 + $0xab8] ss:$40 sps:$4 sm:$0xff]  }
 0x563   :  { %9402 = vmatpush1.bf16.msra.mxu0 %v13300_v19  ;;  %9696 = vmatprep.subr.bf16.mxu1 %v13311_v12  ;;  %v13353_v19 = vld [vmem:[#allocation10 + $0x1604] ss:$40 sps:$4 sm:$0xff]   ;;  %v13348_v12 = vld [vmem:[#allocation10 + $0xb08] ss:$40 sps:$4 sm:$0xff]  }
 0x564   :  { %9403 = vmatprep.subr.bf16.mxu0 %v13308_v24  ;;  %v13357_v24 = vld [vmem:[#allocation10 + $0x1650] ss:$40 sps:$4 sm:$0xff]  }
 0x566   :  { %9697 = vmatpush1.bf16.msra.mxu1 %v13309_v25  ;;  %v13354_v25 = vld [vmem:[#allocation10 + $0xb58] ss:$40 sps:$4 sm:$0xff]  }
 0x567   :  { %9404 = vmatpush1.bf16.msra.mxu0 %v13306_v15  ;;  %9707 = vmatprep.subr.bf16.mxu1 %v13317_v27  ;;  %v13365_v15 = vld [vmem:[#allocation10 + $0x16a4] ss:$40 sps:$4 sm:$0xff]  }
 0x568   :  { %9405 = vmatprep.subr.bf16.mxu0 %v13314_v56  ;;  %v13362_v27 = vld [vmem:[#allocation10 + $0xbac] ss:$40 sps:$4 sm:$0xff]   ;;  %v13363_v56 = vld [vmem:[#allocation10 + $0x16a0] ss:$40 sps:$4 sm:$0xff]  }
 0x569   :  { %11442 = vmatmul.mubr.msk.bf16.vlgmr.msra.gmra.mrb[16].mxu1 %vm14046_vm11, %v14050_v35 }
 0x56a   :  { %9708 = vmatpush1.bf16.msra.mxu1 %v13315_v28  ;;  %11443 = vmatprep.mubr.msk.bf16.mxu1 %vm8719_vm1, %v14084_v38  ;;  %v13360_v28 = vld [vmem:[#allocation10 + $0xba8] ss:$40 sps:$4 sm:$0xff]  }
 0x56b   :  { %9406 = vmatpush1.bf16.msra.mxu0 %v13312_v36  ;;  %9709 = vmatprep.subr.bf16.mxu1 %v13323_v54  ;;  %v13371_v36 = vld [vmem:[#allocation10 + $0x16f4] ss:$40 sps:$4 sm:$0xff]  }
 0x56c   :  { %9407 = vmatprep.subr.bf16.mxu0 %v13320_v34  ;;  %v13368_v54 = vld [vmem:[#allocation10 + $0xbfc] ss:$40 sps:$4 sm:$0xff]   ;;  %v13369_v34 = vld [vmem:[#allocation10 + $0x16f0] ss:$40 sps:$4 sm:$0xff]  }
 0x56e   :  { %9710 = vmatpush1.bf16.msra.mxu1 %v13321_v40  ;;  %v13366_v40 = vld [vmem:[#allocation10 + $0xbf8] ss:$40 sps:$4 sm:$0xff]  }
 0x56f   :  { %9408 = vmatpush1.bf16.msra.mxu0 %v13318_v44  ;;  %9711 = vmatprep.subr.bf16.mxu1 %v13329_v14  ;;  %v13377_v44 = vld [vmem:[#allocation10 + $0x1744] ss:$40 sps:$4 sm:$0xff]  }
 0x570   :  { %9409 = vmatprep.subr.bf16.mxu0 %v13326_v13  ;;  %v13374_v14 = vld [vmem:[#allocation10 + $0xc4c] ss:$40 sps:$4 sm:$0xff]   ;;  %v13375_v13 = vld [vmem:[#allocation10 + $0x1740] ss:$40 sps:$4 sm:$0xff]  }
 0x572   :  { %9712 = vmatpush1.bf16.msra.mxu1 %v13327_v8  ;;  %v13372_v8 = vld [vmem:[#allocation10 + $0xc48] ss:$40 sps:$4 sm:$0xff]  }
 0x573   :  { %9410 = vmatpush1.bf16.msra.mxu0 %v13324_v17  ;;  %9713 = vmatprep.subr.bf16.mxu1 %v13335_v37  ;;  %v13380_v17 = vld [vmem:[#allocation10 + $0xc9c] ss:$40 sps:$4 sm:$0xff]   ;;  %v13378_v37 = vld [vmem:[#allocation10 + $0xc98] ss:$40 sps:$4 sm:$0xff]  }
 0x574   :  { %9420 = vmatprep.subr.bf16.mxu0 %v13332_v42  ;;  %v13383_v42 = vld [vmem:[#allocation10 + $0xcec] ss:$40 sps:$4 sm:$0xff]  }
 0x576   :  { %11402 = vmatmul.mubr.msk.bf16.vlgmr.msra.gmra.mrb[24].mxu0 %vm13950_vm12, %v13954_v49  ;;  %9714 = vmatpush1.bf16.msra.mxu1 %v13333_v3  ;;  %v13351_v49 = vld [vmem:[#allocation10 + $0x1600] ss:$40 sps:$4 sm:$0xff]  }
 0x577   :  { %9421 = vmatpush1.bf16.msra.mxu0 %v13330_v60  ;;  %11405 = vmatprep.mubr.msk.bf16.mxu0 %vm14002_vm4, %v14006_v51  ;;  %v13356_v51 = vld [vmem:[#allocation10 + $0xb5c] ss:$40 sps:$4 sm:$0xff]   ;;  %v13381_v3 = vld [vmem:[#allocation10 + $0xce8] ss:$40 sps:$4 sm:$0xff]  }
 0x578   :  { %9422 = vmatprep.subr.bf16.mxu0 %v13338_v59  ;;  %9715 = vmatprep.subr.bf16.mxu1 %v13341_v2  ;;  %v13386_v60 = vld [vmem:[#allocation10 + $0xd3c] ss:$40 sps:$4 sm:$0xff]   ;;  %v13384_v59 = vld [vmem:[#allocation10 + $0xd38] ss:$40 sps:$4 sm:$0xff]   ;;  %v13389_v2 = vld [vmem:[#allocation10 + $0xd8c] ss:$40 sps:$4 sm:$0xff]  }
 0x57a   :  { %9716 = vmatpush1.bf16.msra.mxu1 %v13339_v0  ;;  %v13387_v0 = vld [vmem:[#allocation10 + $0xd88] ss:$40 sps:$4 sm:$0xff]  }
 0x57b   :  { %9423 = vmatpush1.bf16.msra.mxu0 %v13336_v58  ;;  %9717 = vmatprep.subr.bf16.mxu1 %v13347_v29  ;;  %v13392_v58 = vld [vmem:[#allocation10 + $0xddc] ss:$40 sps:$4 sm:$0xff]   ;;  %v13390_v29 = vld [vmem:[#allocation10 + $0xdd8] ss:$40 sps:$4 sm:$0xff]  }
 0x57c   :  { %9424 = vmatprep.subr.bf16.mxu0 %v13344_v57  ;;  %v13395_v57 = vld [vmem:[#allocation10 + $0xe2c] ss:$40 sps:$4 sm:$0xff]  }
 0x57e   :  { %9718 = vmatpush1.bf16.msra.mxu1 %v13345_v4  ;;  %v13393_v4 = vld [vmem:[#allocation10 + $0xe28] ss:$40 sps:$4 sm:$0xff]  }
 0x57f   :  { %9425 = vmatpush1.bf16.msra.mxu0 %v13342_v7  ;;  %9719 = vmatprep.subr.bf16.mxu1 %v13353_v19  ;;  %v13398_v7 = vld [vmem:[#allocation10 + $0xe7c] ss:$40 sps:$4 sm:$0xff]   ;;  %v13396_v19 = vld [vmem:[#allocation10 + $0xe78] ss:$40 sps:$4 sm:$0xff]  }
 0x580   :  { %9426 = vmatprep.subr.bf16.mxu0 %v13350_v63  ;;  %v13401_v63 = vld [vmem:[#allocation10 + $0xecc] ss:$40 sps:$4 sm:$0xff]  }
 0x582   :  { %9720 = vmatpush1.bf16.msra.mxu1 %v13351_v49  ;;  %v13399_v49 = vld [vmem:[#allocation10 + $0xec8] ss:$40 sps:$4 sm:$0xff]  }
 0x583   :  { %9427 = vmatpush1.bf16.msra.mxu0 %v13348_v12  ;;  %9721 = vmatprep.subr.bf16.mxu1 %v13359_v32  ;;  %v13404_v12 = vld [vmem:[#allocation10 + $0xf1c] ss:$40 sps:$4 sm:$0xff]   ;;  %v13402_v32 = vld [vmem:[#allocation10 + $0xf18] ss:$40 sps:$4 sm:$0xff]  }
 0x584   :  { %9428 = vmatprep.subr.bf16.mxu0 %v13356_v51  ;;  %v13407_v51 = vld [vmem:[#allocation10 + $0xf6c] ss:$40 sps:$4 sm:$0xff]  }
 0x586   :  { %9722 = vmatpush1.bf16.msra.mxu1 %v13357_v24  ;;  %v9813_v24 = vadd.s32 %v14136_v21, %v13941_v26  ;;  %v14239_v26 = vld [vmem:[#allocation12] sm:$0xff] }
 0x587   :  { %9429 = vmatpush1.bf16.msra.mxu0 %v13354_v25  ;;  %9723 = vmatprep.subr.bf16.mxu1 %v13365_v15  ;;  %v9815_v25 = vadd.s32 %v14136_v21, %v13968_v62  ;;  %v9814_v15 = vadd.s32 %v14136_v21, %v13870_v23  ;;  %v4938_v62 = vrot.slane %v14239_v26, %v13993_v30 }
 0x588   :  { %9430 = vmatprep.subr.bf16.mxu0 %v13362_v27  ;;  %v9816_v27 = vadd.s32 %v14136_v21, %v13965_v6  ;;  %v4942_v23 = vrot.slane %v14239_v26, %v13996_v16 }
 0x589   :  { %v14246_v52 = vadd.f32 %v14207_v46, %v4938_v62 }
 0x58a   :  { %9724 = vmatpush1.bf16.msra.mxu1 %v13363_v56  ;;  %v13405_v56 = vld [vmem:[#allocation10 + $0xf68] ss:$40 sps:$4 sm:$0xff]   ;;  %v9826_v6 = vshrl.u32 %v9816_v27, 16 }
 0x58b   :  { %9431 = vmatpush1.bf16.msra.mxu0 %v13360_v28  ;;  %9725 = vmatprep.subr.bf16.mxu1 %v13371_v36  ;;  %v9825_v28 = vshrl.u32 %v9815_v25, 16  ;;  %v9824_v36 = vshrl.u32 %v9814_v15, 16  ;;  %vm9752_vm3 = vcmp.gt.f32.partialorder %v14246_v52, 0.0 }
 0x58c   :  { %9432 = vmatprep.subr.bf16.mxu0 %v13368_v54  ;;  %v13408_v54 = vld [vmem:[#allocation10 + $0xfb8] ss:$40 sps:$4 sm:$0xff]  }
 0x58e   :  { %9726 = vmatpush1.bf16.msra.mxu1 %v13369_v34 }
 0x58f   :  { %9433 = vmatpush1.bf16.msra.mxu0 %v13366_v40  ;;  %9727 = vmatprep.subr.bf16.mxu1 %v13377_v44  ;;  %v9835_v40 = vxor.u32 %v9825_v28, %v9815_v25  ;;  %v9834_v44 = vxor.u32 %v9824_v36, %v9814_v15 }
 0x590   :  { %9434 = vmatprep.subr.bf16.mxu0 %v13374_v14  ;;  %v14249_v14 = vadd.f32 %v14209_v18, %v4942_v23  ;;  %v13425_v23 = vld [vmem:[#allocation10 + $0x114c] ss:$40 sps:$4 sm:$0xff]  }
 0x592   :  { %9728 = vmatpush1.bf16.msra.mxu1 %v13375_v13  ;;  %v9836_v13 = vxor.u32 %v9826_v6, %v9816_v27  ;;  %v9763_v46 = vmin.f32 %v14249_v14, 0.0  ;;  %vm9753_vm5 = vcmp.gt.f32.partialorder %v14249_v14, 0.0 }
 0x593   :  { %9435 = vmatpush1.bf16.msra.mxu0 %v13372_v8  ;;  %v13411_v8 = vld [vmem:[#allocation10 + $0x1008] ss:$40 sps:$4 sm:$0xff]  }
 0x594   :  { %9436 = vmatprep.subr.bf16.mxu0 %v13380_v17  ;;  %v9762_v17 = vmin.f32 %v14246_v52, 0.0 }
 0x595   :  { %11446 = vmatmul.mubr.msk.bf16.vlgmr.msra.gmra.mrb[16].mxu1 %vm14086_vm2, %v14090_v41 }
 0x597   :  { %9437 = vmatpush1.bf16.msra.mxu0 %v13378_v37  ;;  %v13416_v37 = vld [vmem:[#allocation10 + $0x105c] ss:$40 sps:$4 sm:$0xff]  }
 0x598   :  { %9438 = vmatprep.subr.bf16.mxu0 %v13383_v42 }
 0x59b   :  { %9439 = vmatpush1.bf16.msra.mxu0 %v13381_v3  ;;  %v9845_v3 = vmul.u32 2246822507, %v9835_v40 }
 0x59c   :  { %9440 = vmatprep.subr.bf16.mxu0 %v13386_v60  ;;  %v9844_v60 = vmul.u32 2246822507, %v9834_v44 }
 0x59f   :  { %9441 = vmatpush1.bf16.msra.mxu0 %v13384_v59  ;;  %v9846_v59 = vmul.u32 2246822507, %v9836_v13 }
 0x5a0   :  { %9442 = vmatprep.subr.bf16.mxu0 %v13389_v2  ;;  %v13414_v2 = vld [vmem:[#allocation10 + $0x1058] ss:$40 sps:$4 sm:$0xff]  }
 0x5a3   :  { %9443 = vmatpush1.bf16.msra.mxu0 %v13387_v0  ;;  %v9776_v0 = vmul.f32 1.442695, %v9762_v17  ;;  %v13428_v17 = vld [vmem:[#allocation10 + $0x119c] ss:$40 sps:$4 sm:$0xff]  }
 0x5a4   :  { %9444 = vmatprep.subr.bf16.mxu0 %v13392_v58  ;;  %v13419_v58 = vld [vmem:[#allocation10 + $0x10ac] ss:$40 sps:$4 sm:$0xff]  }
 0x5a5   :  { %13507 = vpow2.f32 %v9776_v0 }
 0x5a7   :  { %9445 = vmatpush1.bf16.msra.mxu0 %v13390_v29  ;;  %v9855_v29 = vshrl.u32 %v9845_v3, 13 }
 0x5a8   :  { %9446 = vmatprep.subr.bf16.mxu0 %v13395_v57  ;;  %v4930_v57 = vrot.slane %v14239_v26, %v13879_v39 }
 0x5ab   :  { %9447 = vmatpush1.bf16.msra.mxu0 %v13393_v4  ;;  %v9854_v4 = vshrl.u32 %v9844_v60, 13 }
 0x5ac   :  { %9448 = vmatprep.subr.bf16.mxu0 %v13398_v7  ;;  %v9778_v7 = vmul.f32 1.442695, %v9763_v46 }
 0x5ad   :  { %v9864_v27 = vxor.u32 %v9854_v4, %v9844_v60 }
 0x5ae   :  { %13509 = vpow2.f32 %v9778_v7  ;;  %v13429_v7 = vld [vmem:[#allocation10 + $0x11e8] ss:$40 sps:$4 sm:$0xff]  }
 0x5af   :  { %9449 = vmatpush1.bf16.msra.mxu0 %v13396_v19  ;;  %v9856_v19 = vshrl.u32 %v9846_v59, 13  ;;  %v9874_v40 = vmul.u32 3266489909, %v9864_v27 }
 0x5b0   :  { %9450 = vmatprep.subr.bf16.mxu0 %v13401_v63  ;;  %v4934_v63 = vrot.slane %v14239_v26, %v13883_v43 }
 0x5b3   :  { %9451 = vmatpush1.bf16.msra.mxu0 %v13399_v49  ;;  %v13417_v49 = vld [vmem:[#allocation10 + $0x10a8] ss:$40 sps:$4 sm:$0xff]  }
 0x5b4   :  { %9461 = vmatprep.subr.bf16.mxu0 %v13404_v12  ;;  %v13422_v12 = vld [vmem:[#allocation10 + $0x10fc] ss:$40 sps:$4 sm:$0xff]  }
 0x5b6   :  { %11408 = vmatmul.mubr.msk.bf16.vlgmr.msra.gmra.mrb[24].mxu0 %vm14008_vm6, %v14014_v55  ;;  %v9823_v55 = vshrl.u32 %v9813_v24, 16 }
 0x5b7   :  { %9462 = vmatpush1.bf16.msra.mxu0 %v13402_v32  ;;  %11411 = vmatprep.mubr.msk.bf16.mxu0 %vm14016_vm7, %v14012_v48  ;;  %v13413_v48 = vld [vmem:[#allocation10 + $0x100c] ss:$40 sps:$4 sm:$0xff]  }
 0x5b8   :  { %9463 = vmatprep.subr.bf16.mxu0 %v13407_v51  ;;  %v9833_v34 = vxor.u32 %v9823_v55, %v9813_v24  ;;  %v9865_v24 = vxor.u32 %v9855_v29, %v9845_v3  ;;  %v13420_v55 = vld [vmem:[#allocation10 + $0x10f8] ss:$40 sps:$4 sm:$0xff]   ;;  %v9884_v3 = vshrl.u32 %v9874_v40, 16 }
 0x5ba   :  { %v9843_v42 = vmul.u32 2246822507, %v9833_v34  ;;  %v9894_v29 = vxor.u32 %v9884_v3, %v9874_v40 }
 0x5bb   :  { %9464 = vmatpush1.bf16.msra.mxu0 %v13405_v56  ;;  %v9866_v56 = vxor.u32 %v9856_v19, %v9846_v59  ;;  %v13426_v59 = vld [vmem:[#allocation10 + $0x1198] ss:$40 sps:$4 sm:$0xff]  }
 0x5bc   :  { %9465 = vmatprep.subr.bf16.mxu0 %v13410_v53  ;;  %v9853_v18 = vshrl.u32 %v9843_v42, 13 }
 0x5bd   :  { %v9876_v44 = vmul.u32 3266489909, %v9866_v56 }
 0x5be   :  { %v9863_v51 = vxor.u32 %v9853_v18, %v9843_v42  ;;  %v13508_v42 = vpop.eup %13507 }
 0x5bf   :  { %9466 = vmatpush1.bf16.msra.mxu0 %v13408_v54  ;;  %v9886_v46 = vshrl.u32 %v9876_v44, 16  ;;  %v13510_v0 = vpop.eup %13509 }
 0x5c0   :  { %9467 = vmatprep.subr.bf16.mxu0 %v13413_v48  ;;  %v9873_v6 = vmul.u32 3266489909, %v9863_v51  ;;  %v9875_v48 = vmul.u32 3266489909, %v9865_v24  ;;  %v11452_v19 = vadd.f32 -1.0, %v13510_v0  ;;  %v9904_v51 = vshrl.u32 %v9894_v29, 1 }
 0x5c1   :  { %v9896_v4 = vxor.u32 %v9886_v46, %v9876_v44  ;;  %v13443_v0 = vld [vmem:[#allocation10 + $0x132c] ss:$40 sps:$4 sm:$0xff]   ;;  %v13441_v29 = vld [vmem:[#allocation10 + $0x1328] ss:$40 sps:$4 sm:$0xff]  }
 0x5c2   :  { %v9885_v60 = vshrl.u32 %v9875_v48, 16  ;;  %vm9914_vm6 = vcmp.ge.s32.totalorder %v9904_v51, 644245094  ;;  %v13458_v51 = vld [vmem:[#allocation10 + $0x14bc] ss:$40 sps:$4 sm:$0xff]  }
 0x5c3   :  { %9468 = vmatpush1.bf16.msra.mxu0 %v13411_v8  ;;  %v13423_v8 = vld [vmem:[#allocation10 + $0x1148] ss:$40 sps:$4 sm:$0xff]   ;;  %v9906_v27 = vshrl.u32 %v9896_v4, 1  ;;  %v13446_v4 = vld [vmem:[#allocation10 + $0x137c] ss:$40 sps:$4 sm:$0xff]  }
 0x5c4   :  { %9469 = vmatprep.subr.bf16.mxu0 %v13416_v37  ;;  %v9883_v37 = vshrl.u32 %v9873_v6, 16 }
 0x5c5   :  { %vm9916_vm15 = vcmp.ge.s32.totalorder %v9906_v27, 644245094  ;;  %v13459_v27 = vld [vmem:[#allocation10 + $0x1508] ss:$40 sps:$4 sm:$0xff]  }
 0x5c6   :  { %v9893_v18 = vxor.u32 %v9883_v37, %v9873_v6  ;;  %v13479_v6 = vld [vmem:[#allocation10 + $0x16ec] ss:$40 sps:$4 sm:$0xff]  }
 0x5c7   :  { %9470 = vmatpush1.bf16.msra.mxu0 %v13414_v2  ;;  %v13431_v2 = vld [vmem:[#allocation10 + $0x11ec] ss:$40 sps:$4 sm:$0xff]  }
 0x5c8   :  { %9471 = vmatprep.subr.bf16.mxu0 %v13419_v58  ;;  %v11451_v58 = vadd.f32 -1.0, %v13508_v42 }
 0x5c9   :  { %v9126_v32 = vpop.f32.mrb[20].mxu0 }
 0x5ca   :  { %v14257_v25 = vadd.f32 %v9126_v32, %v4930_v57  ;;  %v9128_v15 = vpop.f32.mrb[21].mxu0  ;;  %v9895_v57 = vxor.u32 %v9885_v60, %v9875_v48 }
 0x5cb   :  { %v14259_v62 = vadd.f32 %v9128_v15, %v4934_v63  ;;  %v9130_v53 = vpop.f32.mrb[22].mxu0  ;;  %9472 = vmatpush1.bf16.msra.mxu0 %v13417_v49  ;;  %v13434_v63 = vld [vmem:[#allocation10 + $0x123c] ss:$40 sps:$4 sm:$0xff]   ;;  %v9802_v49 = vsel %vm9752_vm3, %v14246_v52, %v11451_v58 }
 0x5cc   :  { %v9760_v28 = vmin.f32 %v14257_v25, 0.0  ;;  %v9131_v36 = vpop.f32.mrb[23].mxu0  ;;  %9473 = vmatprep.subr.bf16.mxu0 %v13422_v12  ;;  %v9903_v12 = vshrl.u32 %v9893_v18, 1  ;;  %v9905_v15 = vshrl.u32 %v9895_v57, 1  ;;  %v13432_v53 = vld [vmem:[#allocation10 + $0x1238] ss:$40 sps:$4 sm:$0xff]  }
 0x5cd   :  { %v9761_v54 = vmin.f32 %v14259_v62, 0.0  ;;  %vm9750_vm9 = vcmp.gt.f32.partialorder %v14257_v25, 0.0  ;;  %vm9751_vm4 = vcmp.gt.f32.partialorder %v14259_v62, 0.0 }
 0x5ce   :  { %v9772_v34 = vmul.f32 1.442695, %v9760_v28  ;;  %v9803_v28 = vsel %vm9753_vm5, %v14249_v14, %v11452_v19  ;;  %vm14269_vm12 = vcmp.ge.s32.totalorder %v9903_v12, 644245094  ;;  %vm14281_vm7 = vcmp.ge.s32.totalorder %v9905_v15, 644245094 }
 0x5cf   :  { %v9774_v13 = vmul.f32 1.442695, %v9761_v54  ;;  %9474 = vmatpush1.bf16.msra.mxu0 %v13420_v55  ;;  %v9925_v55 = vmul.f32 1.4285715, %v9802_v49  ;;  %v14273_v54 = vld [vmem:[#allocation13] sm:$0xff]  ;;  %vm10042_vm5 = vcmask 7168  }
 0x5d0   :  { %13511 = vpow2.f32 %v9772_v34  ;;  %9475 = vmatprep.subr.bf16.mxu0 %v13425_v23  ;;  %v13437_v23 = vld [vmem:[#allocation10 + $0x128c] ss:$40 sps:$4 sm:$0xff]   ;;  %v9956_v48 = vrot.slane %v14273_v54, %v13879_v39  ;;  %v9960_v40 = vrot.slane %v14273_v54, %v13883_v43  ;;  %v9968_v60 = vrot.slane %v14273_v54, %v13996_v16  ;;  %v13444_v19 = vld [vmem:[#allocation10 + $0x1378] ss:$40 sps:$4 sm:$0xff]  }
 0x5d1   :  { %13513 = vpow2.f32 %v9774_v13  ;;  %v13435_v13 = vld [vmem:[#allocation10 + $0x1288] ss:$40 sps:$4 sm:$0xff]   ;;  %v9935_v43 = vsel %vm14281_vm7, %v9925_v55, 0.0  ;;  %v13449_v16 = vld [vmem:[#allocation10 + $0x13cc] ss:$40 sps:$4 sm:$0xff]  }
 0x5d2   :  { %v13450_v49 = vld [vmem:[#allocation10 + $0x1418] ss:$40 sps:$4 sm:$0xff]   ;;  %v13455_v12 = vld [vmem:[#allocation10 + $0x146c] ss:$40 sps:$4 sm:$0xff]   ;;  %v13470_v55 = vld [vmem:[#allocation10 + $0x15fc] ss:$40 sps:$4 sm:$0xff]  }
 0x5d3   :  { %9476 = vmatpush1.bf16.msra.mxu0 %v13423_v8  ;;  %v9926_v8 = vmul.f32 1.4285715, %v9803_v28  ;;  %v13461_v15 = vld [vmem:[#allocation10 + $0x150c] ss:$40 sps:$4 sm:$0xff]  }
 0x5d4   :  { %9477 = vmatprep.subr.bf16.mxu0 %v13428_v17  ;;  %v13440_v17 = vld [vmem:[#allocation10 + $0x12dc] ss:$40 sps:$4 sm:$0xff]   ;;  %v13473_v28 = vld [vmem:[#allocation10 + $0x164c] ss:$40 sps:$4 sm:$0xff]  }
 0x5d7   :  { %9478 = vmatpush1.bf16.msra.mxu0 %v13426_v59  ;;  %v13438_v59 = vld [vmem:[#allocation10 + $0x12d8] ss:$40 sps:$4 sm:$0xff]  }
 0x5d8   :  { %9479 = vmatprep.subr.bf16.mxu0 %v13431_v2  ;;  %v9936_v2 = vsel %vm9916_vm15, %v9926_v8, 0.0  ;;  %v9820_v8 = vadd.s32 %v14136_v21, %v14067_v10 }
 0x5da   :  { %v13512_v32 = vpop.eup %13511 }
 0x5db   :  { %v13514_v24 = vpop.eup %13513  ;;  %v11449_v56 = vadd.f32 -1.0, %v13512_v32  ;;  %9480 = vmatpush1.bf16.msra.mxu0 %v13429_v7  ;;  %v13453_v32 = vld [vmem:[#allocation10 + $0x1468] ss:$40 sps:$4 sm:$0xff]  }
 0x5dc   :  { %v11450_v36 = vadd.f32 -1.0, %v13514_v24  ;;  %9481 = vmatprep.subr.bf16.mxu0 %v13434_v63  ;;  %v13452_v63 = vld [vmem:[#allocation10 + $0x141c] ss:$40 sps:$4 sm:$0xff]   ;;  %v13456_v24 = vld [vmem:[#allocation10 + $0x14b8] ss:$40 sps:$4 sm:$0xff]  }
 0x5dd   :  { %v9800_v52 = vsel %vm9750_vm9, %v14257_v25, %v11449_v56  ;;  %v13464_v56 = vld [vmem:[#allocation10 + $0x155c] ss:$40 sps:$4 sm:$0xff]  }
 0x5de   :  { %v9923_v34 = vmul.f32 1.4285715, %v9800_v52  ;;  %v9801_v14 = vsel %vm9751_vm4, %v14259_v62, %v11450_v36  ;;  %v9964_v62 = vrot.slane %v14273_v54, %v13993_v30  ;;  %v10000_v30 = vmul.f32 %v9968_v60, %v9936_v2  ;;  %v13471_v36 = vld [vmem:[#allocation10 + $0x1648] ss:$40 sps:$4 sm:$0xff]   ;;  %v13474_v52 = vld [vmem:[#allocation10 + $0x1698] ss:$40 sps:$4 sm:$0xff]  }
 0x5df   :  { %v9924_v44 = vmul.f32 1.4285715, %v9801_v14  ;;  %9482 = vmatpush1.bf16.msra.mxu0 %v13432_v53  ;;  %v13462_v53 = vld [vmem:[#allocation10 + $0x1558] ss:$40 sps:$4 sm:$0xff]  }
 0x5e0   :  { %v9933_v39 = vsel %vm14269_vm12, %v9923_v34, 0.0  ;;  %9483 = vmatprep.subr.bf16.mxu0 %v13437_v23  ;;  %v9999_v58 = vmul.f32 %v9964_v62, %v9935_v43  ;;  %v13476_v23 = vld [vmem:[#allocation10 + $0x169c] ss:$40 sps:$4 sm:$0xff]   ;;  %v13480_v14 = vld [vmem:[#allocation10 + $0x1738] ss:$40 sps:$4 sm:$0xff]   ;;  %v9818_v62 = vadd.s32 %v14136_v21, %v13971_v22 }
 0x5e1   :  { %v9997_v37 = vmul.f32 %v9956_v48, %v9933_v39  ;;  %v9934_v42 = vsel %vm9914_vm6, %v9924_v44, 0.0  ;;  %v13477_v48 = vld [vmem:[#allocation10 + $0x16e8] ss:$40 sps:$4 sm:$0xff]   ;;  %v13482_v34 = vld [vmem:[#allocation10 + $0x173c] ss:$40 sps:$4 sm:$0xff]  }
 0x5e2   :  { %v9998_v3 = vmul.f32 %v9960_v40, %v9934_v42  ;;  %v4916_v39 = vld [vmem:[#allocation12 + $0x8] sm:$0x3] }
 0x5e3   :  { %v10006_v46 = vadd.f32 %v14176_v61, %v9997_v37  ;;  %9484 = vmatpush1.bf16.msra.mxu0 %v13435_v13  ;;  %v13447_v61 = vld [vmem:[#allocation10 + $0x13c8] ss:$40 sps:$4 sm:$0xff]   ;;  %v4954_v37 = vrot.slane %v4916_v39, %v13886_v47  ;;  %v4958_v42 = vrot.slane %v4916_v39, %v13874_v31 }
 0x5e4   :  { %9485 = vmatprep.subr.bf16.mxu0 %v13440_v17  ;;  %v9817_v17 = vadd.s32 %v14136_v21, %v14031_v9 }
 0x5e5   :  { %v10007_v18 = vadd.f32 %v10006_v46, %v9998_v3  ;;  %v9828_v3 = vshrl.u32 %v9818_v62, 16  ;;  %v9829_v46 = vshrl.u32 %v9819_v1, 16 }
 0x5e6   :  { %v9827_v43 = vshrl.u32 %v9817_v17, 16 }
 0x5e7   :  { %9486 = vmatpush1.bf16.msra.mxu0 %v13438_v59  ;;  %v10008_v57 = vadd.f32 %v10007_v18, %v9999_v58  ;;  %v9839_v58 = vxor.u32 %v9829_v46, %v9819_v1 }
 0x5e8   :  { %9487 = vmatprep.subr.bf16.mxu0 %v13443_v0  ;;  %v9837_v2 = vxor.u32 %v9827_v43, %v9817_v17  ;;  %v9838_v0 = vxor.u32 %v9828_v3, %v9818_v62 }
 0x5e9   :  { %v14294_v7 = vadd.f32 %v10008_v57, %v10000_v30 }
 0x5ea   :  { %v9847_v30 = vmul.u32 2246822507, %v9837_v2 }
 0x5eb   :  { %9488 = vmatpush1.bf16.msra.mxu0 %v13441_v29  ;;  %v9848_v29 = vmul.u32 2246822507, %v9838_v0 }
 0x5ec   :  { %9489 = vmatprep.subr.bf16.mxu0 %v13446_v4  ;;  %v9849_v4 = vmul.u32 2246822507, %v9839_v58 }
 0x5ef   :  { %9490 = vmatpush1.bf16.msra.mxu0 %v13444_v19  ;;  %v9857_v19 = vshrl.u32 %v9847_v30, 13 }
 0x5f0   :  { %9491 = vmatprep.subr.bf16.mxu0 %v13449_v16  ;;  %v4946_v16 = vrot.slane %v14239_v26, %v14036_v20 }
 0x5f3   :  { %9492 = vmatpush1.bf16.msra.mxu0 %v13447_v61  ;;  %v9858_v61 = vshrl.u32 %v9848_v29, 13 }
 0x5f4   :  { %9502 = vmatprep.subr.bf16.mxu0 %v13452_v63  ;;  %v4950_v63 = vrot.slane %v14239_v26, %v13980_v33 }
 0x5f6   :  { %11414 = vmatmul.mubr.msk.bf16.vlgmr.msra.gmra.mrb[24].mxu0 %vm14046_vm11, %v14050_v35  ;;  %v13465_v35 = vld [vmem:[#allocation10 + $0x15a8] ss:$40 sps:$4 sm:$0xff]  }
 0x5f7   :  { %9503 = vmatpush1.bf16.msra.mxu0 %v13450_v49  ;;  %11415 = vmatprep.mubr.msk.bf16.mxu0 %vm8719_vm1, %v14084_v38  ;;  %v13468_v38 = vld [vmem:[#allocation10 + $0x15f8] ss:$40 sps:$4 sm:$0xff]   ;;  %v9859_v49 = vshrl.u32 %v9849_v4, 13 }
 0x5f8   :  { %9504 = vmatprep.subr.bf16.mxu0 %v13455_v12 }
 0x5fb   :  { %9505 = vmatpush1.bf16.msra.mxu0 %v13453_v32 }
 0x5fc   :  { %9506 = vmatprep.subr.bf16.mxu0 %v13458_v51  ;;  %v9867_v51 = vxor.u32 %v9857_v19, %v9847_v30 }
 0x5ff   :  { %9507 = vmatpush1.bf16.msra.mxu0 %v13456_v24 }
 0x600   :  { %9508 = vmatprep.subr.bf16.mxu0 %v13461_v15 }
 0x603   :  { %9509 = vmatpush1.bf16.msra.mxu0 %v13459_v27  ;;  %v9868_v27 = vxor.u32 %v9858_v61, %v9848_v29  ;;  %v9942_v29 = vld [vmem:[#allocation13 + $0x8] sm:$0x3] }
 0x604   :  { %9510 = vmatprep.subr.bf16.mxu0 %v13464_v56  ;;  %v9984_v19 = vrot.slane %v9942_v29, %v13874_v31  ;;  %v10025_v31 = vadd.s32 %v13837_v45, %v13839_v50 }
 0x607   :  { %9511 = vmatpush1.bf16.msra.mxu0 %v13462_v53 }
 0x608   :  { %9512 = vmatprep.subr.bf16.mxu0 %v13467_v5  ;;  %v9869_v5 = vxor.u32 %v9859_v49, %v9849_v4  ;;  %v9976_v4 = vrot.slane %v14273_v54, %v13980_v33 }
 0x60a   :  { %v9879_v26 = vmul.u32 3266489909, %v9869_v5 }
 0x60b   :  { %9513 = vmatpush1.bf16.msra.mxu0 %v13465_v35 }
 0x60c   :  { %9514 = vmatprep.subr.bf16.mxu0 %v13470_v55 }
 0x60f   :  { %9515 = vmatpush1.bf16.msra.mxu0 %v13468_v38 }
 0x610   :  { %9516 = vmatprep.subr.bf16.mxu0 %v13473_v28  ;;  %v9877_v28 = vmul.u32 3266489909, %v9867_v51 }
 0x613   :  { %9517 = vmatpush1.bf16.msra.mxu0 %v13471_v36 }
 0x614   :  { %9518 = vmatprep.subr.bf16.mxu0 %v13476_v23 }
 0x617   :  { %9519 = vmatpush1.bf16.msra.mxu0 %v13474_v52  ;;  %v9878_v52 = vmul.u32 3266489909, %v9868_v27 }
 0x618   :  { %9520 = vmatprep.subr.bf16.mxu0 %v13479_v6 }
 0x61b   :  { %9521 = vmatpush1.bf16.msra.mxu0 %v13477_v48 }
 0x61c   :  { %9522 = vmatprep.subr.bf16.mxu0 %v13482_v34 }
 0x61f   :  { %9523 = vmatpush1.bf16.msra.mxu0 %v13480_v14  ;;  %v9887_v14 = vshrl.u32 %v9877_v28, 16 }
 0x621   :  { %v9897_v17 = vxor.u32 %v9887_v14, %v9877_v28 }
 0x622   :  { %11418 = vmatmul.mubr.msk.bf16.vlgmr.msra.gmra.mrb[24].mxu0 %vm14086_vm2, %v14090_v41  ;;  %v9830_v41 = vshrl.u32 %v9820_v8, 16 }
 0x623   :  { %v9907_v43 = vshrl.u32 %v9897_v17, 1 }
 0x624   :  { %v9840_v10 = vxor.u32 %v9830_v41, %v9820_v8 }
 0x625   :  { %vm9917_vm10 = vcmp.ge.s32.totalorder %v9907_v43, 644245094 }
 0x626   :  { %v9850_v18 = vmul.u32 2246822507, %v9840_v10 }
 0x628   :  { %v9860_v11 = vshrl.u32 %v9850_v18, 13 }
 0x62a   :  { %v9870_v12 = vxor.u32 %v9860_v11, %v9850_v18 }
 0x62c   :  { %v9880_v35 = vmul.u32 3266489909, %v9870_v12 }
 0x62e   :  { %v9890_v48 = vshrl.u32 %v9880_v35, 16 }
 0x668   :  { %v9741_v40 = vpop.f32.mrb[16].mxu1 }
 0x669   :  { %v9743_v25 = vpop.f32.mrb[17].mxu1  ;;  %v11480_v60 = vadd.f32 %v9741_v40, %v4954_v37 }
 0x66a   :  { %v9745_v44 = vpop.f32.mrb[18].mxu1  ;;  %v11481_v59 = vadd.f32 %v9743_v25, %v4958_v42  ;;  %v9888_v25 = vshrl.u32 %v9878_v52, 16 }
 0x66b   :  { %v9746_v13 = vpop.f32.mrb[19].mxu1  ;;  %v9766_v9 = vmin.f32 %v11480_v60, 0.0  ;;  %v9889_v44 = vshrl.u32 %v9879_v26, 16  ;;  %vm9756_vm11 = vcmp.gt.f32.partialorder %v11480_v60, 0.0 }
 0x66c   :  { %v9767_v22 = vmin.f32 %v11481_v59, 0.0  ;;  %v9900_v13 = vxor.u32 %v9890_v48, %v9880_v35  ;;  %v9898_v62 = vxor.u32 %v9888_v25, %v9878_v52  ;;  %vm9757_vm0 = vcmp.gt.f32.partialorder %v11481_v59, 0.0 }
 0x66d   :  { %v9784_v57 = vmul.f32 1.442695, %v9766_v9  ;;  %v9899_v37 = vxor.u32 %v9889_v44, %v9879_v26 }
 0x66e   :  { %v9786_v21 = vmul.f32 1.442695, %v9767_v22  ;;  %v9910_v1 = vshrl.u32 %v9900_v13, 1  ;;  %v9908_v46 = vshrl.u32 %v9898_v62, 1 }
 0x66f   :  { %13515 = vpow2.f32 %v9784_v57  ;;  %v9909_v0 = vshrl.u32 %v9899_v37, 1 }
 0x670   :  { %13517 = vpow2.f32 %v9786_v21  ;;  %vm14318_vm2 = vcmp.ge.s32.totalorder %v9910_v1, 644245094  ;;  %vm9918_vm14 = vcmp.ge.s32.totalorder %v9908_v46, 644245094 }
 0x671   :  { %vm9919_vm3 = vcmp.ge.s32.totalorder %v9909_v0, 644245094 }
 0x679   :  { %v13516_v34 = vpop.eup %13515 }
 0x67a   :  { %v13518_v40 = vpop.eup %13517  ;;  %v11455_v8 = vadd.f32 -1.0, %v13516_v34 }
 0x67b   :  { %v11456_v39 = vadd.f32 -1.0, %v13518_v40 }
 0x67c   :  { %v9806_v41 = vsel %vm9756_vm11, %v11480_v60, %v11455_v8  ;;  %v9972_v60 = vrot.slane %v14273_v54, %v14036_v20 }
 0x67d   :  { %v9807_v42 = vsel %vm9757_vm0, %v11481_v59, %v11456_v39  ;;  %v9929_v58 = vmul.f32 1.4285715, %v9806_v41 }
 0x67e   :  { %v9930_v18 = vmul.f32 1.4285715, %v9807_v42 }
 0x67f   :  { %v9939_v12 = vsel %vm9919_vm3, %v9929_v58, 0.0 }
 0x680   :  { %v9940_v61 = vsel %vm14318_vm2, %v9930_v18, 0.0 }
 0x681   :  { %v10004_v51 = vmul.f32 %v9984_v19, %v9940_v61 }
 0x683   :  { %v10013_v54 = vsel %vm8719_vm1, %v10004_v51, 0.0 }
 0x6f5   :  { %v9536_v32 = vpop.f32.mrb[24].mxu0 }
 0x6f6   :  { %v11478_v24 = vadd.f32 %v9536_v32, %v4946_v16  ;;  %v9538_v15 = vpop.f32.mrb[25].mxu0 }
 0x6f7   :  { %v11479_v56 = vadd.f32 %v9538_v15, %v4950_v63  ;;  %v9540_v53 = vpop.f32.mrb[26].mxu0  ;;  %v9980_v63 = vrot.slane %v9942_v29, %v13886_v47  ;;  %v10028_v47 = vstv %s10027_s13 }
 0x6f8   :  { %v9764_v55 = vmin.f32 %v11478_v24, 0.0  ;;  %v9541_v38 = vpop.f32.mrb[27].mxu0  ;;  %vm9754_vm8 = vcmp.gt.f32.partialorder %v11478_v24, 0.0 }
 0x6f9   :  { %v9765_v36 = vmin.f32 %v11479_v56, 0.0  ;;  %vm9755_vm13 = vcmp.gt.f32.partialorder %v11479_v56, 0.0 }
 0x6fa   :  { %v9780_v23 = vmul.f32 1.442695, %v9764_v55 }
 0x6fb   :  { %v9782_v6 = vmul.f32 1.442695, %v9765_v36 }
 0x6fc   :  { %13519 = vpow2.f32 %v9780_v23  ;;  %v11457_v23 = vld [vmem:[#allocation4] ss:$0 sm:$0xff] }
 0x6fd   :  { %13521 = vpow2.f32 %v9782_v6 }
 0x706   :  { %v13520_v3 = vpop.eup %13519 }
 0x707   :  { %v13522_v10 = vpop.eup %13521  ;;  %v11453_v2 = vadd.f32 -1.0, %v13520_v3 }
 0x708   :  { %v11454_v22 = vadd.f32 -1.0, %v13522_v10 }
 0x709   :  { %v9804_v30 = vsel %vm9754_vm8, %v11478_v24, %v11453_v2  ;;  %v10003_v24 = vmul.f32 %v9980_v63, %v9939_v12 }
 0x70a   :  { %v9927_v59 = vmul.f32 1.4285715, %v9804_v30  ;;  %v9805_v57 = vsel %vm9755_vm13, %v11479_v56, %v11454_v22  ;;  %v10029_v56 = vadd.s32 %v10028_v47, %v10025_v31 }
 0x70b   :  { %v9928_v11 = vmul.f32 1.4285715, %v9805_v57 }
 0x70c   :  { %v9937_v21 = vsel %vm9917_vm10, %v9927_v59, 0.0  ;;  %v10030_v53 = vshrl.u32 %v10029_v56, 16 }
 0x70d   :  { %v9938_v16 = vsel %vm9918_vm14, %v9928_v11, 0.0  ;;  %v10001_v49 = vmul.f32 %v9972_v60, %v9937_v21 }
 0x70e   :  { %v10002_v20 = vmul.f32 %v9976_v4, %v9938_v16 }
 0x70f   :  { %v10010_v32 = vadd.f32 %v14294_v7, %v10001_v49  ;;  %v10031_v7 = vxor.u32 %v10030_v53, %v10029_v56 }
 0x711   :  { %v10011_v15 = vadd.f32 %v10010_v32, %v10002_v20  ;;  %v10032_v5 = vmul.u32 2246822507, %v10031_v7 }
 0x713   :  { %v10012_v33 = vadd.f32 %v10011_v15, %v10003_v24  ;;  %v10033_v35 = vshrl.u32 %v10032_v5, 13 }
 0x715   :  { %v10014_v27 = vadd.f32 %v10013_v54, %v10012_v33  ;;  %v10034_v55 = vxor.u32 %v10033_v35, %v10032_v5 }
 0x717   :  { %10015 = vadd.xlane.f32.xlu0 %v10014_v27  ;;  %v10035_v38 = vmul.u32 3266489909, %v10034_v55 }
 0x719   :  { %v10036_v28 = vshrl.u32 %v10035_v38, 16 }
 0x71b   :  { %v10037_v36 = vxor.u32 %v10036_v28, %v10035_v38 }
 0x71d   :  { %v10038_v52 = vshrl.u32 %v10037_v36, 1 }
 0x71f   :  { %vm10039_vm1 = vcmp.ge.s32.totalorder %v10038_v52, 644245094 }
 0x7a4   :  { %v10016_v6 = vpop.xlane.xlu0 %10015 }
 0x7a5   :  { %v10024_v26 = vadd.f32 %v11457_v23, %v10016_v6 }
 0x7a7   :  { %v10040_v48 = vmul.f32 1.4285715, %v10024_v26 }
 0x7a9   :  { %v10041_v34 = vsel %vm10039_vm1, %v10040_v48, 0.0 }
 0x7aa   :  { %10043 = vst.msk [vmem:[%s14348_s8] sm:$0xff] %vm10042_vm5, %v10041_v34 }
 0x7ab   :  { %10048 = vsyncpa [#allocation6], 1 }
 0x7ac   :  { %10049 = vsyncpa [#allocation8], 1 }
 0x7ad   :  { %10050 = vsyncpa [#allocation11], 1 }
 0x7ae   :  { %10051 = vsyncpa [#allocation14], 1 }

</bundles_post_ra>
